<compile_context>
chip_gen: v6e
topology: v6e:2x2x1
jax: 0.10.0
libtpu: 0.0.40
codegen_flags: <defaults>
</compile_context>

<pallas_src>
import jax
import jax.numpy as jnp
from jax.experimental import pallas as pl
from jax.experimental.pallas import tpu as pltpu

# Geometry implied by the PyTorch module (28x28 MNIST input):
#   conv1: 1->10, k=5 : 28 -> 24 ; pool 2x2 -> 12
#   conv2: 10->10, k=5: 12 -> 8  ; pool 2x2 -> 4
#   fc1: 4*4*10 = 160 -> 100 ; fc2: 100 -> 10
IH = 28            # input spatial size
K = 5              # conv kernel size
OH1, PH1 = 24, 12  # conv1 output / pool1 output size
OH2, PH2 = 8, 4    # conv2 output / pool2 output size
NCH = 10           # conv channels / number of classes
NH1 = 100          # fc1 hidden width
CP = 128           # one lane tile
XW = 128           # image width padded to a lane tile
B = 8              # images per grid step (== sublane tile, keeps reshapes free)


# ------------------------------ fused kernel --------------------------------

def fused_net_kernel(x_ref, w1t_ref, b1t_ref, w2t_ref, b2t_ref,
                     wf1_ref, bf1_ref, wf2_ref, bf2_ref, out_ref):
    """Entire Net forward for one block of B images; no scratch needed.

    x_ref  : (28, B, 128)  image rows (outer), batch (sublanes), cols (lanes)
    w1t_ref: (5, 128, 256) conv1 Toeplitz weights  [kh][iw, dw*128+pw1*10+c]
    b1t_ref: (1, 256)
    w2t_ref: (5, 128, 256) conv2 Toeplitz weights  [kh][pw1*10+ci, dw2*128+pw2*10+co]
    b2t_ref: (1, 256)
    wf1_ref: (4, 128, 128) fc1 weights per pooled row ph2 [pw2*10+co, j]
    bf1_ref: (1, 128)
    wf2_ref: (128, 128)    fc2 weights (hidden and classes padded to 128)
    bf2_ref: (1, 128)
    out_ref: (B, 128)      logits, lane-dense (classes in lanes 0..9)
    """
    f32 = jnp.float32

    # ---- stage 1: conv1 (5 Toeplitz matmuls) + bias + ReLU + 2x2 max-pool ----
    z1 = jnp.zeros((OH1 * B, 2 * CP), f32)                      # (192, 256)
    for kh in range(K):
        lhs = x_ref[pl.ds(kh, OH1)].reshape(OH1 * B, XW)        # (192, 128)
        z1 = z1 + jnp.dot(lhs, w1t_ref[kh], preferred_element_type=f32)
    z1 = jnp.maximum(z1 + b1t_ref[...], 0.0)
    # rows = (oh1, n); lanes = dw*128 + pw1*10 + c  (ow1 = 2*pw1 + dw)
    z1 = z1.reshape(PH1, 2, B, 2 * CP)                          # (12, 2, B, 256)
    zdh = jnp.maximum(z1[:, 0], z1[:, 1])                       # pool over dh
    p1 = jnp.maximum(zdh[..., :CP], zdh[..., CP:])              # pool over dw
    # p1: (12, B, 128), lane = pw1*10 + c

    # ---- stage 2: conv2 (5 Toeplitz matmuls) + bias + ReLU + 2x2 max-pool ----
    acc = jnp.zeros((OH2 * B, 2 * CP), f32)                     # (64, 256)
    for kh in range(K):
        lhs = p1[kh:kh + OH2].reshape(OH2 * B, CP)              # (64, 128)
        acc = acc + jnp.dot(lhs, w2t_ref[kh], preferred_element_type=f32)
    z2 = jnp.maximum(acc + b2t_ref[...], 0.0)
    # rows = (oh2, n); lanes = dw2*128 + pw2*10 + co  (ow2 = 2*pw2 + dw2)
    z2 = z2.reshape(PH2, 2, B, 2 * CP)                          # (4, 2, B, 256)
    zdh2 = jnp.maximum(z2[:, 0], z2[:, 1])                      # pool over dh2
    p2 = jnp.maximum(zdh2[..., :CP], zdh2[..., CP:])            # pool over dw2
    # p2: (4, B, 128), lane = pw2*10 + co

    # ---- stage 3: fc1 (4 accumulated matmuls, one per pooled row) + fc2 -----
    h1 = jnp.zeros((B, CP), f32)
    for ph in range(PH2):
        h1 = h1 + jnp.dot(p2[ph], wf1_ref[ph], preferred_element_type=f32)
    h1 = jnp.maximum(h1 + bf1_ref[...], 0.0)
    out = jnp.dot(h1, wf2_ref[...], preferred_element_type=f32) + bf2_ref[...]
    out_ref[...] = out.astype(out_ref.dtype)


# --------------------------- one-time weight prepack --------------------------

def prepack_params(params):
    """Repack PyTorch-layout weights into the Toeplitz / lane layouts the fused
    kernel consumes.  Called ONCE, outside the jitted forward."""
    f32 = jnp.float32
    c1w = params['conv1_w'].astype(f32)   # (10, 1, 5, 5)  [co, ci, kh, kw]
    c1b = params['conv1_b'].astype(f32)
    c2w = params['conv2_w'].astype(f32)   # (10, 10, 5, 5)
    c2b = params['conv2_b'].astype(f32)
    f1w = params['fc1_w'].astype(f32)     # (160, 100)  stored (in, out)
    f1b = params['fc1_b'].astype(f32)
    f2w = params['fc2_w'].astype(f32)     # (100, 10)
    f2b = params['fc2_b'].astype(f32)

    # conv1 Toeplitz: w1t[kh, iw, (ow%2)*128 + (ow//2)*10 + c] = c1w[c,0,kh,iw-ow]
    kh, kw, c, ow = jnp.meshgrid(jnp.arange(K), jnp.arange(K), jnp.arange(NCH),
                                 jnp.arange(OH1), indexing='ij')
    col = (ow % 2) * CP + (ow // 2) * NCH + c
    w1t = jnp.zeros((K, XW, 2 * CP), f32).at[kh, ow + kw, col].set(
        c1w[c, 0, kh, kw])
    dw, pw, cc = jnp.meshgrid(jnp.arange(2), jnp.arange(PH1), jnp.arange(NCH),
                              indexing='ij')
    b1t = jnp.zeros((1, 2 * CP), f32).at[0, dw * CP + pw * NCH + cc].set(c1b[cc])

    # conv2 Toeplitz: w2t[kh, pw1*10+ci, (ow2%2)*128 + (ow2//2)*10 + co]
    #                 = c2w[co, ci, kh, pw1-ow2]
    kh, kw, ci, co, ow2 = jnp.meshgrid(jnp.arange(K), jnp.arange(K),
                                       jnp.arange(NCH), jnp.arange(NCH),
                                       jnp.arange(OH2), indexing='ij')
    row = (ow2 + kw) * NCH + ci
    col = (ow2 % 2) * CP + (ow2 // 2) * NCH + co
    w2t = jnp.zeros((K, CP, 2 * CP), f32).at[kh, row, col].set(
        c2w[co, ci, kh, kw])
    dw, pw, cc = jnp.meshgrid(jnp.arange(2), jnp.arange(PH2), jnp.arange(NCH),
                              indexing='ij')
    b2t = jnp.zeros((1, 2 * CP), f32).at[0, dw * CP + pw * NCH + cc].set(c2b[cc])

    # fc1: PyTorch .view(-1, 160) index = co*16 + ph2*4 + pw2 folded in.
    f1wp = jnp.zeros((PH2 * PH2 * NCH, CP), f32).at[:, :NH1].set(f1w)
    ph2, pw2, co = jnp.meshgrid(jnp.arange(PH2), jnp.arange(PH2),
                                jnp.arange(NCH), indexing='ij')
    wf1 = jnp.zeros((PH2, CP, CP), f32).at[ph2, pw2 * NCH + co].set(
        f1wp[co * (PH2 * PH2) + ph2 * PH2 + pw2])
    bf1 = jnp.zeros((1, CP), f32).at[0, :NH1].set(f1b)

    wf2 = jnp.zeros((CP, CP), f32).at[:NH1, :NCH].set(f2w)
    bf2 = jnp.zeros((1, CP), f32).at[0, :NCH].set(f2b)
    return (w1t, b1t, w2t, b2t, wf1, bf1, wf2, bf2)


# --------------------------------- wrapper ----------------------------------

@jax.jit
def net_forward(x, packed):
    """x: (N, 1, 28, 28) f32 NCHW -> logits (N, 10)."""
    w1t, b1t, w2t, b2t, wf1, bf1, wf2, bf2 = packed
    N = x.shape[0]
    NP = ((N + B - 1) // B) * B          # pad batch to the 8-image block

    # Near-raw input layout (no XLA im2col): rows -> outer dim, batch ->
    # sublanes, image columns -> lanes (28 padded to 128, zeros are inert).
    x2 = x[:, 0].astype(jnp.float32)                              # (N, 28, 28)
    x2 = jnp.pad(x2, ((0, NP - N), (0, 0), (0, XW - IH)))         # (NP, 28, 128)
    xk = jnp.transpose(x2, (1, 0, 2))                             # (28, NP, 128)

    out = pl.pallas_call(
        fused_net_kernel,
        out_shape=jax.ShapeDtypeStruct((NP, CP), jnp.float32),
        grid_spec=pltpu.PrefetchScalarGridSpec(
            num_scalar_prefetch=0,
            grid=(NP // B,),
            in_specs=[
                pl.BlockSpec((IH, B, XW), lambda i: (0, i, 0)),       # images
                pl.BlockSpec((K, XW, 2 * CP), lambda i: (0, 0, 0)),   # w1t
                pl.BlockSpec((1, 2 * CP), lambda i: (0, 0)),          # b1t
                pl.BlockSpec((K, CP, 2 * CP), lambda i: (0, 0, 0)),   # w2t
                pl.BlockSpec((1, 2 * CP), lambda i: (0, 0)),          # b2t
                pl.BlockSpec((PH2, CP, CP), lambda i: (0, 0, 0)),     # wf1
                pl.BlockSpec((1, CP), lambda i: (0, 0)),              # bf1
                pl.BlockSpec((CP, CP), lambda i: (0, 0)),             # wf2
                pl.BlockSpec((1, CP), lambda i: (0, 0)),              # bf2
            ],
            out_specs=pl.BlockSpec((B, CP), lambda i: (i, 0)),
        ),
        compiler_params=pltpu.CompilerParams(
            dimension_semantics=("parallel",)),                      # megacore/v7x
    )(xk, w1t, b1t, w2t, b2t, wf1, bf1, wf2, bf2)
    return out[:N, :NCH]


# ----------------------------- pure-JAX reference ----------------------------

def net_reference(x, params):
    def conv(x, w, b):
        y = jax.lax.conv_general_dilated(
            x, w, (1, 1), 'VALID',
            dimension_numbers=('NCHW', 'OIHW', 'NCHW'))
        return y + b[None, :, None, None]

    def pool(x):
        return jax.lax.reduce_window(x, -jnp.inf, jax.lax.max,
                                     (1, 1, 2, 2), (1, 1, 2, 2), 'VALID')

    h = pool(jnp.maximum(conv(x, params['conv1_w'], params['conv1_b']), 0.0))
    h = pool(jnp.maximum(conv(h, params['conv2_w'], params['conv2_b']), 0.0))
    h = h.reshape(h.shape[0], -1)
    h = jnp.maximum(h @ params['fc1_w'] + params['fc1_b'], 0.0)
    return h @ params['fc2_w'] + params['fc2_b']


# ------------------------------------ main -----------------------------------

if __name__ == "__main__":
    key = jax.random.PRNGKey(0)
    keys = jax.random.split(key, 9)

    def uinit(k, shape, fan_in):
        bound = float(fan_in) ** -0.5
        return jax.random.uniform(k, shape, jnp.float32, -bound, bound)

    # Deterministic parameters (shapes from Net.__init__; PyTorch-style bounds).
    params = {
        'conv1_w': uinit(keys[0], (10, 1, 5, 5), 25),
        'conv1_b': uinit(keys[1], (10,), 25),
        'conv2_w': uinit(keys[2], (10, 10, 5, 5), 250),
        'conv2_b': uinit(keys[3], (10,), 250),
        'fc1_w': uinit(keys[4], (160, 100), 160),   # stored as (in, out)
        'fc1_b': uinit(keys[5], (100,), 160),
        'fc2_w': uinit(keys[6], (100, 10), 100),
        'fc2_b': uinit(keys[7], (10,), 100),
    }

    # MNIST-shaped input (28x28 is required by fc1 = 4*4*10), small batch.
    x = jax.random.normal(keys[8], (2, 1, 28, 28), jnp.float32)

    packed = prepack_params(params)                # one-time weight repack
    out = jax.block_until_ready(net_forward(x, packed))
    ref = jax.block_until_ready(net_reference(x, params))

    assert out.shape == (2, 10), out.shape
    assert jnp.allclose(out, ref, atol=1e-3, rtol=1e-3), \
        float(jnp.max(jnp.abs(out - ref)))
    print("KERNEL_OK")
</pallas_src>

<mosaic_0001>
module attributes {stable_mosaic.version = 11 : i64} {
  func.func @fused_net_kernel(%arg0: i32, %arg1: memref<28x8x128xf32, #tpu.memory_space<vmem>>, %arg2: memref<5x128x256xf32, #tpu.memory_space<vmem>>, %arg3: memref<1x256xf32, #tpu.memory_space<vmem>>, %arg4: memref<5x128x256xf32, #tpu.memory_space<vmem>>, %arg5: memref<1x256xf32, #tpu.memory_space<vmem>>, %arg6: memref<4x128x128xf32, #tpu.memory_space<vmem>>, %arg7: memref<1x128xf32, #tpu.memory_space<vmem>>, %arg8: memref<128x128xf32, #tpu.memory_space<vmem>>, %arg9: memref<1x128xf32, #tpu.memory_space<vmem>>, %arg10: memref<8x128xf32, #tpu.memory_space<vmem>>) attributes {dimension_semantics = [#tpu.dimension_semantics<parallel>], iteration_bounds = array<i64: 1>, scalar_prefetch = 0 : i64, scratch_operands = 0 : i64, tpu.core_type = #tpu.core_type<tc>, window_params = [{transform_indices = @transform_0, window_bounds = array<i64: 28, 8, 128>}, {pipeline_mode = #tpu.pipeline_mode<synchronous>, transform_indices = @transform_1, window_bounds = array<i64: 5, 128, 256>}, {pipeline_mode = #tpu.pipeline_mode<synchronous>, transform_indices = @transform_2, window_bounds = array<i64: 1, 256>}, {pipeline_mode = #tpu.pipeline_mode<synchronous>, transform_indices = @transform_3, window_bounds = array<i64: 5, 128, 256>}, {pipeline_mode = #tpu.pipeline_mode<synchronous>, transform_indices = @transform_4, window_bounds = array<i64: 1, 256>}, {pipeline_mode = #tpu.pipeline_mode<synchronous>, transform_indices = @transform_5, window_bounds = array<i64: 4, 128, 128>}, {pipeline_mode = #tpu.pipeline_mode<synchronous>, transform_indices = @transform_6, window_bounds = array<i64: 1, 128>}, {pipeline_mode = #tpu.pipeline_mode<synchronous>, transform_indices = @transform_7, window_bounds = array<i64: 128, 128>}, {pipeline_mode = #tpu.pipeline_mode<synchronous>, transform_indices = @transform_8, window_bounds = array<i64: 1, 128>}, {transform_indices = @transform_9, window_bounds = array<i64: 8, 128>}]} {
    %cst = arith.constant 0.000000e+00 : f32
    %0 = vector.broadcast %cst : f32 to vector<192x256xf32>
    %c0 = arith.constant 0 : index
    %c0_0 = arith.constant 0 : index
    %c0_1 = arith.constant 0 : index
    %1 = vector.load %arg1[%c0, %c0_0, %c0_1] : memref<28x8x128xf32, #tpu.memory_space<vmem>>, vector<24x8x128xf32>
    %2 = vector.shape_cast %1 : vector<24x8x128xf32> to vector<192x128xf32>
    %c0_2 = arith.constant 0 : index
    %c0_3 = arith.constant 0 : index
    %c0_4 = arith.constant 0 : index
    %3 = vector.load %arg2[%c0_2, %c0_3, %c0_4] : memref<5x128x256xf32, #tpu.memory_space<vmem>>, vector<1x128x256xf32>
    %4 = vector.shape_cast %3 : vector<1x128x256xf32> to vector<128x256xf32>
    %cst_5 = arith.constant dense<0.000000e+00> : vector<192x256xf32>
    %5 = tpu.matmul %2, %4, %cst_5 {dimension_numbers = #tpu.dot_dimension_numbers<[1], [0], [0], [1], [0, 0, 1, 1], [], []>} : vector<192x128xf32>, vector<128x256xf32>, vector<192x256xf32> -> vector<192x256xf32>
    %6 = arith.addf %0, %5 : vector<192x256xf32>
    %c1 = arith.constant 1 : index
    %c0_6 = arith.constant 0 : index
    %c0_7 = arith.constant 0 : index
    %7 = vector.load %arg1[%c1, %c0_6, %c0_7] : memref<28x8x128xf32, #tpu.memory_space<vmem>>, vector<24x8x128xf32>
    %8 = vector.shape_cast %7 : vector<24x8x128xf32> to vector<192x128xf32>
    %c1_8 = arith.constant 1 : index
    %c0_9 = arith.constant 0 : index
    %c0_10 = arith.constant 0 : index
    %9 = vector.load %arg2[%c1_8, %c0_9, %c0_10] : memref<5x128x256xf32, #tpu.memory_space<vmem>>, vector<1x128x256xf32>
    %10 = vector.shape_cast %9 : vector<1x128x256xf32> to vector<128x256xf32>
    %cst_11 = arith.constant dense<0.000000e+00> : vector<192x256xf32>
    %11 = tpu.matmul %8, %10, %cst_11 {dimension_numbers = #tpu.dot_dimension_numbers<[1], [0], [0], [1], [0, 0, 1, 1], [], []>} : vector<192x128xf32>, vector<128x256xf32>, vector<192x256xf32> -> vector<192x256xf32>
    %12 = arith.addf %6, %11 : vector<192x256xf32>
    %c2 = arith.constant 2 : index
    %c0_12 = arith.constant 0 : index
    %c0_13 = arith.constant 0 : index
    %13 = vector.load %arg1[%c2, %c0_12, %c0_13] : memref<28x8x128xf32, #tpu.memory_space<vmem>>, vector<24x8x128xf32>
    %14 = vector.shape_cast %13 : vector<24x8x128xf32> to vector<192x128xf32>
    %c2_14 = arith.constant 2 : index
    %c0_15 = arith.constant 0 : index
    %c0_16 = arith.constant 0 : index
    %15 = vector.load %arg2[%c2_14, %c0_15, %c0_16] : memref<5x128x256xf32, #tpu.memory_space<vmem>>, vector<1x128x256xf32>
    %16 = vector.shape_cast %15 : vector<1x128x256xf32> to vector<128x256xf32>
    %cst_17 = arith.constant dense<0.000000e+00> : vector<192x256xf32>
    %17 = tpu.matmul %14, %16, %cst_17 {dimension_numbers = #tpu.dot_dimension_numbers<[1], [0], [0], [1], [0, 0, 1, 1], [], []>} : vector<192x128xf32>, vector<128x256xf32>, vector<192x256xf32> -> vector<192x256xf32>
    %18 = arith.addf %12, %17 : vector<192x256xf32>
    %c3 = arith.constant 3 : index
    %c0_18 = arith.constant 0 : index
    %c0_19 = arith.constant 0 : index
    %19 = vector.load %arg1[%c3, %c0_18, %c0_19] : memref<28x8x128xf32, #tpu.memory_space<vmem>>, vector<24x8x128xf32>
    %20 = vector.shape_cast %19 : vector<24x8x128xf32> to vector<192x128xf32>
    %c3_20 = arith.constant 3 : index
    %c0_21 = arith.constant 0 : index
    %c0_22 = arith.constant 0 : index
    %21 = vector.load %arg2[%c3_20, %c0_21, %c0_22] : memref<5x128x256xf32, #tpu.memory_space<vmem>>, vector<1x128x256xf32>
    %22 = vector.shape_cast %21 : vector<1x128x256xf32> to vector<128x256xf32>
    %cst_23 = arith.constant dense<0.000000e+00> : vector<192x256xf32>
    %23 = tpu.matmul %20, %22, %cst_23 {dimension_numbers = #tpu.dot_dimension_numbers<[1], [0], [0], [1], [0, 0, 1, 1], [], []>} : vector<192x128xf32>, vector<128x256xf32>, vector<192x256xf32> -> vector<192x256xf32>
    %24 = arith.addf %18, %23 : vector<192x256xf32>
    %c4 = arith.constant 4 : index
    %c0_24 = arith.constant 0 : index
    %c0_25 = arith.constant 0 : index
    %25 = vector.load %arg1[%c4, %c0_24, %c0_25] : memref<28x8x128xf32, #tpu.memory_space<vmem>>, vector<24x8x128xf32>
    %26 = vector.shape_cast %25 : vector<24x8x128xf32> to vector<192x128xf32>
    %c4_26 = arith.constant 4 : index
    %c0_27 = arith.constant 0 : index
    %c0_28 = arith.constant 0 : index
    %27 = vector.load %arg2[%c4_26, %c0_27, %c0_28] : memref<5x128x256xf32, #tpu.memory_space<vmem>>, vector<1x128x256xf32>
    %28 = vector.shape_cast %27 : vector<1x128x256xf32> to vector<128x256xf32>
    %cst_29 = arith.constant dense<0.000000e+00> : vector<192x256xf32>
    %29 = tpu.matmul %26, %28, %cst_29 {dimension_numbers = #tpu.dot_dimension_numbers<[1], [0], [0], [1], [0, 0, 1, 1], [], []>} : vector<192x128xf32>, vector<128x256xf32>, vector<192x256xf32> -> vector<192x256xf32>
    %30 = arith.addf %24, %29 : vector<192x256xf32>
    %c0_30 = arith.constant 0 : index
    %c0_31 = arith.constant 0 : index
    %31 = vector.load %arg3[%c0_30, %c0_31] : memref<1x256xf32, #tpu.memory_space<vmem>>, vector<1x256xf32>
    %32 = vector.broadcast %31 : vector<1x256xf32> to vector<192x256xf32>
    %33 = arith.addf %30, %32 : vector<192x256xf32>
    %cst_32 = arith.constant 0.000000e+00 : f32
    %34 = vector.broadcast %cst_32 : f32 to vector<192x256xf32>
    %35 = arith.maximumf %33, %34 : vector<192x256xf32>
    %36 = vector.shape_cast %35 : vector<192x256xf32> to vector<12x2x8x256xf32>
    %37 = vector.extract_strided_slice %36 {offsets = [0, 0, 0, 0], sizes = [12, 1, 8, 256], strides = [1, 1, 1, 1]} : vector<12x2x8x256xf32> to vector<12x1x8x256xf32>
    %38 = vector.shape_cast %37 : vector<12x1x8x256xf32> to vector<12x8x256xf32>
    %39 = vector.extract_strided_slice %36 {offsets = [0, 1, 0, 0], sizes = [12, 1, 8, 256], strides = [1, 1, 1, 1]} : vector<12x2x8x256xf32> to vector<12x1x8x256xf32>
    %40 = vector.shape_cast %39 : vector<12x1x8x256xf32> to vector<12x8x256xf32>
    %41 = arith.maximumf %38, %40 : vector<12x8x256xf32>
    %42 = vector.extract_strided_slice %41 {offsets = [0, 0, 0], sizes = [12, 8, 128], strides = [1, 1, 1]} : vector<12x8x256xf32> to vector<12x8x128xf32>
    %43 = vector.extract_strided_slice %41 {offsets = [0, 0, 128], sizes = [12, 8, 128], strides = [1, 1, 1]} : vector<12x8x256xf32> to vector<12x8x128xf32>
    %44 = arith.maximumf %42, %43 : vector<12x8x128xf32>
    %cst_33 = arith.constant 0.000000e+00 : f32
    %45 = vector.broadcast %cst_33 : f32 to vector<64x256xf32>
    %46 = vector.extract_strided_slice %44 {offsets = [0, 0, 0], sizes = [8, 8, 128], strides = [1, 1, 1]} : vector<12x8x128xf32> to vector<8x8x128xf32>
    %47 = vector.shape_cast %46 : vector<8x8x128xf32> to vector<64x128xf32>
    %c0_34 = arith.constant 0 : index
    %c0_35 = arith.constant 0 : index
    %c0_36 = arith.constant 0 : index
    %48 = vector.load %arg4[%c0_34, %c0_35, %c0_36] : memref<5x128x256xf32, #tpu.memory_space<vmem>>, vector<1x128x256xf32>
    %49 = vector.shape_cast %48 : vector<1x128x256xf32> to vector<128x256xf32>
    %cst_37 = arith.constant dense<0.000000e+00> : vector<64x256xf32>
    %50 = tpu.matmul %47, %49, %cst_37 {dimension_numbers = #tpu.dot_dimension_numbers<[1], [0], [0], [1], [0, 0, 1, 1], [], []>} : vector<64x128xf32>, vector<128x256xf32>, vector<64x256xf32> -> vector<64x256xf32>
    %51 = arith.addf %45, %50 : vector<64x256xf32>
    %52 = vector.extract_strided_slice %44 {offsets = [1, 0, 0], sizes = [8, 8, 128], strides = [1, 1, 1]} : vector<12x8x128xf32> to vector<8x8x128xf32>
    %53 = vector.shape_cast %52 : vector<8x8x128xf32> to vector<64x128xf32>
    %c1_38 = arith.constant 1 : index
    %c0_39 = arith.constant 0 : index
    %c0_40 = arith.constant 0 : index
    %54 = vector.load %arg4[%c1_38, %c0_39, %c0_40] : memref<5x128x256xf32, #tpu.memory_space<vmem>>, vector<1x128x256xf32>
    %55 = vector.shape_cast %54 : vector<1x128x256xf32> to vector<128x256xf32>
    %cst_41 = arith.constant dense<0.000000e+00> : vector<64x256xf32>
    %56 = tpu.matmul %53, %55, %cst_41 {dimension_numbers = #tpu.dot_dimension_numbers<[1], [0], [0], [1], [0, 0, 1, 1], [], []>} : vector<64x128xf32>, vector<128x256xf32>, vector<64x256xf32> -> vector<64x256xf32>
    %57 = arith.addf %51, %56 : vector<64x256xf32>
    %58 = vector.extract_strided_slice %44 {offsets = [2, 0, 0], sizes = [8, 8, 128], strides = [1, 1, 1]} : vector<12x8x128xf32> to vector<8x8x128xf32>
    %59 = vector.shape_cast %58 : vector<8x8x128xf32> to vector<64x128xf32>
    %c2_42 = arith.constant 2 : index
    %c0_43 = arith.constant 0 : index
    %c0_44 = arith.constant 0 : index
    %60 = vector.load %arg4[%c2_42, %c0_43, %c0_44] : memref<5x128x256xf32, #tpu.memory_space<vmem>>, vector<1x128x256xf32>
    %61 = vector.shape_cast %60 : vector<1x128x256xf32> to vector<128x256xf32>
    %cst_45 = arith.constant dense<0.000000e+00> : vector<64x256xf32>
    %62 = tpu.matmul %59, %61, %cst_45 {dimension_numbers = #tpu.dot_dimension_numbers<[1], [0], [0], [1], [0, 0, 1, 1], [], []>} : vector<64x128xf32>, vector<128x256xf32>, vector<64x256xf32> -> vector<64x256xf32>
    %63 = arith.addf %57, %62 : vector<64x256xf32>
    %64 = vector.extract_strided_slice %44 {offsets = [3, 0, 0], sizes = [8, 8, 128], strides = [1, 1, 1]} : vector<12x8x128xf32> to vector<8x8x128xf32>
    %65 = vector.shape_cast %64 : vector<8x8x128xf32> to vector<64x128xf32>
    %c3_46 = arith.constant 3 : index
    %c0_47 = arith.constant 0 : index
    %c0_48 = arith.constant 0 : index
    %66 = vector.load %arg4[%c3_46, %c0_47, %c0_48] : memref<5x128x256xf32, #tpu.memory_space<vmem>>, vector<1x128x256xf32>
    %67 = vector.shape_cast %66 : vector<1x128x256xf32> to vector<128x256xf32>
    %cst_49 = arith.constant dense<0.000000e+00> : vector<64x256xf32>
    %68 = tpu.matmul %65, %67, %cst_49 {dimension_numbers = #tpu.dot_dimension_numbers<[1], [0], [0], [1], [0, 0, 1, 1], [], []>} : vector<64x128xf32>, vector<128x256xf32>, vector<64x256xf32> -> vector<64x256xf32>
    %69 = arith.addf %63, %68 : vector<64x256xf32>
    %70 = vector.extract_strided_slice %44 {offsets = [4, 0, 0], sizes = [8, 8, 128], strides = [1, 1, 1]} : vector<12x8x128xf32> to vector<8x8x128xf32>
    %71 = vector.shape_cast %70 : vector<8x8x128xf32> to vector<64x128xf32>
    %c4_50 = arith.constant 4 : index
    %c0_51 = arith.constant 0 : index
    %c0_52 = arith.constant 0 : index
    %72 = vector.load %arg4[%c4_50, %c0_51, %c0_52] : memref<5x128x256xf32, #tpu.memory_space<vmem>>, vector<1x128x256xf32>
    %73 = vector.shape_cast %72 : vector<1x128x256xf32> to vector<128x256xf32>
    %cst_53 = arith.constant dense<0.000000e+00> : vector<64x256xf32>
    %74 = tpu.matmul %71, %73, %cst_53 {dimension_numbers = #tpu.dot_dimension_numbers<[1], [0], [0], [1], [0, 0, 1, 1], [], []>} : vector<64x128xf32>, vector<128x256xf32>, vector<64x256xf32> -> vector<64x256xf32>
    %75 = arith.addf %69, %74 : vector<64x256xf32>
    %c0_54 = arith.constant 0 : index
    %c0_55 = arith.constant 0 : index
    %76 = vector.load %arg5[%c0_54, %c0_55] : memref<1x256xf32, #tpu.memory_space<vmem>>, vector<1x256xf32>
    %77 = vector.broadcast %76 : vector<1x256xf32> to vector<64x256xf32>
    %78 = arith.addf %75, %77 : vector<64x256xf32>
    %cst_56 = arith.constant 0.000000e+00 : f32
    %79 = vector.broadcast %cst_56 : f32 to vector<64x256xf32>
    %80 = arith.maximumf %78, %79 : vector<64x256xf32>
    %81 = vector.shape_cast %80 : vector<64x256xf32> to vector<4x2x8x256xf32>
    %82 = vector.extract_strided_slice %81 {offsets = [0, 0, 0, 0], sizes = [4, 1, 8, 256], strides = [1, 1, 1, 1]} : vector<4x2x8x256xf32> to vector<4x1x8x256xf32>
    %83 = vector.shape_cast %82 : vector<4x1x8x256xf32> to vector<4x8x256xf32>
    %84 = vector.extract_strided_slice %81 {offsets = [0, 1, 0, 0], sizes = [4, 1, 8, 256], strides = [1, 1, 1, 1]} : vector<4x2x8x256xf32> to vector<4x1x8x256xf32>
    %85 = vector.shape_cast %84 : vector<4x1x8x256xf32> to vector<4x8x256xf32>
    %86 = arith.maximumf %83, %85 : vector<4x8x256xf32>
    %87 = vector.extract_strided_slice %86 {offsets = [0, 0, 0], sizes = [4, 8, 128], strides = [1, 1, 1]} : vector<4x8x256xf32> to vector<4x8x128xf32>
    %88 = vector.extract_strided_slice %86 {offsets = [0, 0, 128], sizes = [4, 8, 128], strides = [1, 1, 1]} : vector<4x8x256xf32> to vector<4x8x128xf32>
    %89 = arith.maximumf %87, %88 : vector<4x8x128xf32>
    %cst_57 = arith.constant 0.000000e+00 : f32
    %90 = vector.broadcast %cst_57 : f32 to vector<8x128xf32>
    %91 = vector.extract_strided_slice %89 {offsets = [0, 0, 0], sizes = [1, 8, 128], strides = [1, 1, 1]} : vector<4x8x128xf32> to vector<1x8x128xf32>
    %92 = vector.shape_cast %91 : vector<1x8x128xf32> to vector<8x128xf32>
    %c0_58 = arith.constant 0 : index
    %c0_59 = arith.constant 0 : index
    %c0_60 = arith.constant 0 : index
    %93 = vector.load %arg6[%c0_58, %c0_59, %c0_60] : memref<4x128x128xf32, #tpu.memory_space<vmem>>, vector<1x128x128xf32>
    %94 = vector.shape_cast %93 : vector<1x128x128xf32> to vector<128x128xf32>
    %cst_61 = arith.constant dense<0.000000e+00> : vector<8x128xf32>
    %95 = tpu.matmul %92, %94, %cst_61 {dimension_numbers = #tpu.dot_dimension_numbers<[1], [0], [0], [1], [0, 0, 1, 1], [], []>} : vector<8x128xf32>, vector<128x128xf32>, vector<8x128xf32> -> vector<8x128xf32>
    %96 = arith.addf %90, %95 : vector<8x128xf32>
    %97 = vector.extract_strided_slice %89 {offsets = [1, 0, 0], sizes = [1, 8, 128], strides = [1, 1, 1]} : vector<4x8x128xf32> to vector<1x8x128xf32>
    %98 = vector.shape_cast %97 : vector<1x8x128xf32> to vector<8x128xf32>
    %c1_62 = arith.constant 1 : index
    %c0_63 = arith.constant 0 : index
    %c0_64 = arith.constant 0 : index
    %99 = vector.load %arg6[%c1_62, %c0_63, %c0_64] : memref<4x128x128xf32, #tpu.memory_space<vmem>>, vector<1x128x128xf32>
    %100 = vector.shape_cast %99 : vector<1x128x128xf32> to vector<128x128xf32>
    %cst_65 = arith.constant dense<0.000000e+00> : vector<8x128xf32>
    %101 = tpu.matmul %98, %100, %cst_65 {dimension_numbers = #tpu.dot_dimension_numbers<[1], [0], [0], [1], [0, 0, 1, 1], [], []>} : vector<8x128xf32>, vector<128x128xf32>, vector<8x128xf32> -> vector<8x128xf32>
    %102 = arith.addf %96, %101 : vector<8x128xf32>
    %103 = vector.extract_strided_slice %89 {offsets = [2, 0, 0], sizes = [1, 8, 128], strides = [1, 1, 1]} : vector<4x8x128xf32> to vector<1x8x128xf32>
    %104 = vector.shape_cast %103 : vector<1x8x128xf32> to vector<8x128xf32>
    %c2_66 = arith.constant 2 : index
    %c0_67 = arith.constant 0 : index
    %c0_68 = arith.constant 0 : index
    %105 = vector.load %arg6[%c2_66, %c0_67, %c0_68] : memref<4x128x128xf32, #tpu.memory_space<vmem>>, vector<1x128x128xf32>
    %106 = vector.shape_cast %105 : vector<1x128x128xf32> to vector<128x128xf32>
    %cst_69 = arith.constant dense<0.000000e+00> : vector<8x128xf32>
    %107 = tpu.matmul %104, %106, %cst_69 {dimension_numbers = #tpu.dot_dimension_numbers<[1], [0], [0], [1], [0, 0, 1, 1], [], []>} : vector<8x128xf32>, vector<128x128xf32>, vector<8x128xf32> -> vector<8x128xf32>
    %108 = arith.addf %102, %107 : vector<8x128xf32>
    %109 = vector.extract_strided_slice %89 {offsets = [3, 0, 0], sizes = [1, 8, 128], strides = [1, 1, 1]} : vector<4x8x128xf32> to vector<1x8x128xf32>
    %110 = vector.shape_cast %109 : vector<1x8x128xf32> to vector<8x128xf32>
    %c3_70 = arith.constant 3 : index
    %c0_71 = arith.constant 0 : index
    %c0_72 = arith.constant 0 : index
    %111 = vector.load %arg6[%c3_70, %c0_71, %c0_72] : memref<4x128x128xf32, #tpu.memory_space<vmem>>, vector<1x128x128xf32>
    %112 = vector.shape_cast %111 : vector<1x128x128xf32> to vector<128x128xf32>
    %cst_73 = arith.constant dense<0.000000e+00> : vector<8x128xf32>
    %113 = tpu.matmul %110, %112, %cst_73 {dimension_numbers = #tpu.dot_dimension_numbers<[1], [0], [0], [1], [0, 0, 1, 1], [], []>} : vector<8x128xf32>, vector<128x128xf32>, vector<8x128xf32> -> vector<8x128xf32>
    %114 = arith.addf %108, %113 : vector<8x128xf32>
    %c0_74 = arith.constant 0 : index
    %c0_75 = arith.constant 0 : index
    %115 = vector.load %arg7[%c0_74, %c0_75] : memref<1x128xf32, #tpu.memory_space<vmem>>, vector<1x128xf32>
    %116 = vector.broadcast %115 : vector<1x128xf32> to vector<8x128xf32>
    %117 = arith.addf %114, %116 : vector<8x128xf32>
    %cst_76 = arith.constant 0.000000e+00 : f32
    %118 = vector.broadcast %cst_76 : f32 to vector<8x128xf32>
    %119 = arith.maximumf %117, %118 : vector<8x128xf32>
    %c0_77 = arith.constant 0 : index
    %c0_78 = arith.constant 0 : index
    %120 = vector.load %arg8[%c0_77, %c0_78] : memref<128x128xf32, #tpu.memory_space<vmem>>, vector<128x128xf32>
    %cst_79 = arith.constant dense<0.000000e+00> : vector<8x128xf32>
    %121 = tpu.matmul %119, %120, %cst_79 {dimension_numbers = #tpu.dot_dimension_numbers<[1], [0], [0], [1], [0, 0, 1, 1], [], []>} : vector<8x128xf32>, vector<128x128xf32>, vector<8x128xf32> -> vector<8x128xf32>
    %c0_80 = arith.constant 0 : index
    %c0_81 = arith.constant 0 : index
    %122 = vector.load %arg9[%c0_80, %c0_81] : memref<1x128xf32, #tpu.memory_space<vmem>>, vector<1x128xf32>
    %123 = vector.broadcast %122 : vector<1x128xf32> to vector<8x128xf32>
    %124 = arith.addf %121, %123 : vector<8x128xf32>
    %c0_82 = arith.constant 0 : index
    %c0_83 = arith.constant 0 : index
    %125 = vector.load %arg10[%c0_82, %c0_83] : memref<8x128xf32, #tpu.memory_space<vmem>>, vector<8x128xf32>
    tpu.vector_store %arg10[%c0_82, %c0_83], %124 {strides = array<i32>} : memref<8x128xf32, #tpu.memory_space<vmem>>, vector<8x128xf32>,
    return
  }
  func.func @transform_0(%arg0: i32) -> (i32, i32, i32) {
    %c0_i32 = arith.constant 0 : i32
    %c0_i32_0 = arith.constant 0 : i32
    %c0_i32_1 = arith.constant 0 : i32
    return %c0_i32, %arg0, %c0_i32_0 : i32, i32, i32
  }
  func.func @transform_1(%arg0: i32) -> (i32, i32, i32) {
    %c0_i32 = arith.constant 0 : i32
    %c0_i32_0 = arith.constant 0 : i32
    %c0_i32_1 = arith.constant 0 : i32
    %c0_i32_2 = arith.constant 0 : i32
    return %c0_i32, %c0_i32_0, %c0_i32_1 : i32, i32, i32
  }
  func.func @transform_2(%arg0: i32) -> (i32, i32) {
    %c0_i32 = arith.constant 0 : i32
    %c0_i32_0 = arith.constant 0 : i32
    %c0_i32_1 = arith.constant 0 : i32
    return %c0_i32, %c0_i32_0 : i32, i32
  }
  func.func @transform_3(%arg0: i32) -> (i32, i32, i32) {
    %c0_i32 = arith.constant 0 : i32
    %c0_i32_0 = arith.constant 0 : i32
    %c0_i32_1 = arith.constant 0 : i32
    %c0_i32_2 = arith.constant 0 : i32
    return %c0_i32, %c0_i32_0, %c0_i32_1 : i32, i32, i32
  }
  func.func @transform_4(%arg0: i32) -> (i32, i32) {
    %c0_i32 = arith.constant 0 : i32
    %c0_i32_0 = arith.constant 0 : i32
    %c0_i32_1 = arith.constant 0 : i32
    return %c0_i32, %c0_i32_0 : i32, i32
  }
  func.func @transform_5(%arg0: i32) -> (i32, i32, i32) {
    %c0_i32 = arith.constant 0 : i32
    %c0_i32_0 = arith.constant 0 : i32
    %c0_i32_1 = arith.constant 0 : i32
    %c0_i32_2 = arith.constant 0 : i32
    return %c0_i32, %c0_i32_0, %c0_i32_1 : i32, i32, i32
  }
  func.func @transform_6(%arg0: i32) -> (i32, i32) {
    %c0_i32 = arith.constant 0 : i32
    %c0_i32_0 = arith.constant 0 : i32
    %c0_i32_1 = arith.constant 0 : i32
    return %c0_i32, %c0_i32_0 : i32, i32
  }
  func.func @transform_7(%arg0: i32) -> (i32, i32) {
    %c0_i32 = arith.constant 0 : i32
    %c0_i32_0 = arith.constant 0 : i32
    %c0_i32_1 = arith.constant 0 : i32
    return %c0_i32, %c0_i32_0 : i32, i32
  }
  func.func @transform_8(%arg0: i32) -> (i32, i32) {
    %c0_i32 = arith.constant 0 : i32
    %c0_i32_0 = arith.constant 0 : i32
    %c0_i32_1 = arith.constant 0 : i32
    return %c0_i32, %c0_i32_0 : i32, i32
  }
  func.func @transform_9(%arg0: i32) -> (i32, i32) {
    %c0_i32 = arith.constant 0 : i32
    %c0_i32_0 = arith.constant 0 : i32
    return %arg0, %c0_i32 : i32, i32
  }
}

</mosaic_0001>

<bundles_post_ra>
// kernel: net_forward.1
= control target key start
LH: loop header
LB: loop body
LE: loop exit
PB: predicated region body
PF: predicated region fallthrough
CT: control target
= control target key end

     0   :  { %14 = vsyncpa [#allocation3], 0  ;;  %s4759_s0 = inlined_call_operand.vmem [shape: f32[28,8,128], index: 0, kind: input, shape index: {}]   ;;  %s4760_s1 = inlined_call_operand.hbm [shape: f32[5,128,256], index: 1, kind: input, shape index: {}]   ;;  %s4761_s2 = inlined_call_operand.vmem [shape: f32[1,256], index: 2, kind: input, shape index: {}]   ;;  %s4762_s3 = inlined_call_operand.hbm [shape: f32[5,128,256], index: 3, kind: input, shape index: {}]   ;;  %s4763_s4 = inlined_call_operand.vmem [shape: f32[1,256], index: 4, kind: input, shape index: {}]   ;;  %s4764_s5 = inlined_call_operand.hbm [shape: f32[4,128,128], index: 5, kind: input, shape index: {}]   ;;  %s4765_s6 = inlined_call_operand.vmem [shape: f32[1,128], index: 6, kind: input, shape index: {}]   ;;  %s4766_s7 = inlined_call_operand.vmem [shape: f32[128,128], index: 7, kind: input, shape index: {}]   ;;  %s4767_s8 = inlined_call_operand.vmem [shape: f32[1,128], index: 8, kind: input, shape index: {}]   ;;  %s4768_s9 = inlined_call_operand.vmem [shape: f32[8,128], index: 9, kind: output, shape index: {}]  }
   0x1   :  { %15 = vsyncpa [#allocation5], 0  ;;  %s3416_s30 = smov [#allocation4]   ;;  %s3417_s11 = smov [#allocation2]  }
   0x2   :  { %s37_s10 = sshll.u32 %s3416_s30, 4  ;;  %s23_s12 = sshll.u32 %s3417_s11, 4  ;;  %s38_s10 = int_to_ptr.vmem [resolvable:$true] %s37_s10  ;;  %s24_s12 = int_to_ptr.vmem [resolvable:$true] %s23_s12 }
   0x3   :  { %s3360_s13 = scalar_lea.vmem %s38_s10, 20480  ;;  %p3365_p1 = scmp.lt.s32.totalorder %s38_s10, %s38_s10 }
   0x4   :  { %p3361_p0 = scmp.ne.s32.totalorder %s38_s10, %s3360_s13  ;;  %p3366_p2 = scmp.lt.s32.totalorder %s3360_s13, %s3360_s13 }
   0x6   :  { %p3367_p3 = por %p3366_p2, %p3365_p1 }
   0x8   :  { %p3368_p4 = pnand %p3367_p3, %p3361_p0 }
   0xa   :  { %3371 = shalt.err (!%p3368_p4)
}
   0xb   :  { %s3418_s14 = smov 256   ;;  %s3419_s15 = smov 16  }
   0xc   :  { %43 = dma.hbm_to_vmem [thread:$0]  %s4762_s3, 20480, %s38_s10, [#allocation5], %s3418_s14, %s3418_s14, %s3419_s15  }
   0xd   :  { %s3380_s18 = scalar_lea.vmem %s24_s12, 20480  ;;  %p3385_p6 = scmp.lt.s32.totalorder %s24_s12, %s24_s12 }
   0xe   :  { %p3381_p5 = scmp.ne.s32.totalorder %s24_s12, %s3380_s18  ;;  %p3386_p7 = scmp.lt.s32.totalorder %s3380_s18, %s3380_s18 }
  0x10   :  { %p3387_p8 = por %p3386_p7, %p3385_p6 }
  0x12   :  { %p3388_p9 = pnand %p3387_p8, %p3381_p5 }
  0x14   :  { %3391 = shalt.err (!%p3388_p9)
}
  0x15   :  { %29 = dma.hbm_to_vmem [thread:$0]  %s4760_s1, 20480, %s24_s12, [#allocation3], %s3418_s14, %s3418_s14, %s3419_s15  }
  0x16   :  { %s3420_s21 = smov [#allocation6]  }
  0x17   :  { %s51_s22 = sshll.u32 %s3420_s21, 4  ;;  %s52_s22 = int_to_ptr.vmem [resolvable:$true] %s51_s22 }
  0x18   :  { %s3400_s23 = scalar_lea.vmem %s52_s22, 8192  ;;  %p3405_p11 = scmp.lt.s32.totalorder %s52_s22, %s52_s22 }
  0x19   :  { %p3401_p10 = scmp.ne.s32.totalorder %s52_s22, %s3400_s23  ;;  %p3406_p12 = scmp.lt.s32.totalorder %s3400_s23, %s3400_s23 }
  0x1b   :  { %p3407_p13 = por %p3406_p12, %p3405_p11 }
  0x1d   :  { %p3408_p0 = pnand %p3407_p13, %p3401_p10 }
  0x1f   :  { %3411 = shalt.err (!%p3408_p0)
}
  0x20   :  { %s3421_s3 = smov 128   ;;  %s3422_s24 = smov 8  }
  0x21   :  { %57 = dma.hbm_to_vmem [thread:$0]  %s4764_s5, 8192, %s52_s22, [#allocation5], %s3421_s3, %s3421_s3, %s3422_s24  }
  0x22   :  { %3412 = dma.done.wait [#allocation3], 20480  }
  0x23   :  { %3413 = vsyncadd [#allocation3], 4294946816 }
  0x24   :  { %3414 = dma.done.wait [#allocation5], 28672  }
  0x25   :  { %3415 = vsyncadd [#allocation5], 4294938624  ;;  %v4769_v0 = vmov 0.0   ;;  %v186_v1 = vld [vmem:[#allocation2 + $0x1f8] sm:$0xff]  ;;  %v185_v3 = vld [vmem:[#allocation2 + $0x1f0] sm:$0xff]  ;;  %vm3424_vm0 = vmmov 0  }
  0x26   :  { %251 = vmatprep.mubr.f32.mxu0 %v4769_v0  ;;  %460 = vmatprep.mubr.f32.mxu1 %v4769_v0  ;;  %v128_v2 = vld [vmem:[#allocation2 + $0xf8] sm:$0xff]  ;;  %v127_v4 = vld [vmem:[#allocation2 + $0xf0] sm:$0xff]  ;;  %v184_v5 = vld [vmem:[#allocation2 + $0x1e8] sm:$0xff] }
  0x27   :  { %187 = vmatprep.subr.mxu0 %v186_v1  ;;  %396 = vmatprep.subr.mxu1 %v128_v2  ;;  %v126_v6 = vld [vmem:[#allocation2 + $0xe8] sm:$0xff]  ;;  %v183_v7 = vld [vmem:[#allocation2 + $0x1e0] sm:$0xff]  ;;  %v182_v9 = vld [vmem:[#allocation2 + $0x1d8] sm:$0xff] }
  0x28   :  { %188 = vmatpush1.msra.mxu0 %v185_v3  ;;  %397 = vmatpush1.msra.mxu1 %v127_v4  ;;  %v125_v8 = vld [vmem:[#allocation2 + $0xe0] sm:$0xff]  ;;  %v124_v10 = vld [vmem:[#allocation2 + $0xd8] sm:$0xff]  ;;  %v181_v11 = vld [vmem:[#allocation2 + $0x1d0] sm:$0xff] }
  0x29   :  { %189 = vmatprep.subr.mxu0 %v184_v5  ;;  %398 = vmatprep.subr.mxu1 %v126_v6  ;;  %v123_v12 = vld [vmem:[#allocation2 + $0xd0] sm:$0xff]  ;;  %v180_v13 = vld [vmem:[#allocation2 + $0x1c8] sm:$0xff]  ;;  %v179_v15 = vld [vmem:[#allocation2 + $0x1c0] sm:$0xff] }
  0x2a   :  { %190 = vmatpush1.msra.mxu0 %v183_v7  ;;  %399 = vmatpush1.msra.mxu1 %v125_v8  ;;  %v122_v14 = vld [vmem:[#allocation2 + $0xc8] sm:$0xff]  ;;  %v121_v16 = vld [vmem:[#allocation2 + $0xc0] sm:$0xff]  ;;  %v178_v17 = vld [vmem:[#allocation2 + $0x1b8] sm:$0xff] }
  0x2b   :  { %191 = vmatprep.subr.mxu0 %v182_v9  ;;  %400 = vmatprep.subr.mxu1 %v124_v10  ;;  %v120_v18 = vld [vmem:[#allocation2 + $0xb8] sm:$0xff]  ;;  %v177_v19 = vld [vmem:[#allocation2 + $0x1b0] sm:$0xff]  ;;  %v176_v21 = vld [vmem:[#allocation2 + $0x1a8] sm:$0xff] }
  0x2c   :  { %192 = vmatpush1.msra.mxu0 %v181_v11  ;;  %401 = vmatpush1.msra.mxu1 %v123_v12  ;;  %v119_v20 = vld [vmem:[#allocation2 + $0xb0] sm:$0xff]  ;;  %v118_v22 = vld [vmem:[#allocation2 + $0xa8] sm:$0xff]  ;;  %v175_v23 = vld [vmem:[#allocation2 + $0x1a0] sm:$0xff] }
  0x2d   :  { %193 = vmatprep.subr.mxu0 %v180_v13  ;;  %402 = vmatprep.subr.mxu1 %v122_v14  ;;  %v117_v24 = vld [vmem:[#allocation2 + $0xa0] sm:$0xff]  ;;  %v174_v25 = vld [vmem:[#allocation2 + $0x198] sm:$0xff]  ;;  %v173_v27 = vld [vmem:[#allocation2 + $0x190] sm:$0xff] }
  0x2e   :  { %194 = vmatpush1.msra.mxu0 %v179_v15  ;;  %403 = vmatpush1.msra.mxu1 %v121_v16  ;;  %v116_v26 = vld [vmem:[#allocation2 + $0x98] sm:$0xff]  ;;  %v115_v28 = vld [vmem:[#allocation2 + $0x90] sm:$0xff]  ;;  %v172_v29 = vld [vmem:[#allocation2 + $0x188] sm:$0xff] }
  0x2f   :  { %195 = vmatprep.subr.mxu0 %v178_v17  ;;  %404 = vmatprep.subr.mxu1 %v120_v18  ;;  %v114_v30 = vld [vmem:[#allocation2 + $0x88] sm:$0xff]  ;;  %v171_v31 = vld [vmem:[#allocation2 + $0x180] sm:$0xff]  ;;  %v170_v33 = vld [vmem:[#allocation2 + $0x178] sm:$0xff] }
  0x30   :  { %196 = vmatpush1.msra.mxu0 %v177_v19  ;;  %405 = vmatpush1.msra.mxu1 %v119_v20  ;;  %v113_v32 = vld [vmem:[#allocation2 + $0x80] sm:$0xff]  ;;  %v112_v34 = vld [vmem:[#allocation2 + $0x78] sm:$0xff]  ;;  %v169_v35 = vld [vmem:[#allocation2 + $0x170] sm:$0xff] }
  0x31   :  { %197 = vmatprep.subr.mxu0 %v176_v21  ;;  %406 = vmatprep.subr.mxu1 %v118_v22  ;;  %v111_v36 = vld [vmem:[#allocation2 + $0x70] sm:$0xff]  ;;  %v168_v37 = vld [vmem:[#allocation2 + $0x168] sm:$0xff]  ;;  %v167_v39 = vld [vmem:[#allocation2 + $0x160] sm:$0xff] }
  0x32   :  { %198 = vmatpush1.msra.mxu0 %v175_v23  ;;  %407 = vmatpush1.msra.mxu1 %v117_v24  ;;  %v110_v38 = vld [vmem:[#allocation2 + $0x68] sm:$0xff]  ;;  %v109_v40 = vld [vmem:[#allocation2 + $0x60] sm:$0xff]  ;;  %v166_v41 = vld [vmem:[#allocation2 + $0x158] sm:$0xff] }
  0x33   :  { %199 = vmatprep.subr.mxu0 %v174_v25  ;;  %408 = vmatprep.subr.mxu1 %v116_v26  ;;  %v108_v42 = vld [vmem:[#allocation2 + $0x58] sm:$0xff]  ;;  %v165_v43 = vld [vmem:[#allocation2 + $0x150] sm:$0xff]  ;;  %v164_v45 = vld [vmem:[#allocation2 + $0x148] sm:$0xff] }
  0x34   :  { %200 = vmatpush1.msra.mxu0 %v173_v27  ;;  %409 = vmatpush1.msra.mxu1 %v115_v28  ;;  %v107_v44 = vld [vmem:[#allocation2 + $0x50] sm:$0xff]  ;;  %v106_v46 = vld [vmem:[#allocation2 + $0x48] sm:$0xff]  ;;  %v163_v47 = vld [vmem:[#allocation2 + $0x140] sm:$0xff] }
  0x35   :  { %201 = vmatprep.subr.mxu0 %v172_v29  ;;  %410 = vmatprep.subr.mxu1 %v114_v30  ;;  %v105_v48 = vld [vmem:[#allocation2 + $0x40] sm:$0xff]  ;;  %v162_v49 = vld [vmem:[#allocation2 + $0x138] sm:$0xff]  ;;  %v161_v51 = vld [vmem:[#allocation2 + $0x130] sm:$0xff] }
  0x36   :  { %202 = vmatpush1.msra.mxu0 %v171_v31  ;;  %411 = vmatpush1.msra.mxu1 %v113_v32  ;;  %v104_v50 = vld [vmem:[#allocation2 + $0x38] sm:$0xff]  ;;  %v103_v52 = vld [vmem:[#allocation2 + $0x30] sm:$0xff]  ;;  %v160_v53 = vld [vmem:[#allocation2 + $0x128] sm:$0xff] }
  0x37   :  { %203 = vmatprep.subr.mxu0 %v170_v33  ;;  %412 = vmatprep.subr.mxu1 %v112_v34  ;;  %v102_v54 = vld [vmem:[#allocation2 + $0x28] sm:$0xff]  ;;  %v159_v55 = vld [vmem:[#allocation2 + $0x120] sm:$0xff]  ;;  %v158_v57 = vld [vmem:[#allocation2 + $0x118] sm:$0xff] }
  0x38   :  { %204 = vmatpush1.msra.mxu0 %v169_v35  ;;  %413 = vmatpush1.msra.mxu1 %v111_v36  ;;  %v101_v56 = vld [vmem:[#allocation2 + $0x20] sm:$0xff]  ;;  %v100_v58 = vld [vmem:[#allocation2 + $0x18] sm:$0xff]  ;;  %v157_v59 = vld [vmem:[#allocation2 + $0x110] sm:$0xff] }
  0x39   :  { %205 = vmatprep.subr.mxu0 %v168_v37  ;;  %414 = vmatprep.subr.mxu1 %v110_v38  ;;  %v99_v60 = vld [vmem:[#allocation2 + $0x10] sm:$0xff]  ;;  %v156_v61 = vld [vmem:[#allocation2 + $0x108] sm:$0xff]  ;;  %v155_v63 = vld [vmem:[#allocation2 + $0x100] sm:$0xff] }
  0x3a   :  { %206 = vmatpush1.msra.mxu0 %v167_v39  ;;  %415 = vmatpush1.msra.mxu1 %v109_v40  ;;  %v98_v62 = vld [vmem:[#allocation2 + $0x8] sm:$0xff]  ;;  %v97_v1 = vld [vmem:[#allocation2] sm:$0xff]  ;;  %v662_v4 = vld [vmem:[#allocation2 + $0x2f8] sm:$0xff] }
  0x3b   :  { %207 = vmatprep.subr.mxu0 %v166_v41  ;;  %416 = vmatprep.subr.mxu1 %v108_v42  ;;  %v2985_v2 = vld [vmem:[%s4759_s0 + $0x8] sm:$0xff]  ;;  %v73_v3 = vld [vmem:[%s4759_s0] sm:$0xff]  ;;  %v661_v5 = vld [vmem:[#allocation2 + $0x2f0] sm:$0xff] }
  0x3c   :  { %208 = vmatpush1.msra.mxu0 %v165_v43  ;;  %417 = vmatpush1.msra.mxu1 %v107_v44  ;;  %v660_v6 = vld [vmem:[#allocation2 + $0x2e8] sm:$0xff]  ;;  %v3496_v7 = vld [vmem:[%s4759_s0 + $0x10] sm:$0xff]  ;;  %v977_v8 = vld [vmem:[#allocation2 + $0x3f8] sm:$0xff] }
  0x3d   :  { %209 = vmatprep.subr.mxu0 %v164_v45  ;;  %418 = vmatprep.subr.mxu1 %v106_v46  ;;  %v659_v9 = vld [vmem:[#allocation2 + $0x2e0] sm:$0xff]  ;;  %v976_v10 = vld [vmem:[#allocation2 + $0x3f0] sm:$0xff]  ;;  %v658_v11 = vld [vmem:[#allocation2 + $0x2d8] sm:$0xff] }
  0x3e   :  { %210 = vmatpush1.msra.mxu0 %v163_v47  ;;  %419 = vmatpush1.msra.mxu1 %v105_v48  ;;  %v975_v12 = vld [vmem:[#allocation2 + $0x3e8] sm:$0xff]  ;;  %v3505_v13 = vld [vmem:[%s4759_s0 + $0x18] sm:$0xff]  ;;  %v657_v14 = vld [vmem:[#allocation2 + $0x2d0] sm:$0xff] }
  0x3f   :  { %211 = vmatprep.subr.mxu0 %v162_v49  ;;  %420 = vmatprep.subr.mxu1 %v104_v50  ;;  %v974_v15 = vld [vmem:[#allocation2 + $0x3e0] sm:$0xff]  ;;  %v656_v16 = vld [vmem:[#allocation2 + $0x2c8] sm:$0xff]  ;;  %v973_v17 = vld [vmem:[#allocation2 + $0x3d8] sm:$0xff] }
  0x40   :  { %212 = vmatpush1.msra.mxu0 %v161_v51  ;;  %421 = vmatpush1.msra.mxu1 %v103_v52  ;;  %v3514_v18 = vld [vmem:[%s4759_s0 + $0x20] sm:$0xff]  ;;  %v972_v20 = vld [vmem:[#allocation2 + $0x3d0] sm:$0xff]  ;;  %v654_v21 = vld [vmem:[#allocation2 + $0x2b8] sm:$0xff] }
  0x41   :  { %213 = vmatprep.subr.mxu0 %v160_v53  ;;  %422 = vmatprep.subr.mxu1 %v102_v54  ;;  %v655_v19 = vld [vmem:[#allocation2 + $0x2c0] sm:$0xff]  ;;  %v971_v22 = vld [vmem:[#allocation2 + $0x3c8] sm:$0xff]  ;;  %v653_v24 = vld [vmem:[#allocation2 + $0x2b0] sm:$0xff] }
  0x42   :  { %214 = vmatpush1.msra.mxu0 %v159_v55  ;;  %423 = vmatpush1.msra.mxu1 %v101_v56  ;;  %v3523_v23 = vld [vmem:[%s4759_s0 + $0x28] sm:$0xff]  ;;  %v970_v25 = vld [vmem:[#allocation2 + $0x3c0] sm:$0xff]  ;;  %v969_v27 = vld [vmem:[#allocation2 + $0x3b8] sm:$0xff] }
  0x43   :  { %215 = vmatprep.subr.mxu0 %v158_v57  ;;  %424 = vmatprep.subr.mxu1 %v100_v58  ;;  %v652_v26 = vld [vmem:[#allocation2 + $0x2a8] sm:$0xff]  ;;  %v3532_v28 = vld [vmem:[%s4759_s0 + $0x30] sm:$0xff]  ;;  %v651_v29 = vld [vmem:[#allocation2 + $0x2a0] sm:$0xff] }
  0x44   :  { %216 = vmatpush1.msra.mxu0 %v157_v59  ;;  %425 = vmatpush1.msra.mxu1 %v99_v60  ;;  %v968_v30 = vld [vmem:[#allocation2 + $0x3b0] sm:$0xff]  ;;  %v650_v31 = vld [vmem:[#allocation2 + $0x298] sm:$0xff]  ;;  %v967_v32 = vld [vmem:[#allocation2 + $0x3a8] sm:$0xff] }
  0x45   :  { %217 = vmatprep.subr.mxu0 %v156_v61  ;;  %426 = vmatprep.subr.mxu1 %v98_v62  ;;  %v3541_v33 = vld [vmem:[%s4759_s0 + $0x38] sm:$0xff]  ;;  %v649_v34 = vld [vmem:[#allocation2 + $0x290] sm:$0xff]  ;;  %v966_v35 = vld [vmem:[#allocation2 + $0x3a0] sm:$0xff] }
  0x46   :  { %218 = vmatpush1.msra.mxu0 %v155_v63  ;;  %427 = vmatpush1.msra.mxu1 %v97_v1  ;;  %v648_v36 = vld [vmem:[#allocation2 + $0x288] sm:$0xff]  ;;  %v965_v37 = vld [vmem:[#allocation2 + $0x398] sm:$0xff]  ;;  %v3550_v38 = vld [vmem:[%s4759_s0 + $0x40] sm:$0xff] }
  0x47   :  { %252 = vmatmul.mubr.f32.vlgmr.msra.gmra.mxu0 %v2985_v2  ;;  %461 = vmatmul.mubr.f32.vlgmr.msra.gmra.mxu1 %v73_v3  ;;  %v647_v39 = vld [vmem:[#allocation2 + $0x280] sm:$0xff]  ;;  %v964_v40 = vld [vmem:[#allocation2 + $0x390] sm:$0xff]  ;;  %v646_v41 = vld [vmem:[#allocation2 + $0x278] sm:$0xff] }
  0x48   :  { %663 = vmatprep.subr.mxu0 %v662_v4  ;;  %257 = vmatprep.mubr.f32.mxu0 %v4769_v0  ;;  %v963_v42 = vld [vmem:[#allocation2 + $0x388] sm:$0xff]  ;;  %v645_v44 = vld [vmem:[#allocation2 + $0x270] sm:$0xff]  ;;  %v962_v45 = vld [vmem:[#allocation2 + $0x380] sm:$0xff] }
  0x49   :  { %664 = vmatpush1.msra.mxu0 %v661_v5  ;;  %466 = vmatprep.mubr.f32.mxu1 %v4769_v0  ;;  %v3559_v43 = vld [vmem:[%s4759_s0 + $0x48] sm:$0xff]  ;;  %v961_v47 = vld [vmem:[#allocation2 + $0x378] sm:$0xff]  ;;  %v3568_v48 = vld [vmem:[%s4759_s0 + $0x50] sm:$0xff] }
  0x4a   :  { %665 = vmatprep.subr.mxu0 %v660_v6  ;;  %978 = vmatprep.subr.mxu1 %v977_v8  ;;  %v644_v46 = vld [vmem:[#allocation2 + $0x268] sm:$0xff]  ;;  %v643_v49 = vld [vmem:[#allocation2 + $0x260] sm:$0xff]  ;;  %v960_v50 = vld [vmem:[#allocation2 + $0x370] sm:$0xff] }
  0x4b   :  { %258 = vmatmul.mubr.f32.gmra.mxu0 %v3496_v7  ;;  %467 = vmatmul.mubr.f32.gmra.mxu1 %v2985_v2  ;;  %v642_v51 = vld [vmem:[#allocation2 + $0x258] sm:$0xff]  ;;  %v959_v52 = vld [vmem:[#allocation2 + $0x368] sm:$0xff]  ;;  %v641_v54 = vld [vmem:[#allocation2 + $0x250] sm:$0xff] }
  0x4c   :  { %263 = vmatprep.mubr.f32.mxu0 %v4769_v0  ;;  %472 = vmatprep.mubr.f32.mxu1 %v4769_v0  ;;  %v3577_v53 = vld [vmem:[%s4759_s0 + $0x58] sm:$0xff]  ;;  %v958_v55 = vld [vmem:[#allocation2 + $0x360] sm:$0xff]  ;;  %v640_v56 = vld [vmem:[#allocation2 + $0x248] sm:$0xff] }
  0x4d   :  { %666 = vmatpush1.msra.mxu0 %v659_v9  ;;  %979 = vmatpush1.msra.mxu1 %v976_v10  ;;  %v957_v57 = vld [vmem:[#allocation2 + $0x358] sm:$0xff]  ;;  %v3586_v58 = vld [vmem:[%s4759_s0 + $0x60] sm:$0xff]  ;;  %v956_v60 = vld [vmem:[#allocation2 + $0x350] sm:$0xff] }
  0x4e   :  { %667 = vmatprep.subr.mxu0 %v658_v11  ;;  %980 = vmatprep.subr.mxu1 %v975_v12  ;;  %v639_v59 = vld [vmem:[#allocation2 + $0x240] sm:$0xff]  ;;  %v638_v61 = vld [vmem:[#allocation2 + $0x238] sm:$0xff]  ;;  %v955_v62 = vld [vmem:[#allocation2 + $0x348] sm:$0xff] }
  0x4f   :  { %264 = vmatmul.mubr.f32.gmra.mxu0 %v3505_v13  ;;  %473 = vmatmul.mubr.f32.gmra.mxu1 %v3496_v7  ;;  %v3595_v63 = vld [vmem:[%s4759_s0 + $0x68] sm:$0xff]  ;;  %v637_v1 = vld [vmem:[#allocation2 + $0x230] sm:$0xff]  ;;  %v954_v2 = vld [vmem:[#allocation2 + $0x340] sm:$0xff] }
  0x50   :  { %269 = vmatprep.mubr.f32.mxu0 %v4769_v0  ;;  %478 = vmatprep.mubr.f32.mxu1 %v4769_v0  ;;  %v636_v3 = vld [vmem:[#allocation2 + $0x228] sm:$0xff]  ;;  %v953_v4 = vld [vmem:[#allocation2 + $0x338] sm:$0xff]  ;;  %v3604_v5 = vld [vmem:[%s4759_s0 + $0x70] sm:$0xff] }
  0x51   :  { %668 = vmatpush1.msra.mxu0 %v657_v14  ;;  %981 = vmatpush1.msra.mxu1 %v974_v15  ;;  %v635_v6 = vld [vmem:[#allocation2 + $0x220] sm:$0xff]  ;;  %v952_v8 = vld [vmem:[#allocation2 + $0x330] sm:$0xff]  ;;  %v634_v9 = vld [vmem:[#allocation2 + $0x218] sm:$0xff] }
  0x52   :  { %669 = vmatprep.subr.mxu0 %v656_v16  ;;  %982 = vmatprep.subr.mxu1 %v973_v17  ;;  %v951_v10 = vld [vmem:[#allocation2 + $0x328] sm:$0xff]  ;;  %v3613_v11 = vld [vmem:[%s4759_s0 + $0x78] sm:$0xff]  ;;  %v633_v12 = vld [vmem:[#allocation2 + $0x210] sm:$0xff] }
  0x53   :  { %270 = vmatmul.mubr.f32.gmra.mxu0 %v3514_v18  ;;  %479 = vmatmul.mubr.f32.gmra.mxu1 %v3505_v13  ;;  %v950_v14 = vld [vmem:[#allocation2 + $0x320] sm:$0xff]  ;;  %v632_v15 = vld [vmem:[#allocation2 + $0x208] sm:$0xff]  ;;  %v949_v16 = vld [vmem:[#allocation2 + $0x318] sm:$0xff] }
  0x54   :  { %275 = vmatprep.mubr.f32.mxu0 %v4769_v0  ;;  %484 = vmatprep.mubr.f32.mxu1 %v4769_v0  ;;  %v3622_v17 = vld [vmem:[%s4759_s0 + $0x80] sm:$0xff] }
  0x55   :  { %670 = vmatpush1.msra.mxu0 %v655_v19  ;;  %983 = vmatpush1.msra.mxu1 %v972_v20  ;;  %v631_v19 = vld [vmem:[#allocation2 + $0x200] sm:$0xff]  ;;  %v948_v20 = vld [vmem:[#allocation2 + $0x310] sm:$0xff] }
  0x56   :  { %671 = vmatprep.subr.mxu0 %v654_v21  ;;  %984 = vmatprep.subr.mxu1 %v971_v22  ;;  %v947_v21 = vld [vmem:[#allocation2 + $0x308] sm:$0xff]  ;;  %v1292_v22 = vld [vmem:[#allocation2 + $0x4f8] sm:$0xff] }
  0x57   :  { %276 = vmatmul.mubr.f32.gmra.mxu0 %v3523_v23  ;;  %485 = vmatmul.mubr.f32.gmra.mxu1 %v3514_v18 }
  0x58   :  { %281 = vmatprep.mubr.f32.mxu0 %v4769_v0  ;;  %490 = vmatprep.mubr.f32.mxu1 %v4769_v0 }
  0x59   :  { %672 = vmatpush1.msra.mxu0 %v653_v24  ;;  %985 = vmatpush1.msra.mxu1 %v970_v25  ;;  %v3631_v24 = vld [vmem:[%s4759_s0 + $0x88] sm:$0xff]  ;;  %v946_v25 = vld [vmem:[#allocation2 + $0x300] sm:$0xff] }
  0x5a   :  { %673 = vmatprep.subr.mxu0 %v652_v26  ;;  %986 = vmatprep.subr.mxu1 %v969_v27  ;;  %v3640_v26 = vld [vmem:[%s4759_s0 + $0x90] sm:$0xff]  ;;  %v3649_v27 = vld [vmem:[%s4759_s0 + $0x98] sm:$0xff] }
  0x5b   :  { %282 = vmatmul.mubr.f32.gmra.mxu0 %v3532_v28  ;;  %491 = vmatmul.mubr.f32.gmra.mxu1 %v3523_v23 }
  0x5c   :  { %287 = vmatprep.mubr.f32.mxu0 %v4769_v0  ;;  %496 = vmatprep.mubr.f32.mxu1 %v4769_v0 }
  0x5d   :  { %674 = vmatpush1.msra.mxu0 %v651_v29  ;;  %987 = vmatpush1.msra.mxu1 %v968_v30  ;;  %v3658_v29 = vld [vmem:[%s4759_s0 + $0xa0] sm:$0xff]  ;;  %v3667_v30 = vld [vmem:[%s4759_s0 + $0xa8] sm:$0xff] }
  0x5e   :  { %675 = vmatprep.subr.mxu0 %v650_v31  ;;  %988 = vmatprep.subr.mxu1 %v967_v32  ;;  %v3676_v31 = vld [vmem:[%s4759_s0 + $0xb0] sm:$0xff]  ;;  %v3685_v32 = vld [vmem:[%s4759_s0 + $0xb8] sm:$0xff] }
  0x5f   :  { %288 = vmatmul.mubr.f32.gmra.mxu0 %v3541_v33  ;;  %497 = vmatmul.mubr.f32.gmra.mxu1 %v3532_v28 }
  0x60   :  { %293 = vmatprep.mubr.f32.mxu0 %v4769_v0  ;;  %502 = vmatprep.mubr.f32.mxu1 %v4769_v0 }
  0x61   :  { %676 = vmatpush1.msra.mxu0 %v649_v34  ;;  %989 = vmatpush1.msra.mxu1 %v966_v35  ;;  %v3694_v34 = vld [vmem:[%s4759_s0 + $0xc0] sm:$0xff]  ;;  %v1291_v35 = vld [vmem:[#allocation2 + $0x4f0] sm:$0xff] }
  0x62   :  { %677 = vmatprep.subr.mxu0 %v648_v36  ;;  %990 = vmatprep.subr.mxu1 %v965_v37  ;;  %v1290_v36 = vld [vmem:[#allocation2 + $0x4e8] sm:$0xff]  ;;  %v1289_v37 = vld [vmem:[#allocation2 + $0x4e0] sm:$0xff] }
  0x63   :  { %294 = vmatmul.mubr.f32.gmra.mxu0 %v3550_v38  ;;  %503 = vmatmul.mubr.f32.gmra.mxu1 %v3541_v33 }
  0x64   :  { %299 = vmatprep.mubr.f32.mxu0 %v4769_v0  ;;  %508 = vmatprep.mubr.f32.mxu1 %v4769_v0 }
  0x65   :  { %678 = vmatpush1.msra.mxu0 %v647_v39  ;;  %991 = vmatpush1.msra.mxu1 %v964_v40  ;;  %v1288_v39 = vld [vmem:[#allocation2 + $0x4d8] sm:$0xff]  ;;  %v1287_v40 = vld [vmem:[#allocation2 + $0x4d0] sm:$0xff] }
  0x66   :  { %679 = vmatprep.subr.mxu0 %v646_v41  ;;  %992 = vmatprep.subr.mxu1 %v963_v42  ;;  %v1285_v41 = vld [vmem:[#allocation2 + $0x4c0] sm:$0xff]  ;;  %v1283_v42 = vld [vmem:[#allocation2 + $0x4b0] sm:$0xff] }
  0x67   :  { %300 = vmatmul.mubr.f32.gmra.mxu0 %v3559_v43  ;;  %509 = vmatmul.mubr.f32.gmra.mxu1 %v3550_v38 }
  0x68   :  { %305 = vmatprep.mubr.f32.mxu0 %v4769_v0  ;;  %514 = vmatprep.mubr.f32.mxu1 %v4769_v0 }
  0x69   :  { %680 = vmatpush1.msra.mxu0 %v645_v44  ;;  %993 = vmatpush1.msra.mxu1 %v962_v45  ;;  %v1282_v44 = vld [vmem:[#allocation2 + $0x4a8] sm:$0xff]  ;;  %v1281_v45 = vld [vmem:[#allocation2 + $0x4a0] sm:$0xff] }
  0x6a   :  { %681 = vmatprep.subr.mxu0 %v644_v46  ;;  %994 = vmatprep.subr.mxu1 %v961_v47  ;;  %v1280_v46 = vld [vmem:[#allocation2 + $0x498] sm:$0xff]  ;;  %v1279_v47 = vld [vmem:[#allocation2 + $0x490] sm:$0xff] }
  0x6b   :  { %306 = vmatmul.mubr.f32.gmra.mxu0 %v3568_v48  ;;  %515 = vmatmul.mubr.f32.gmra.mxu1 %v3559_v43 }
  0x6c   :  { %311 = vmatprep.mubr.f32.mxu0 %v4769_v0  ;;  %520 = vmatprep.mubr.f32.mxu1 %v4769_v0 }
  0x6d   :  { %682 = vmatpush1.msra.mxu0 %v643_v49  ;;  %995 = vmatpush1.msra.mxu1 %v960_v50  ;;  %v1278_v49 = vld [vmem:[#allocation2 + $0x488] sm:$0xff]  ;;  %v1277_v50 = vld [vmem:[#allocation2 + $0x480] sm:$0xff] }
  0x6e   :  { %683 = vmatprep.subr.mxu0 %v642_v51  ;;  %996 = vmatprep.subr.mxu1 %v959_v52  ;;  %v1276_v51 = vld [vmem:[#allocation2 + $0x478] sm:$0xff]  ;;  %v1275_v52 = vld [vmem:[#allocation2 + $0x470] sm:$0xff] }
  0x6f   :  { %312 = vmatmul.mubr.f32.gmra.mxu0 %v3577_v53  ;;  %521 = vmatmul.mubr.f32.gmra.mxu1 %v3568_v48 }
  0x70   :  { %317 = vmatprep.mubr.f32.mxu0 %v4769_v0  ;;  %526 = vmatprep.mubr.f32.mxu1 %v4769_v0 }
  0x71   :  { %684 = vmatpush1.msra.mxu0 %v641_v54  ;;  %997 = vmatpush1.msra.mxu1 %v958_v55  ;;  %v1274_v54 = vld [vmem:[#allocation2 + $0x468] sm:$0xff]  ;;  %v1273_v55 = vld [vmem:[#allocation2 + $0x460] sm:$0xff] }
  0x72   :  { %685 = vmatprep.subr.mxu0 %v640_v56  ;;  %998 = vmatprep.subr.mxu1 %v957_v57  ;;  %v1272_v56 = vld [vmem:[#allocation2 + $0x458] sm:$0xff]  ;;  %v1271_v57 = vld [vmem:[#allocation2 + $0x450] sm:$0xff] }
  0x73   :  { %318 = vmatmul.mubr.f32.gmra.mxu0 %v3586_v58  ;;  %527 = vmatmul.mubr.f32.gmra.mxu1 %v3577_v53 }
  0x74   :  { %323 = vmatprep.mubr.f32.mxu0 %v4769_v0  ;;  %532 = vmatprep.mubr.f32.mxu1 %v4769_v0 }
  0x75   :  { %686 = vmatpush1.msra.mxu0 %v639_v59  ;;  %999 = vmatpush1.msra.mxu1 %v956_v60  ;;  %v1270_v59 = vld [vmem:[#allocation2 + $0x448] sm:$0xff]  ;;  %v1269_v60 = vld [vmem:[#allocation2 + $0x440] sm:$0xff] }
  0x76   :  { %687 = vmatprep.subr.mxu0 %v638_v61  ;;  %1000 = vmatprep.subr.mxu1 %v955_v62  ;;  %v1268_v61 = vld [vmem:[#allocation2 + $0x438] sm:$0xff]  ;;  %v1267_v62 = vld [vmem:[#allocation2 + $0x430] sm:$0xff] }
  0x77   :  { %324 = vmatmul.mubr.f32.gmra.mxu0 %v3595_v63  ;;  %533 = vmatmul.mubr.f32.gmra.mxu1 %v3586_v58 }
  0x78   :  { %329 = vmatprep.mubr.f32.mxu0 %v4769_v0  ;;  %538 = vmatprep.mubr.f32.mxu1 %v4769_v0 }
  0x79   :  { %688 = vmatpush1.msra.mxu0 %v637_v1  ;;  %1001 = vmatpush1.msra.mxu1 %v954_v2  ;;  %v1266_v1 = vld [vmem:[#allocation2 + $0x428] sm:$0xff]  ;;  %v1265_v2 = vld [vmem:[#allocation2 + $0x420] sm:$0xff] }
  0x7a   :  { %689 = vmatprep.subr.mxu0 %v636_v3  ;;  %1002 = vmatprep.subr.mxu1 %v953_v4  ;;  %v1264_v3 = vld [vmem:[#allocation2 + $0x418] sm:$0xff]  ;;  %v1263_v4 = vld [vmem:[#allocation2 + $0x410] sm:$0xff] }
  0x7b   :  { %330 = vmatmul.mubr.f32.gmra.mxu0 %v3604_v5  ;;  %539 = vmatmul.mubr.f32.gmra.mxu1 %v3595_v63 }
  0x7c   :  { %335 = vmatprep.mubr.f32.mxu0 %v4769_v0  ;;  %544 = vmatprep.mubr.f32.mxu1 %v4769_v0 }
  0x7d   :  { %690 = vmatpush1.msra.mxu0 %v635_v6  ;;  %1003 = vmatpush1.msra.mxu1 %v952_v8  ;;  %v1262_v6 = vld [vmem:[#allocation2 + $0x408] sm:$0xff]  ;;  %v1261_v8 = vld [vmem:[#allocation2 + $0x400] sm:$0xff] }
  0x7e   :  { %691 = vmatprep.subr.mxu0 %v634_v9  ;;  %1004 = vmatprep.subr.mxu1 %v951_v10  ;;  %v3791_v9 = vld [vmem:[%s4759_s0 + $0xc8] sm:$0xff]  ;;  %v3800_v10 = vld [vmem:[%s4759_s0 + $0xd0] sm:$0xff] }
  0x7f   :  { %336 = vmatmul.mubr.f32.gmra.mxu0 %v3613_v11  ;;  %545 = vmatmul.mubr.f32.gmra.mxu1 %v3604_v5 }
  0x80   :  { %341 = vmatprep.mubr.f32.mxu0 %v4769_v0  ;;  %550 = vmatprep.mubr.f32.mxu1 %v4769_v0 }
  0x81   :  { %692 = vmatpush1.msra.mxu0 %v633_v12  ;;  %1005 = vmatpush1.msra.mxu1 %v950_v14 }
  0x82   :  { %693 = vmatprep.subr.mxu0 %v632_v15  ;;  %1006 = vmatprep.subr.mxu1 %v949_v16 }
  0x83   :  { %342 = vmatmul.mubr.f32.gmra.mxu0 %v3622_v17  ;;  %551 = vmatmul.mubr.f32.gmra.mxu1 %v3613_v11 }
  0x84   :  { %347 = vmatprep.mubr.f32.mxu0 %v4769_v0  ;;  %556 = vmatprep.mubr.f32.mxu1 %v4769_v0 }
  0x85   :  { %694 = vmatpush1.msra.mxu0 %v631_v19  ;;  %1007 = vmatpush1.msra.mxu1 %v948_v20 }
  0x86   :  { %1008 = vmatprep.subr.mxu1 %v947_v21  ;;  %1293 = vmatprep.subr.mxu0 %v1292_v22 }
  0x87   :  { %348 = vmatmul.mubr.f32.gmra.mxu0 %v3631_v24  ;;  %557 = vmatmul.mubr.f32.gmra.mxu1 %v3622_v17 }
  0x88   :  { %353 = vmatprep.mubr.f32.mxu0 %v4769_v0  ;;  %562 = vmatprep.mubr.f32.mxu1 %v4769_v0 }
  0x89   :  { %1009 = vmatpush1.msra.mxu1 %v946_v25 }
  0x8b   :  { %354 = vmatmul.mubr.f32.gmra.mxu0 %v3640_v26  ;;  %563 = vmatmul.mubr.f32.gmra.mxu1 %v3631_v24 }
  0x8c   :  { %359 = vmatprep.mubr.f32.mxu0 %v4769_v0  ;;  %568 = vmatprep.mubr.f32.mxu1 %v4769_v0 }
  0x8f   :  { %360 = vmatmul.mubr.f32.gmra.mxu0 %v3649_v27  ;;  %569 = vmatmul.mubr.f32.gmra.mxu1 %v3640_v26 }
  0x90   :  { %365 = vmatprep.mubr.f32.mxu0 %v4769_v0  ;;  %574 = vmatprep.mubr.f32.mxu1 %v4769_v0 }
  0x93   :  { %366 = vmatmul.mubr.f32.gmra.mxu0 %v3658_v29  ;;  %575 = vmatmul.mubr.f32.gmra.mxu1 %v3649_v27 }
  0x94   :  { %371 = vmatprep.mubr.f32.mxu0 %v4769_v0  ;;  %580 = vmatprep.mubr.f32.mxu1 %v4769_v0 }
  0x97   :  { %372 = vmatmul.mubr.f32.gmra.mxu0 %v3667_v30  ;;  %581 = vmatmul.mubr.f32.gmra.mxu1 %v3658_v29 }
  0x98   :  { %377 = vmatprep.mubr.f32.mxu0 %v4769_v0  ;;  %586 = vmatprep.mubr.f32.mxu1 %v4769_v0 }
  0x9b   :  { %378 = vmatmul.mubr.f32.gmra.mxu0 %v3676_v31  ;;  %587 = vmatmul.mubr.f32.gmra.mxu1 %v3667_v30 }
  0x9c   :  { %383 = vmatprep.mubr.f32.mxu0 %v4769_v0  ;;  %592 = vmatprep.mubr.f32.mxu1 %v4769_v0 }
  0x9f   :  { %384 = vmatmul.mubr.f32.gmra.mxu0 %v3685_v32  ;;  %593 = vmatmul.mubr.f32.gmra.mxu1 %v3676_v31 }
  0xa0   :  { %389 = vmatprep.mubr.f32.mxu0 %v4769_v0  ;;  %598 = vmatprep.mubr.f32.mxu1 %v4769_v0 }
  0xa3   :  { %390 = vmatmul.mubr.f32.gmra.mxu0 %v3694_v34  ;;  %599 = vmatmul.mubr.f32.gmra.mxu1 %v3685_v32 }
  0xa4   :  { %727 = vmatprep.mubr.f32.mxu0 %v4769_v0  ;;  %1042 = vmatprep.mubr.f32.mxu1 %v4769_v0 }
  0xa7   :  { %728 = vmatmul.mubr.f32.vlgmr.msra.gmra.mxu0 %v3496_v7  ;;  %1043 = vmatmul.mubr.f32.vlgmr.msra.gmra.mxu1 %v3505_v13  ;;  %v1286_v7 = vld [vmem:[#allocation2 + $0x4c8] sm:$0xff] }
  0xa8   :  { %1294 = vmatpush1.msra.mxu0 %v1291_v35  ;;  %733 = vmatprep.mubr.f32.mxu0 %v4769_v0 }
  0xa9   :  { %1048 = vmatprep.mubr.f32.mxu1 %v4769_v0  ;;  %1295 = vmatprep.subr.mxu0 %v1290_v36 }
  0xaa   :  { %1296 = vmatpush1.msra.mxu0 %v1289_v37 }
  0xab   :  { %734 = vmatmul.mubr.f32.gmra.mxu0 %v3505_v13  ;;  %1049 = vmatmul.mubr.f32.gmra.mxu1 %v3514_v18  ;;  %v1284_v13 = vld [vmem:[#allocation2 + $0x4b8] sm:$0xff] }
  0xac   :  { %739 = vmatprep.mubr.f32.mxu0 %v4769_v0  ;;  %1054 = vmatprep.mubr.f32.mxu1 %v4769_v0 }
  0xad   :  { %1297 = vmatprep.subr.mxu0 %v1288_v39 }
  0xae   :  { %1298 = vmatpush1.msra.mxu0 %v1287_v40 }
  0xaf   :  { %740 = vmatmul.mubr.f32.gmra.mxu0 %v3514_v18  ;;  %1055 = vmatmul.mubr.f32.gmra.mxu1 %v3523_v23 }
  0xb0   :  { %745 = vmatprep.mubr.f32.mxu0 %v4769_v0  ;;  %1060 = vmatprep.mubr.f32.mxu1 %v4769_v0 }
  0xb1   :  { %1299 = vmatprep.subr.mxu0 %v1286_v7 }
  0xb2   :  { %1300 = vmatpush1.msra.mxu0 %v1285_v41 }
  0xb3   :  { %746 = vmatmul.mubr.f32.gmra.mxu0 %v3523_v23  ;;  %1061 = vmatmul.mubr.f32.gmra.mxu1 %v3532_v28 }
  0xb4   :  { %751 = vmatprep.mubr.f32.mxu0 %v4769_v0  ;;  %1066 = vmatprep.mubr.f32.mxu1 %v4769_v0 }
  0xb5   :  { %1301 = vmatprep.subr.mxu0 %v1284_v13 }
  0xb6   :  { %1302 = vmatpush1.msra.mxu0 %v1283_v42 }
  0xb7   :  { %752 = vmatmul.mubr.f32.gmra.mxu0 %v3532_v28  ;;  %1067 = vmatmul.mubr.f32.gmra.mxu1 %v3541_v33 }
  0xb8   :  { %757 = vmatprep.mubr.f32.mxu0 %v4769_v0  ;;  %1072 = vmatprep.mubr.f32.mxu1 %v4769_v0 }
  0xb9   :  { %1303 = vmatprep.subr.mxu0 %v1282_v44 }
  0xba   :  { %1304 = vmatpush1.msra.mxu0 %v1281_v45 }
  0xbb   :  { %758 = vmatmul.mubr.f32.gmra.mxu0 %v3541_v33  ;;  %1073 = vmatmul.mubr.f32.gmra.mxu1 %v3550_v38 }
  0xbc   :  { %763 = vmatprep.mubr.f32.mxu0 %v4769_v0  ;;  %1078 = vmatprep.mubr.f32.mxu1 %v4769_v0 }
  0xbd   :  { %1305 = vmatprep.subr.mxu0 %v1280_v46 }
  0xbe   :  { %1306 = vmatpush1.msra.mxu0 %v1279_v47 }
  0xbf   :  { %764 = vmatmul.mubr.f32.gmra.mxu0 %v3550_v38  ;;  %1079 = vmatmul.mubr.f32.gmra.mxu1 %v3559_v43 }
  0xc0   :  { %769 = vmatprep.mubr.f32.mxu0 %v4769_v0  ;;  %1084 = vmatprep.mubr.f32.mxu1 %v4769_v0 }
  0xc1   :  { %1307 = vmatprep.subr.mxu0 %v1278_v49 }
  0xc2   :  { %1308 = vmatpush1.msra.mxu0 %v1277_v50 }
  0xc3   :  { %770 = vmatmul.mubr.f32.gmra.mxu0 %v3559_v43  ;;  %1085 = vmatmul.mubr.f32.gmra.mxu1 %v3568_v48 }
  0xc4   :  { %775 = vmatprep.mubr.f32.mxu0 %v4769_v0  ;;  %1090 = vmatprep.mubr.f32.mxu1 %v4769_v0 }
  0xc5   :  { %1309 = vmatprep.subr.mxu0 %v1276_v51  ;;  %v1758_v51 = vld [vmem:[#allocation4 + $0x1f8] sm:$0xff] }
  0xc6   :  { %1310 = vmatpush1.msra.mxu0 %v1275_v52  ;;  %1759 = vmatprep.subr.mxu1 %v1758_v51 }
  0xc7   :  { %776 = vmatmul.mubr.f32.gmra.mxu0 %v3568_v48  ;;  %1091 = vmatmul.mubr.f32.gmra.mxu1 %v3577_v53 }
  0xc8   :  { %781 = vmatprep.mubr.f32.mxu0 %v4769_v0  ;;  %1096 = vmatprep.mubr.f32.mxu1 %v4769_v0 }
  0xc9   :  { %1311 = vmatprep.subr.mxu0 %v1274_v54  ;;  %v1757_v54 = vld [vmem:[#allocation4 + $0x1f0] sm:$0xff] }
  0xca   :  { %1312 = vmatpush1.msra.mxu0 %v1273_v55  ;;  %1760 = vmatpush1.msra.mxu1 %v1757_v54 }
  0xcb   :  { %782 = vmatmul.mubr.f32.gmra.mxu0 %v3577_v53  ;;  %1097 = vmatmul.mubr.f32.gmra.mxu1 %v3586_v58 }
  0xcc   :  { %787 = vmatprep.mubr.f32.mxu0 %v4769_v0  ;;  %1102 = vmatprep.mubr.f32.mxu1 %v4769_v0 }
  0xcd   :  { %1313 = vmatprep.subr.mxu0 %v1272_v56 }
  0xce   :  { %1314 = vmatpush1.msra.mxu0 %v1271_v57 }
  0xcf   :  { %788 = vmatmul.mubr.f32.gmra.mxu0 %v3586_v58  ;;  %1103 = vmatmul.mubr.f32.gmra.mxu1 %v3595_v63 }
  0xd0   :  { %793 = vmatprep.mubr.f32.mxu0 %v4769_v0  ;;  %1108 = vmatprep.mubr.f32.mxu1 %v4769_v0 }
  0xd1   :  { %1315 = vmatprep.subr.mxu0 %v1270_v59 }
  0xd2   :  { %1316 = vmatpush1.msra.mxu0 %v1269_v60  ;;  %v1756_v60 = vld [vmem:[#allocation4 + $0x1e8] sm:$0xff] }
  0xd3   :  { %794 = vmatmul.mubr.f32.gmra.mxu0 %v3595_v63  ;;  %1109 = vmatmul.mubr.f32.gmra.mxu1 %v3604_v5 }
  0xd4   :  { %799 = vmatprep.mubr.f32.mxu0 %v4769_v0  ;;  %1114 = vmatprep.mubr.f32.mxu1 %v4769_v0 }
  0xd5   :  { %1317 = vmatprep.subr.mxu0 %v1268_v61  ;;  %1761 = vmatprep.subr.mxu1 %v1756_v60 }
  0xd6   :  { %1318 = vmatpush1.msra.mxu0 %v1267_v62 }
  0xd7   :  { %800 = vmatmul.mubr.f32.gmra.mxu0 %v3604_v5  ;;  %1115 = vmatmul.mubr.f32.gmra.mxu1 %v3613_v11 }
  0xd8   :  { %805 = vmatprep.mubr.f32.mxu0 %v4769_v0  ;;  %1120 = vmatprep.mubr.f32.mxu1 %v4769_v0 }
  0xd9   :  { %1319 = vmatprep.subr.mxu0 %v1266_v1 }
  0xda   :  { %1320 = vmatpush1.msra.mxu0 %v1265_v2 }
  0xdb   :  { %806 = vmatmul.mubr.f32.gmra.mxu0 %v3613_v11  ;;  %1121 = vmatmul.mubr.f32.gmra.mxu1 %v3622_v17 }
  0xdc   :  { %811 = vmatprep.mubr.f32.mxu0 %v4769_v0  ;;  %1126 = vmatprep.mubr.f32.mxu1 %v4769_v0 }
  0xdd   :  { %1321 = vmatprep.subr.mxu0 %v1264_v3 }
  0xde   :  { %1322 = vmatpush1.msra.mxu0 %v1263_v4 }
  0xdf   :  { %812 = vmatmul.mubr.f32.gmra.mxu0 %v3622_v17  ;;  %1127 = vmatmul.mubr.f32.gmra.mxu1 %v3631_v24 }
  0xe0   :  { %817 = vmatprep.mubr.f32.mxu0 %v4769_v0  ;;  %1132 = vmatprep.mubr.f32.mxu1 %v4769_v0 }
  0xe1   :  { %1323 = vmatprep.subr.mxu0 %v1262_v6 }
  0xe2   :  { %1324 = vmatpush1.msra.mxu0 %v1261_v8 }
  0xe3   :  { %818 = vmatmul.mubr.f32.gmra.mxu0 %v3631_v24  ;;  %1133 = vmatmul.mubr.f32.gmra.mxu1 %v3640_v26 }
  0xe4   :  { %823 = vmatprep.mubr.f32.mxu0 %v4769_v0  ;;  %1138 = vmatprep.mubr.f32.mxu1 %v4769_v0 }
  0xe7   :  { %824 = vmatmul.mubr.f32.gmra.mxu0 %v3640_v26  ;;  %1139 = vmatmul.mubr.f32.gmra.mxu1 %v3649_v27 }
  0xe8   :  { %829 = vmatprep.mubr.f32.mxu0 %v4769_v0  ;;  %1144 = vmatprep.mubr.f32.mxu1 %v4769_v0 }
  0xeb   :  { %830 = vmatmul.mubr.f32.gmra.mxu0 %v3649_v27  ;;  %1145 = vmatmul.mubr.f32.gmra.mxu1 %v3658_v29 }
  0xec   :  { %835 = vmatprep.mubr.f32.mxu0 %v4769_v0  ;;  %1150 = vmatprep.mubr.f32.mxu1 %v4769_v0 }
  0xef   :  { %836 = vmatmul.mubr.f32.gmra.mxu0 %v3658_v29  ;;  %1151 = vmatmul.mubr.f32.gmra.mxu1 %v3667_v30 }
  0xf0   :  { %841 = vmatprep.mubr.f32.mxu0 %v4769_v0  ;;  %1156 = vmatprep.mubr.f32.mxu1 %v4769_v0 }
  0xf3   :  { %842 = vmatmul.mubr.f32.gmra.mxu0 %v3667_v30  ;;  %1157 = vmatmul.mubr.f32.gmra.mxu1 %v3676_v31 }
  0xf4   :  { %847 = vmatprep.mubr.f32.mxu0 %v4769_v0  ;;  %1162 = vmatprep.mubr.f32.mxu1 %v4769_v0 }
  0xf7   :  { %848 = vmatmul.mubr.f32.gmra.mxu0 %v3676_v31  ;;  %1163 = vmatmul.mubr.f32.gmra.mxu1 %v3685_v32 }
  0xf8   :  { %853 = vmatprep.mubr.f32.mxu0 %v4769_v0  ;;  %1168 = vmatprep.mubr.f32.mxu1 %v4769_v0 }
  0xfb   :  { %854 = vmatmul.mubr.f32.gmra.mxu0 %v3685_v32  ;;  %1169 = vmatmul.mubr.f32.gmra.mxu1 %v3694_v34 }
  0xfc   :  { %859 = vmatprep.mubr.f32.mxu0 %v4769_v0  ;;  %1174 = vmatprep.mubr.f32.mxu1 %v4769_v0 }
  0xff   :  { %860 = vmatmul.mubr.f32.gmra.mxu0 %v3694_v34  ;;  %1175 = vmatmul.mubr.f32.gmra.mxu1 %v3791_v9 }
 0x100   :  { %865 = vmatprep.mubr.f32.mxu0 %v4769_v0  ;;  %1180 = vmatprep.mubr.f32.mxu1 %v4769_v0 }
 0x103   :  { %866 = vmatmul.mubr.f32.gmra.mxu0 %v3791_v9  ;;  %1181 = vmatmul.mubr.f32.gmra.mxu1 %v3800_v10 }
 0x104   :  { %1357 = vmatprep.mubr.f32.mxu0 %v4769_v0  ;;  %1823 = vmatprep.mubr.f32.mxu1 %v4769_v0 }
 0x107   :  { %v253_v12 = vpop.f32.mrf.mxu0  ;;  %v462_v14 = vpop.f32.mrf.mxu1  ;;  %1358 = vmatmul.mubr.f32.vlgmr.msra.gmra.mxu0 %v3514_v18 }
 0x108   :  { %v3807_v15 = vadd.f32 %v462_v14, %v253_v12  ;;  %1363 = vmatprep.mubr.f32.mxu0 %v4769_v0 }
 0x109   :  { %v3810_v16 = vpop.f32.mrf.mxu0  ;;  %v3812_v19 = vpop.f32.mrf.mxu1 }
 0x10a   :  { %4773 = vst [vmem:[#allocation9_spill] sm:$0xff] %v3810_v16  ;;  %4774 = vst [vmem:[#allocation10_spill] sm:$0xff] %v3812_v19 }
 0x10b   :  { %v259_v20 = vpop.f32.mrf.mxu0  ;;  %v468_v21 = vpop.f32.mrf.mxu1  ;;  %1364 = vmatmul.mubr.f32.gmra.mxu0 %v3523_v23 }
 0x10c   :  { %v3815_v22 = vadd.f32 %v468_v21, %v259_v20  ;;  %1369 = vmatprep.mubr.f32.mxu0 %v4769_v0  ;;  %v1753_v20 = vld [vmem:[#allocation4 + $0x1d0] sm:$0xff] }
 0x10d   :  { %v3818_v25 = vpop.f32.mrf.mxu0  ;;  %v3820_v35 = vpop.f32.mrf.mxu1 }
 0x10e   :  { %4775 = vst [vmem:[#allocation11_spill] sm:$0xff] %v3818_v25  ;;  %4776 = vst [vmem:[#allocation12_spill] sm:$0xff] %v3820_v35 }
 0x10f   :  { %v265_v18 = vpop.f32.mrf.mxu0  ;;  %v474_v36 = vpop.f32.mrf.mxu1  ;;  %1370 = vmatmul.mubr.f32.gmra.mxu0 %v3532_v28 }
 0x110   :  { %v3823_v37 = vadd.f32 %v474_v36, %v265_v18  ;;  %1375 = vmatprep.mubr.f32.mxu0 %v4769_v0 }
 0x111   :  { %v3826_v39 = vpop.f32.mrf.mxu0  ;;  %v3828_v40 = vpop.f32.mrf.mxu1 }
 0x112   :  { %4777 = vst [vmem:[#allocation13_spill] sm:$0xff] %v3826_v39  ;;  %4778 = vst [vmem:[#allocation14_spill] sm:$0xff] %v3828_v40  ;;  %v1743_v39 = vld [vmem:[#allocation4 + $0x180] sm:$0xff] }
 0x113   :  { %v271_v23 = vpop.f32.mrf.mxu0  ;;  %v480_v7 = vpop.f32.mrf.mxu1  ;;  %1376 = vmatmul.mubr.f32.gmra.mxu0 %v3541_v33 }
 0x114   :  { %v3831_v41 = vadd.f32 %v480_v7, %v271_v23  ;;  %1381 = vmatprep.mubr.f32.mxu0 %v4769_v0  ;;  %v1752_v7 = vld [vmem:[#allocation4 + $0x1c8] sm:$0xff] }
 0x115   :  { %v3834_v13 = vpop.f32.mrf.mxu0  ;;  %v3836_v42 = vpop.f32.mrf.mxu1 }
 0x117   :  { %v277_v28 = vpop.f32.mrf.mxu0  ;;  %v486_v44 = vpop.f32.mrf.mxu1  ;;  %1382 = vmatmul.mubr.f32.gmra.mxu0 %v3550_v38 }
 0x118   :  { %v3839_v45 = vadd.f32 %v486_v44, %v277_v28  ;;  %1387 = vmatprep.mubr.f32.mxu0 %v4769_v0 }
 0x119   :  { %v3842_v46 = vpop.f32.mrf.mxu0  ;;  %v3844_v47 = vpop.f32.mrf.mxu1 }
 0x11b   :  { %v283_v33 = vpop.f32.mrf.mxu0  ;;  %v492_v49 = vpop.f32.mrf.mxu1  ;;  %1388 = vmatmul.mubr.f32.gmra.mxu0 %v3559_v43 }
 0x11c   :  { %v3847_v50 = vadd.f32 %v492_v49, %v283_v33  ;;  %1393 = vmatprep.mubr.f32.mxu0 %v4769_v0 }
 0x11d   :  { %v3850_v52 = vpop.f32.mrf.mxu0  ;;  %v3852_v38 = vpop.f32.mrf.mxu1 }
 0x11f   :  { %v289_v55 = vpop.f32.mrf.mxu0  ;;  %v498_v56 = vpop.f32.mrf.mxu1  ;;  %1394 = vmatmul.mubr.f32.gmra.mxu0 %v3568_v48  ;;  %v1755_v48 = vld [vmem:[#allocation4 + $0x1e0] sm:$0xff] }
 0x120   :  { %v3855_v57 = vadd.f32 %v498_v56, %v289_v55  ;;  %1399 = vmatprep.mubr.f32.mxu0 %v4769_v0  ;;  %1762 = vmatpush1.msra.mxu1 %v1755_v48 }
 0x121   :  { %v3858_v43 = vpop.f32.mrf.mxu0  ;;  %v3860_v59 = vpop.f32.mrf.mxu1 }
 0x123   :  { %v295_v61 = vpop.f32.mrf.mxu0  ;;  %v504_v62 = vpop.f32.mrf.mxu1  ;;  %1400 = vmatmul.mubr.f32.gmra.mxu0 %v3577_v53  ;;  %v1754_v53 = vld [vmem:[#allocation4 + $0x1d8] sm:$0xff] }
 0x124   :  { %v3863_v1 = vadd.f32 %v504_v62, %v295_v61  ;;  %1405 = vmatprep.mubr.f32.mxu0 %v4769_v0  ;;  %1763 = vmatprep.subr.mxu1 %v1754_v53  ;;  %v1749_v62 = vld [vmem:[#allocation4 + $0x1b0] sm:$0xff] }
 0x125   :  { %v3866_v2 = vpop.f32.mrf.mxu0  ;;  %v3868_v3 = vpop.f32.mrf.mxu1  ;;  %1764 = vmatpush1.msra.mxu1 %v1753_v20  ;;  %v1748_v20 = vld [vmem:[#allocation4 + $0x1a8] sm:$0xff] }
 0x126   :  { %1765 = vmatprep.subr.mxu1 %v1752_v7 }
 0x127   :  { %v301_v4 = vpop.f32.mrf.mxu0  ;;  %v510_v6 = vpop.f32.mrf.mxu1  ;;  %1406 = vmatmul.mubr.f32.gmra.mxu0 %v3586_v58 }
 0x128   :  { %v3871_v8 = vadd.f32 %v510_v6, %v301_v4  ;;  %1411 = vmatprep.mubr.f32.mxu0 %v4769_v0 }
 0x129   :  { %v3874_v12 = vpop.f32.mrf.mxu0  ;;  %v3876_v14 = vpop.f32.mrf.mxu1 }
 0x12b   :  { %v307_v21 = vpop.f32.mrf.mxu0  ;;  %v516_v18 = vpop.f32.mrf.mxu1  ;;  %1412 = vmatmul.mubr.f32.gmra.mxu0 %v3595_v63  ;;  %v1751_v63 = vld [vmem:[#allocation4 + $0x1c0] sm:$0xff] }
 0x12c   :  { %v3879_v36 = vadd.f32 %v516_v18, %v307_v21  ;;  %1417 = vmatprep.mubr.f32.mxu0 %v4769_v0  ;;  %1766 = vmatpush1.msra.mxu1 %v1751_v63 }
 0x12d   :  { %v3882_v58 = vpop.f32.mrf.mxu0  ;;  %v3884_v23 = vpop.f32.mrf.mxu1 }
 0x12f   :  { %v313_v28 = vpop.f32.mrf.mxu0  ;;  %v522_v44 = vpop.f32.mrf.mxu1  ;;  %1418 = vmatmul.mubr.f32.gmra.mxu0 %v3604_v5  ;;  %v1750_v5 = vld [vmem:[#allocation4 + $0x1b8] sm:$0xff] }
 0x130   :  { %v3887_v33 = vadd.f32 %v522_v44, %v313_v28  ;;  %1423 = vmatprep.mubr.f32.mxu0 %v4769_v0  ;;  %1767 = vmatprep.subr.mxu1 %v1750_v5 }
 0x131   :  { %v3890_v49 = vpop.f32.mrf.mxu0  ;;  %v3892_v51 = vpop.f32.mrf.mxu1  ;;  %1768 = vmatpush1.msra.mxu1 %v1749_v62 }
 0x132   :  { %1769 = vmatprep.subr.mxu1 %v1748_v20 }
 0x133   :  { %v319_v54 = vpop.f32.mrf.mxu0  ;;  %v528_v55 = vpop.f32.mrf.mxu1  ;;  %1424 = vmatmul.mubr.f32.gmra.mxu0 %v3613_v11 }
 0x134   :  { %v3895_v56 = vadd.f32 %v528_v55, %v319_v54  ;;  %1429 = vmatprep.mubr.f32.mxu0 %v4769_v0 }
 0x135   :  { %v3898_v60 = vpop.f32.mrf.mxu0  ;;  %v3900_v61 = vpop.f32.mrf.mxu1 }
 0x137   :  { %v325_v48 = vpop.f32.mrf.mxu0  ;;  %v534_v4 = vpop.f32.mrf.mxu1  ;;  %1430 = vmatmul.mubr.f32.gmra.mxu0 %v3622_v17  ;;  %v1747_v17 = vld [vmem:[#allocation4 + $0x1a0] sm:$0xff] }
 0x138   :  { %v3903_v6 = vadd.f32 %v534_v4, %v325_v48  ;;  %1435 = vmatprep.mubr.f32.mxu0 %v4769_v0  ;;  %1770 = vmatpush1.msra.mxu1 %v1747_v17  ;;  %v1745_v48 = vld [vmem:[#allocation4 + $0x190] sm:$0xff]  ;;  %v1744_v17 = vld [vmem:[#allocation4 + $0x188] sm:$0xff] }
 0x139   :  { %v3906_v11 = vpop.f32.mrf.mxu0  ;;  %v3908_v53 = vpop.f32.mrf.mxu1 }
 0x13b   :  { %v331_v21 = vpop.f32.mrf.mxu0  ;;  %v540_v18 = vpop.f32.mrf.mxu1  ;;  %1436 = vmatmul.mubr.f32.gmra.mxu0 %v3631_v24  ;;  %v1746_v24 = vld [vmem:[#allocation4 + $0x198] sm:$0xff] }
 0x13c   :  { %v3911_v7 = vadd.f32 %v540_v18, %v331_v21  ;;  %1441 = vmatprep.mubr.f32.mxu0 %v4769_v0  ;;  %1771 = vmatprep.subr.mxu1 %v1746_v24 }
 0x13d   :  { %v3914_v28 = vpop.f32.mrf.mxu0  ;;  %v3916_v44 = vpop.f32.mrf.mxu1  ;;  %1772 = vmatpush1.msra.mxu1 %v1745_v48 }
 0x13e   :  { %1773 = vmatprep.subr.mxu1 %v1744_v17 }
 0x13f   :  { %v337_v63 = vpop.f32.mrf.mxu0  ;;  %v546_v54 = vpop.f32.mrf.mxu1  ;;  %1442 = vmatmul.mubr.f32.gmra.mxu0 %v3640_v26  ;;  %1774 = vmatpush1.msra.mxu1 %v1743_v39  ;;  %v1740_v39 = vld [vmem:[#allocation4 + $0x168] sm:$0xff] }
 0x140   :  { %v3919_v55 = vadd.f32 %v546_v54, %v337_v63  ;;  %1447 = vmatprep.mubr.f32.mxu0 %v4769_v0 }
 0x141   :  { %v3922_v5 = vpop.f32.mrf.mxu0  ;;  %v3924_v62 = vpop.f32.mrf.mxu1 }
 0x143   :  { %v343_v4 = vpop.f32.mrf.mxu0  ;;  %v552_v20 = vpop.f32.mrf.mxu1  ;;  %1448 = vmatmul.mubr.f32.gmra.mxu0 %v3649_v27 }
 0x144   :  { %v3927_v21 = vadd.f32 %v552_v20, %v343_v4  ;;  %1453 = vmatprep.mubr.f32.mxu0 %v4769_v0 }
 0x145   :  { %v3930_v26 = vpop.f32.mrf.mxu0  ;;  %v3932_v18 = vpop.f32.mrf.mxu1 }
 0x147   :  { %v349_v63 = vpop.f32.mrf.mxu0  ;;  %v558_v54 = vpop.f32.mrf.mxu1  ;;  %1454 = vmatmul.mubr.f32.gmra.mxu0 %v3658_v29 }
 0x148   :  { %v3935_v24 = vadd.f32 %v558_v54, %v349_v63  ;;  %1459 = vmatprep.mubr.f32.mxu0 %v4769_v0  ;;  %v1742_v54 = vld [vmem:[#allocation4 + $0x178] sm:$0xff] }
 0x149   :  { %v3938_v27 = vpop.f32.mrf.mxu0  ;;  %v3940_v48 = vpop.f32.mrf.mxu1  ;;  %1775 = vmatprep.subr.mxu1 %v1742_v54  ;;  %v2175_v54 = vld [vmem:[#allocation4 + $0x3d8] sm:$0xff] }
 0x14a   :  { %4779 = vst [vmem:[#allocation15_spill] sm:$0xff] %v3938_v27  ;;  %4780 = vst [vmem:[#allocation16_spill] sm:$0xff] %v3940_v48  ;;  %v2179_v48 = vld [vmem:[#allocation4 + $0x3f8] sm:$0xff] }
 0x14b   :  { %v355_v4 = vpop.f32.mrf.mxu0  ;;  %v564_v20 = vpop.f32.mrf.mxu1  ;;  %1460 = vmatmul.mubr.f32.gmra.mxu0 %v3667_v30  ;;  %v1741_v30 = vld [vmem:[#allocation4 + $0x170] sm:$0xff]  ;;  %2180 = vmatprep.subr.mxu0 %v2179_v48 }
 0x14c   :  { %v3943_v40 = vadd.f32 %v564_v20, %v355_v4  ;;  %1465 = vmatprep.mubr.f32.mxu0 %v4769_v0  ;;  %v2178_v4 = vld [vmem:[#allocation4 + $0x3f0] sm:$0xff]  ;;  %1776 = vmatpush1.msra.mxu1 %v1741_v30 }
 0x14d   :  { %v3946_v35 = vpop.f32.mrf.mxu0  ;;  %v3948_v29 = vpop.f32.mrf.mxu1  ;;  %2181 = vmatpush1.msra.mxu0 %v2178_v4  ;;  %1777 = vmatprep.subr.mxu1 %v1740_v39  ;;  %v1737_v30 = vld [vmem:[#allocation4 + $0x150] sm:$0xff]  ;;  %v1736_v39 = vld [vmem:[#allocation4 + $0x148] sm:$0xff] }
 0x14e   :  { %4781 = vst [vmem:[#allocation17_spill] sm:$0xff] %v3946_v35  ;;  %4782 = vst [vmem:[#allocation18_spill] sm:$0xff] %v3948_v29  ;;  %v2177_v29 = vld [vmem:[#allocation4 + $0x3e8] sm:$0xff]  ;;  %v2176_v35 = vld [vmem:[#allocation4 + $0x3e0] sm:$0xff] }
 0x14f   :  { %v361_v17 = vpop.f32.mrf.mxu0  ;;  %v570_v63 = vpop.f32.mrf.mxu1  ;;  %1466 = vmatmul.mubr.f32.gmra.mxu0 %v3676_v31  ;;  %v1739_v31 = vld [vmem:[#allocation4 + $0x160] sm:$0xff]  ;;  %2182 = vmatprep.subr.mxu0 %v2177_v29  ;;  %v2174_v4 = vld [vmem:[#allocation4 + $0x3d0] sm:$0xff] }
 0x150   :  { %v3951_v27 = vadd.f32 %v570_v63, %v361_v17  ;;  %1471 = vmatprep.mubr.f32.mxu0 %v4769_v0  ;;  %v1738_v63 = vld [vmem:[#allocation4 + $0x158] sm:$0xff]  ;;  %1778 = vmatpush1.msra.mxu1 %v1739_v31  ;;  %v1735_v29 = vld [vmem:[#allocation4 + $0x140] sm:$0xff] }
 0x151   :  { %v3954_v20 = vpop.f32.mrf.mxu0  ;;  %v3956_v25 = vpop.f32.mrf.mxu1  ;;  %2183 = vmatpush1.msra.mxu0 %v2176_v35  ;;  %1779 = vmatprep.subr.mxu1 %v1738_v63  ;;  %v1734_v31 = vld [vmem:[#allocation4 + $0x138] sm:$0xff] }
 0x152   :  { %4783 = vst [vmem:[#allocation19_spill] sm:$0xff] %v3951_v27  ;;  %4784 = vst [vmem:[#allocation20_spill] sm:$0xff] %v3954_v20  ;;  %v4786_v20 = vmov 0.0   ;;  %2184 = vmatprep.subr.mxu0 %v2175_v54  ;;  %1780 = vmatpush1.msra.mxu1 %v1737_v30  ;;  %v2171_v35 = vld [vmem:[#allocation4 + $0x3b8] sm:$0xff]  ;;  %v1733_v54 = vld [vmem:[#allocation4 + $0x130] sm:$0xff] }
 0x153   :  { %4785 = vst [vmem:[#allocation21_spill] sm:$0xff] %v3956_v25  ;;  %v367_v19 = vpop.f32.mrf.mxu0  ;;  %v576_v17 = vpop.f32.mrf.mxu1  ;;  %1472 = vmatmul.mubr.f32.gmra.mxu0 %v3685_v32  ;;  %v2173_v32 = vld [vmem:[#allocation4 + $0x3c8] sm:$0xff]  ;;  %1781 = vmatprep.subr.mxu1 %v1736_v39  ;;  %v2170_v30 = vld [vmem:[#allocation4 + $0x3b0] sm:$0xff] }
 0x154   :  { %v3959_v0 = vadd.f32 %v576_v17, %v367_v19  ;;  %1477 = vmatprep.mubr.f32.mxu0 %v4786_v20  ;;  %v2172_v19 = vld [vmem:[#allocation4 + $0x3c0] sm:$0xff]  ;;  %2185 = vmatpush1.msra.mxu0 %v2174_v4 }
 0x155   :  { %v3962_v48 = vpop.f32.mrf.mxu0  ;;  %v3964_v25 = vpop.f32.mrf.mxu1  ;;  %2186 = vmatprep.subr.mxu0 %v2173_v32  ;;  %1782 = vmatpush1.msra.mxu1 %v1735_v29 }
 0x156   :  { %4787 = vst [vmem:[#allocation22_spill] sm:$0xff] %v3962_v48  ;;  %4788 = vst [vmem:[#allocation23_spill] sm:$0xff] %v3964_v25  ;;  %2187 = vmatpush1.msra.mxu0 %v2172_v19  ;;  %1783 = vmatprep.subr.mxu1 %v1734_v31  ;;  %v2168_v19 = vld [vmem:[#allocation4 + $0x3a0] sm:$0xff]  ;;  %v2167_v31 = vld [vmem:[#allocation4 + $0x398] sm:$0xff] }
 0x157   :  { %v373_v16 = vpop.f32.mrf.mxu0  ;;  %v582_v27 = vpop.f32.mrf.mxu1  ;;  %1478 = vmatmul.mubr.f32.gmra.mxu0 %v3694_v34  ;;  %v1732_v34 = vld [vmem:[#allocation4 + $0x128] sm:$0xff]  ;;  %2188 = vmatprep.subr.mxu0 %v2171_v35 }
 0x158   :  { %v3967_v17 = vadd.f32 %v582_v27, %v373_v16  ;;  %1483 = vmatprep.mubr.f32.mxu0 %v4786_v20  ;;  %v2169_v16 = vld [vmem:[#allocation4 + $0x3a8] sm:$0xff]  ;;  %v1731_v27 = vld [vmem:[#allocation4 + $0x120] sm:$0xff]  ;;  %1784 = vmatpush1.msra.mxu1 %v1733_v54 }
 0x159   :  { %v3970_v63 = vpop.f32.mrf.mxu0  ;;  %v3972_v25 = vpop.f32.mrf.mxu1  ;;  %2189 = vmatpush1.msra.mxu0 %v2170_v30  ;;  %1785 = vmatprep.subr.mxu1 %v1732_v34  ;;  %v3080_v30 = vld [vmem:[%s4759_s0 + $0xd8] sm:$0xff]  ;;  %v2165_v34 = vld [vmem:[#allocation4 + $0x388] sm:$0xff] }
 0x15a   :  { %4789 = vst [vmem:[#allocation24_spill] sm:$0xff] %v3970_v63  ;;  %4790 = vst [vmem:[#allocation25_spill] sm:$0xff] %v3972_v25  ;;  %v1730_v25 = vld [vmem:[#allocation4 + $0x118] sm:$0xff]  ;;  %2190 = vmatprep.subr.mxu0 %v2169_v16  ;;  %1786 = vmatpush1.msra.mxu1 %v1731_v27 }
 0x15b   :  { %v379_v39 = vpop.f32.mrf.mxu0  ;;  %v588_v48 = vpop.f32.mrf.mxu1  ;;  %1484 = vmatmul.mubr.f32.gmra.mxu0 %v3791_v9  ;;  %v1729_v9 = vld [vmem:[#allocation4 + $0x110] sm:$0xff]  ;;  %1787 = vmatprep.subr.mxu1 %v1730_v25  ;;  %v2164_v25 = vld [vmem:[#allocation4 + $0x380] sm:$0xff] }
 0x15c   :  { %v3975_v4 = vadd.f32 %v588_v48, %v379_v39  ;;  %1489 = vmatprep.mubr.f32.mxu0 %v4786_v20  ;;  %v2166_v48 = vld [vmem:[#allocation4 + $0x390] sm:$0xff]  ;;  %v1728_v39 = vld [vmem:[#allocation4 + $0x108] sm:$0xff]  ;;  %2191 = vmatpush1.msra.mxu0 %v2168_v19 }
 0x15d   :  { %v3978_v32 = vpop.f32.mrf.mxu0  ;;  %v3980_v29 = vpop.f32.mrf.mxu1  ;;  %2192 = vmatprep.subr.mxu0 %v2167_v31  ;;  %1788 = vmatpush1.msra.mxu1 %v1729_v9  ;;  %v2161_v19 = vld [vmem:[#allocation4 + $0x368] sm:$0xff]  ;;  %v2160_v31 = vld [vmem:[#allocation4 + $0x360] sm:$0xff]  ;;  %v2159_v9 = vld [vmem:[#allocation4 + $0x358] sm:$0xff] }
 0x15e   :  { %4791 = vst [vmem:[#allocation26_spill] sm:$0xff] %v3978_v32  ;;  %4792 = vst [vmem:[#allocation27_spill] sm:$0xff] %v3980_v29  ;;  %2193 = vmatpush1.msra.mxu0 %v2166_v48  ;;  %1789 = vmatprep.subr.mxu1 %v1728_v39  ;;  %v2162_v32 = vld [vmem:[#allocation4 + $0x370] sm:$0xff] }
 0x15f   :  { %v385_v35 = vpop.f32.mrf.mxu0  ;;  %v594_v63 = vpop.f32.mrf.mxu1  ;;  %1490 = vmatmul.mubr.f32.gmra.mxu0 %v3800_v10  ;;  %v1727_v10 = vld [vmem:[#allocation4 + $0x100] sm:$0xff]  ;;  %2194 = vmatprep.subr.mxu0 %v2165_v34  ;;  %v2157_v34 = vld [vmem:[#allocation4 + $0x348] sm:$0xff] }
 0x160   :  { %v3983_v54 = vadd.f32 %v594_v63, %v385_v35  ;;  %1495 = vmatprep.mubr.f32.mxu0 %v4786_v20  ;;  %v2163_v63 = vld [vmem:[#allocation4 + $0x378] sm:$0xff]  ;;  %1790 = vmatpush1.msra.mxu1 %v1727_v10 }
 0x161   :  { %v3989_v16 = vpop.f32.mrf.mxu0  ;;  %v3991_v27 = vpop.f32.mrf.mxu1  ;;  %2195 = vmatpush1.msra.mxu0 %v2164_v25 }
 0x162   :  { %4793 = vst [vmem:[#allocation28_spill] sm:$0xff] %v3983_v54  ;;  %4794 = vst [vmem:[#allocation29_spill] sm:$0xff] %v3989_v16  ;;  %2196 = vmatprep.subr.mxu0 %v2163_v63 }
 0x163   :  { %4795 = vst [vmem:[#allocation30_spill] sm:$0xff] %v3991_v27  ;;  %v391_v35 = vpop.f32.mrf.mxu0  ;;  %v600_v29 = vpop.f32.mrf.mxu1  ;;  %1496 = vmatmul.mubr.f32.gmra.mxu0 %v3080_v30  ;;  %v2158_v30 = vld [vmem:[#allocation4 + $0x350] sm:$0xff] }
 0x164   :  { %v3993_v54 = vadd.f32 %v600_v29, %v391_v35  ;;  %2244 = vmatprep.mubr.f32.mxu0 %v4786_v20  ;;  %2197 = vmatpush1.msra.mxu0 %v2162_v32  ;;  %v2156_v35 = vld [vmem:[#allocation4 + $0x340] sm:$0xff] }
 0x165   :  { %v3995_v16 = vpop.f32.mrf.mxu0  ;;  %v3997_v27 = vpop.f32.mrf.mxu1  ;;  %2198 = vmatprep.subr.mxu0 %v2161_v19 }
 0x166   :  { %4796 = vst [vmem:[#allocation31_spill] sm:$0xff] %v3993_v54  ;;  %4797 = vst [vmem:[#allocation32_spill] sm:$0xff] %v3995_v16  ;;  %2199 = vmatpush1.msra.mxu0 %v2160_v31  ;;  %v2154_v54 = vld [vmem:[#allocation4 + $0x330] sm:$0xff] }
 0x167   :  { %4798 = vst [vmem:[#allocation33_spill] sm:$0xff] %v3997_v27  ;;  %v729_v48 = vpop.f32.mrf.mxu0  ;;  %v1044_v39 = vpop.f32.mrf.mxu1  ;;  %2200 = vmatprep.subr.mxu0 %v2159_v9  ;;  %v2155_v27 = vld [vmem:[#allocation4 + $0x338] sm:$0xff] }
 0x168   :  { %v872_v29 = vadd.f32 %v729_v48, %v3807_v15  ;;  %2201 = vmatpush1.msra.mxu0 %v2158_v30  ;;  %v2153_v15 = vld [vmem:[#allocation4 + $0x328] sm:$0xff]  ;;  %v2152_v48 = vld [vmem:[#allocation4 + $0x320] sm:$0xff]  ;;  %v2151_v9 = vld [vmem:[#allocation4 + $0x318] sm:$0xff] }
 0x169   :  { %v4001_v10 = vpop.f32.mrf.mxu0  ;;  %v4003_v25 = vpop.f32.mrf.mxu1  ;;  %2202 = vmatprep.subr.mxu0 %v2157_v34  ;;  %v2150_v30 = vld [vmem:[#allocation4 + $0x310] sm:$0xff] }
 0x16a   :  { %4799 = vst [vmem:[#allocation34_spill] sm:$0xff] %v4001_v10  ;;  %v4005_v63 = vadd.f32 %v1044_v39, %v872_v29  ;;  %2203 = vmatpush1.msra.mxu0 %v2156_v35 }
 0x16b   :  { %v735_v32 = vpop.f32.mrf.mxu0  ;;  %v1050_v16 = vpop.f32.mrf.mxu1  ;;  %2204 = vmatprep.subr.mxu0 %v2155_v27 }
 0x16c   :  { %v874_v19 = vadd.f32 %v735_v32, %v3815_v22  ;;  %2205 = vmatpush1.msra.mxu0 %v2154_v54  ;;  %v2149_v22 = vld [vmem:[#allocation4 + $0x308] sm:$0xff]  ;;  %v2148_v32 = vld [vmem:[#allocation4 + $0x300] sm:$0xff]  ;;  %v483_v54 = vadd.f32 %v3836_v42, %v3834_v13 }
 0x16d   :  { %v4008_v31 = vpop.f32.mrf.mxu0  ;;  %2206 = vmatprep.subr.mxu0 %v2153_v15  ;;  %v4015_v34 = vpop.f32.mrf.mxu1 }
 0x16e   :  { %v4010_v10 = vadd.f32 %v1050_v16, %v874_v19  ;;  %2207 = vmatpush1.msra.mxu0 %v2152_v48 }
 0x16f   :  { %v741_v39 = vpop.f32.mrf.mxu0  ;;  %2208 = vmatprep.subr.mxu0 %v2151_v9  ;;  %v4021_v16 = vpop.f32.mrf.mxu1  ;;  %v489_v9 = vadd.f32 %v3844_v47, %v3842_v46 }
 0x170   :  { %v4013_v29 = vadd.f32 %v741_v39, %v3823_v37  ;;  %2209 = vmatpush1.msra.mxu0 %v2150_v30 }
 0x171   :  { %v4017_v35 = vpop.f32.mrf.mxu0  ;;  %2210 = vmatprep.subr.mxu0 %v2149_v22  ;;  %v4031_v39 = vpop.f32.mrf.mxu1  ;;  %v1725_v22 = vld [vmem:[#allocation4 + $0xf8] sm:$0xff] }
 0x172   :  { %2211 = vmatpush1.msra.mxu0 %v2148_v32  ;;  %v495_v32 = vadd.f32 %v3852_v38, %v3850_v52  ;;  %1872 = vmatprep.subr.mxu1 %v1725_v22 }
 0x173   :  { %v747_v27 = vpop.f32.mrf.mxu0  ;;  %3168 = vmatprep.subr.mxu0 %v4786_v20 }
 0x174   :  { %v4024_v19 = vadd.f32 %v747_v27, %v3831_v41  ;;  %v4040_v27 = vpop.f32.mrf.mxu1 }
 0x175   :  { %v749_v37 = vpop.f32.mrf.mxu0 }
 0x176   :  { %v4027_v15 = vadd.f32 %v749_v37, %v483_v54 }
 0x177   :  { %v753_v48 = vpop.f32.mrf.mxu0 }
 0x178   :  { %v4034_v30 = vadd.f32 %v753_v48, %v3839_v45  ;;  %v501_v45 = vadd.f32 %v3860_v59, %v3858_v43  ;;  %v4049_v48 = vpop.f32.mrf.mxu1 }
 0x179   :  { %v755_v13 = vpop.f32.mrf.mxu0 }
 0x17a   :  { %v4036_v42 = vadd.f32 %v755_v13, %v489_v9 }
 0x17b   :  { %v759_v41 = vpop.f32.mrf.mxu0 }
 0x17c   :  { %v4043_v54 = vadd.f32 %v759_v41, %v3847_v50  ;;  %v507_v50 = vadd.f32 %v3868_v3, %v3866_v2  ;;  %v4058_v41 = vpop.f32.mrf.mxu1 }
 0x17d   :  { %v761_v46 = vpop.f32.mrf.mxu0 }
 0x17e   :  { %v4045_v47 = vadd.f32 %v761_v46, %v495_v32  ;;  %v4067_v59 = vpop.f32.mrf.mxu1 }
 0x17f   :  { %v765_v37 = vpop.f32.mrf.mxu0 }
 0x180   :  { %v4052_v9 = vadd.f32 %v765_v37, %v3855_v57  ;;  %v513_v57 = vadd.f32 %v3876_v14, %v3874_v12  ;;  %v4076_v3 = vpop.f32.mrf.mxu1 }
 0x181   :  { %v767_v13 = vpop.f32.mrf.mxu0 }
 0x182   :  { %v4054_v52 = vadd.f32 %v767_v13, %v501_v45  ;;  %v4085_v14 = vpop.f32.mrf.mxu1 }
 0x183   :  { %v771_v38 = vpop.f32.mrf.mxu0 }
 0x184   :  { %v4061_v22 = vadd.f32 %v771_v38, %v3863_v1  ;;  %v519_v1 = vadd.f32 %v3884_v23, %v3882_v58  ;;  %v4094_v23 = vpop.f32.mrf.mxu1 }
 0x185   :  { %v773_v32 = vpop.f32.mrf.mxu0 }
 0x186   :  { %v4063_v46 = vadd.f32 %v773_v32, %v507_v50 }
 0x187   :  { %v777_v43 = vpop.f32.mrf.mxu0 }
 0x188   :  { %v4070_v37 = vadd.f32 %v777_v43, %v3871_v8  ;;  %v525_v8 = vadd.f32 %v3892_v51, %v3890_v49  ;;  %v4103_v51 = vpop.f32.mrf.mxu1 }
 0x189   :  { %v779_v45 = vpop.f32.mrf.mxu0 }
 0x18a   :  { %v4072_v13 = vadd.f32 %v779_v45, %v513_v57 }
 0x18b   :  { %v783_v2 = vpop.f32.mrf.mxu0 }
 0x18c   :  { %v4079_v38 = vadd.f32 %v783_v2, %v3879_v36  ;;  %v531_v36 = vadd.f32 %v3900_v61, %v3898_v60  ;;  %v4112_v61 = vpop.f32.mrf.mxu1 }
 0x18d   :  { %v785_v50 = vpop.f32.mrf.mxu0 }
 0x18e   :  { %v4081_v32 = vadd.f32 %v785_v50, %v519_v1 }
 0x18f   :  { %v789_v12 = vpop.f32.mrf.mxu0 }
 0x190   :  { %v4088_v43 = vadd.f32 %v789_v12, %v3887_v33  ;;  %v537_v33 = vadd.f32 %v3908_v53, %v3906_v11  ;;  %v4121_v53 = vpop.f32.mrf.mxu1 }
 0x191   :  { %v791_v57 = vpop.f32.mrf.mxu0 }
 0x192   :  { %v4090_v45 = vadd.f32 %v791_v57, %v525_v8 }
 0x193   :  { %v795_v58 = vpop.f32.mrf.mxu0 }
 0x194   :  { %v4097_v2 = vadd.f32 %v795_v58, %v3895_v56  ;;  %v543_v56 = vadd.f32 %v3916_v44, %v3914_v28  ;;  %v4130_v44 = vpop.f32.mrf.mxu1 }
 0x195   :  { %v797_v1 = vpop.f32.mrf.mxu0 }
 0x196   :  { %v4099_v50 = vadd.f32 %v797_v1, %v531_v36 }
 0x197   :  { %v801_v49 = vpop.f32.mrf.mxu0 }
 0x198   :  { %v4106_v12 = vadd.f32 %v801_v49, %v3903_v6  ;;  %v549_v6 = vadd.f32 %v3924_v62, %v3922_v5  ;;  %v4137_v62 = vpop.f32.mrf.mxu1 }
 0x199   :  { %v803_v8 = vpop.f32.mrf.mxu0 }
 0x19a   :  { %4800 = vst [vmem:[#allocation35_spill] sm:$0xff] %v4106_v12  ;;  %v4108_v57 = vadd.f32 %v803_v8, %v537_v33 }
 0x19b   :  { %v807_v60 = vpop.f32.mrf.mxu0 }
 0x19c   :  { %4801 = vst [vmem:[#allocation36_spill] sm:$0xff] %v4108_v57  ;;  %v4115_v58 = vadd.f32 %v807_v60, %v3911_v7  ;;  %v555_v7 = vadd.f32 %v3932_v18, %v3930_v26 }
 0x19d   :  { %v809_v36 = vpop.f32.mrf.mxu0 }
 0x19e   :  { %4802 = vst [vmem:[#allocation37_spill] sm:$0xff] %v4115_v58  ;;  %v4117_v1 = vadd.f32 %v809_v36, %v543_v56 }
 0x19f   :  { %v813_v11 = vpop.f32.mrf.mxu0 }
 0x1a0   :  { %4803 = vst [vmem:[#allocation38_spill] sm:$0xff] %v4117_v1  ;;  %v4124_v49 = vadd.f32 %v813_v11, %v3919_v55  ;;  %v4826_v1 = vld [vmem:[#allocation34_spill] sm:$0xff] }
 0x1a1   :  { %v815_v33 = vpop.f32.mrf.mxu0 }
 0x1a2   :  { %4804 = vst [vmem:[#allocation39_spill] sm:$0xff] %v4124_v49  ;;  %v4126_v8 = vadd.f32 %v815_v33, %v549_v6  ;;  %v4144_v33 = vpop.f32.mrf.mxu1 }
 0x1a3   :  { %v819_v28 = vpop.f32.mrf.mxu0 }
 0x1a4   :  { %4805 = vst [vmem:[#allocation40_spill] sm:$0xff] %v4126_v8  ;;  %v4133_v60 = vadd.f32 %v819_v28, %v3927_v21  ;;  %v4151_v28 = vpop.f32.mrf.mxu1 }
 0x1a5   :  { %v821_v56 = vpop.f32.mrf.mxu0 }
 0x1a6   :  { %4806 = vst [vmem:[#allocation41_spill] sm:$0xff] %v4133_v60  ;;  %v4135_v36 = vadd.f32 %v821_v56, %v555_v7  ;;  %v4812_v7 = vld [vmem:[#allocation19_spill] sm:$0xff] }
 0x1a7   :  { %v825_v5 = vpop.f32.mrf.mxu0 }
 0x1a8   :  { %4807 = vst [vmem:[#allocation42_spill] sm:$0xff] %v4135_v36  ;;  %v4140_v55 = vadd.f32 %v825_v5, %v3935_v24  ;;  %v4158_v5 = vpop.f32.mrf.mxu1 }
 0x1a9   :  { %v4142_v11 = vpop.f32.mrf.mxu0 }
 0x1aa   :  { %4808 = vst [vmem:[#allocation43_spill] sm:$0xff] %v4140_v55  ;;  %4809 = vst [vmem:[#allocation44_spill] sm:$0xff] %v4142_v11 }
 0x1ab   :  { %v831_v6 = vpop.f32.mrf.mxu0 }
 0x1ac   :  { %v4147_v26 = vadd.f32 %v831_v6, %v3943_v40  ;;  %v4165_v6 = vpop.f32.mrf.mxu1 }
 0x1ad   :  { %v4149_v18 = vpop.f32.mrf.mxu0 }
 0x1ae   :  { %4810 = vst [vmem:[#allocation45_spill] sm:$0xff] %v4147_v26  ;;  %4811 = vst [vmem:[#allocation46_spill] sm:$0xff] %v4149_v18 }
 0x1af   :  { %v837_v21 = vpop.f32.mrf.mxu0 }
 0x1b0   :  { %v4154_v56 = vadd.f32 %v837_v21, %v4812_v7  ;;  %v4172_v7 = vpop.f32.mrf.mxu1 }
 0x1b1   :  { %v4156_v36 = vpop.f32.mrf.mxu0 }
 0x1b2   :  { %4813 = vst [vmem:[#allocation19_spill] sm:$0xff] %v4154_v56  ;;  %4814 = vst [vmem:[#allocation47_spill] sm:$0xff] %v4156_v36  ;;  %v1552_v36 = vlaneseq }
 0x1b3   :  { %v843_v24 = vpop.f32.mrf.mxu0 }
 0x1b4   :  { %v4161_v55 = vadd.f32 %v843_v24, %v3959_v0  ;;  %v4179_v24 = vpop.f32.mrf.mxu1  ;;  %v4184_v8 = vshrl.u32 %v1552_v36, 7  ;;  %v1550_v36 = vld [vmem:[%s4761_s2] sm:$0x3] }
 0x1b5   :  { %v4163_v11 = vpop.f32.mrf.mxu0 }
 0x1b6   :  { %4815 = vst [vmem:[#allocation48_spill] sm:$0xff] %v4161_v55  ;;  %4816 = vst [vmem:[#allocation49_spill] sm:$0xff] %v4163_v11  ;;  %v4821_v55 = vld [vmem:[#allocation28_spill] sm:$0xff]  ;;  %v4771_v58 = vsub.s32 0, %v4184_v8 }
 0x1b7   :  { %v849_v40 = vpop.f32.mrf.mxu0 }
 0x1b8   :  { %v4168_v26 = vadd.f32 %v849_v40, %v3967_v17  ;;  %v4824_v40 = vld [vmem:[#allocation9_spill] sm:$0xff] }
 0x1b9   :  { %v4170_v18 = vpop.f32.mrf.mxu0 }
 0x1ba   :  { %4817 = vst [vmem:[#allocation50_spill] sm:$0xff] %v4168_v26  ;;  %4818 = vst [vmem:[#allocation51_spill] sm:$0xff] %v4170_v18  ;;  %v4825_v26 = vld [vmem:[#allocation10_spill] sm:$0xff] }
 0x1bb   :  { %v855_v21 = vpop.f32.mrf.mxu0  ;;  %v465_v18 = vadd.f32 %v4825_v26, %v4824_v40  ;;  %v4772_v26 = vsub.s32 1, %v4184_v8 }
 0x1bc   :  { %v4175_v56 = vadd.f32 %v855_v21, %v3975_v4  ;;  %v4191_v21 = vpop.f32.mrf.mxu1 }
 0x1bd   :  { %v4177_v60 = vpop.f32.mrf.mxu0  ;;  %v873_v4 = vadd.f32 %v4826_v1, %v465_v18  ;;  %4827 = vst [vmem:[#allocation9_spill] sm:$0xff] %v4191_v21 }
 0x1be   :  { %4819 = vst [vmem:[#allocation52_spill] sm:$0xff] %v4175_v56  ;;  %4820 = vst [vmem:[#allocation53_spill] sm:$0xff] %v4177_v60  ;;  %v4828_v56 = vld [vmem:[#allocation31_spill] sm:$0xff] }
 0x1bf   :  { %v861_v0 = vpop.f32.mrf.mxu0  ;;  %v1188_v1 = vadd.f32 %v4003_v25, %v873_v4 }
 0x1c0   :  { %v4182_v11 = vadd.f32 %v861_v0, %v4821_v55  ;;  %v4831_v55 = vld [vmem:[#allocation11_spill] sm:$0xff]  ;;  %v4832_v0 = vld [vmem:[#allocation12_spill] sm:$0xff] }
 0x1c1   :  { %v4186_v17 = vpop.f32.mrf.mxu0 }
 0x1c2   :  { %4822 = vst [vmem:[#allocation28_spill] sm:$0xff] %v4182_v11  ;;  %4823 = vst [vmem:[#allocation54_spill] sm:$0xff] %v4186_v17  ;;  %v471_v11 = vadd.f32 %v4832_v0, %v4831_v55  ;;  %v4834_v17 = vld [vmem:[#allocation14_spill] sm:$0xff]  ;;  %v4218_v0 = vrot.slane %v1550_v36, %v4772_v26 }
 0x1c3   :  { %v867_v49 = vpop.f32.mrf.mxu0 }
 0x1c4   :  { %v4194_v60 = vadd.f32 %v867_v49, %v4828_v56  ;;  %v875_v18 = vadd.f32 %v4008_v31, %v471_v11  ;;  %v4207_v49 = vpop.f32.mrf.mxu1 }
 0x1c5   :  { %v4197_v57 = vpop.f32.mrf.mxu0 }
 0x1c6   :  { %4829 = vst [vmem:[#allocation10_spill] sm:$0xff] %v4194_v60  ;;  %4830 = vst [vmem:[#allocation34_spill] sm:$0xff] %v4197_v57  ;;  %v4212_v60 = vrot.slane %v1550_v36, %v4771_v58  ;;  %v4833_v57 = vld [vmem:[#allocation13_spill] sm:$0xff]  ;;  %v1190_v11 = vadd.f32 %v4015_v34, %v875_v18  ;;  %v4222_v4 = vpop.f32.mrf.mxu1 }
 0x1c7   :  { %v1359_v40 = vpop.f32.mrf.mxu0  ;;  %v477_v21 = vadd.f32 %v4834_v17, %v4833_v57  ;;  %v1191_v57 = vadd.f32 %v4021_v16, %v4013_v29 }
 0x1c8   :  { %v1502_v56 = vadd.f32 %v1359_v40, %v4005_v63 }
 0x1c9   :  { %v1361_v12 = vpop.f32.mrf.mxu0  ;;  %v877_v25 = vadd.f32 %v4017_v35, %v477_v21 }
 0x1ca   :  { %v1503_v55 = vadd.f32 %v1361_v12, %v1188_v1  ;;  %v1562_v63 = vadd.f32 %v4212_v60, %v1502_v56  ;;  %v4231_v1 = vpop.f32.mrf.mxu1 }
 0x1cb   :  { %v1365_v31 = vpop.f32.mrf.mxu0  ;;  %v1192_v35 = vadd.f32 %v4031_v39, %v877_v25  ;;  %v1194_v39 = vadd.f32 %v4049_v48, %v4027_v15  ;;  %v1196_v15 = vadd.f32 %v4067_v59, %v4036_v42  ;;  %v1198_v42 = vadd.f32 %v4085_v14, %v4045_v47 }
 0x1cc   :  { %v1504_v40 = vadd.f32 %v1365_v31, %v4010_v10  ;;  %v1563_v12 = vadd.f32 %v4218_v0, %v1503_v55  ;;  %v1610_v34 = vmax.f32 %v1562_v63, 0.0  ;;  %v1193_v10 = vadd.f32 %v4040_v27, %v4024_v19  ;;  %v4240_v25 = vpop.f32.mrf.mxu1 }
 0x1cd   :  { %v1367_v58 = vpop.f32.mrf.mxu0  ;;  %v1195_v19 = vadd.f32 %v4058_v41, %v4034_v30  ;;  %v1197_v41 = vadd.f32 %v4076_v3, %v4043_v54  ;;  %v1200_v47 = vadd.f32 %v4103_v51, %v4054_v52  ;;  %v1721_v52 = vld [vmem:[#allocation4 + $0xd8] sm:$0xff] }
 0x1ce   :  { %v1564_v17 = vadd.f32 %v4212_v60, %v1504_v40  ;;  %v1505_v36 = vadd.f32 %v1367_v58, %v1190_v11  ;;  %v1611_v29 = vmax.f32 %v1563_v12, 0.0 }
 0x1cf   :  { %v1371_v21 = vpop.f32.mrf.mxu0 }
 0x1d0   :  { %v1612_v18 = vmax.f32 %v1564_v17, 0.0  ;;  %v1565_v56 = vadd.f32 %v4218_v0, %v1505_v36  ;;  %v1506_v26 = vadd.f32 %v1371_v21, %v1191_v57  ;;  %v4253_v21 = vpop.f32.mrf.mxu1 }
 0x1d1   :  { %v1373_v31 = vpop.f32.mrf.mxu0 }
 0x1d2   :  { %v4236_v16 = vmax.f32 %v1610_v34, %v1612_v18  ;;  %v1613_v55 = vmax.f32 %v1565_v56, 0.0  ;;  %v1507_v40 = vadd.f32 %v1373_v31, %v1192_v35  ;;  %v1566_v63 = vadd.f32 %v4212_v60, %v1506_v26  ;;  %v4260_v59 = vpop.f32.mrf.mxu1 }
 0x1d3   :  { %v1377_v58 = vpop.f32.mrf.mxu0 }
 0x1d4   :  { %v4242_v11 = vmax.f32 %v1611_v29, %v1613_v55  ;;  %v1508_v57 = vadd.f32 %v1377_v58, %v1193_v10  ;;  %v1567_v17 = vadd.f32 %v4218_v0, %v1507_v40  ;;  %v1614_v26 = vmax.f32 %v1566_v63, 0.0 }
 0x1d5   :  { %v1379_v27 = vpop.f32.mrf.mxu0 }
 0x1d6   :  { %v1682_v12 = vmax.f32 %v4236_v16, %v4242_v11  ;;  %v1568_v36 = vadd.f32 %v4212_v60, %v1508_v57  ;;  %v1509_v35 = vadd.f32 %v1379_v27, %v1194_v39  ;;  %v1615_v10 = vmax.f32 %v1567_v17, 0.0  ;;  %v2012_v16 = vld [vmem:[#allocation4 + $0x2d0] sm:$0xff] }
 0x1d7   :  { %v1383_v48 = vpop.f32.mrf.mxu0  ;;  %v1199_v57 = vadd.f32 %v4094_v23, %v4052_v9 }
 0x1d8   :  { %v1616_v34 = vmax.f32 %v1568_v36, 0.0  ;;  %v1569_v18 = vadd.f32 %v4218_v0, %v1509_v35  ;;  %v1510_v30 = vadd.f32 %v1383_v48, %v1195_v19  ;;  %v1724_v36 = vld [vmem:[#allocation4 + $0xf0] sm:$0xff]  ;;  %v1723_v35 = vld [vmem:[#allocation4 + $0xe8] sm:$0xff] }
 0x1d9   :  { %v1385_v56 = vpop.f32.mrf.mxu0 }
 0x1da   :  { %v1660_v31 = vmax.f32 %v1614_v26, %v1616_v34  ;;  %v1617_v29 = vmax.f32 %v1569_v18, 0.0  ;;  %v1511_v55 = vadd.f32 %v1385_v56, %v1196_v15  ;;  %v1570_v39 = vadd.f32 %v4212_v60, %v1510_v30  ;;  %v4271_v15 = vpop.f32.mrf.mxu1  ;;  %v1722_v34 = vld [vmem:[#allocation4 + $0xe0] sm:$0xff] }
 0x1db   :  { %v1389_v40 = vpop.f32.mrf.mxu0  ;;  %v1201_v18 = vadd.f32 %v4112_v61, %v4061_v22 }
 0x1dc   :  { %v1661_v58 = vmax.f32 %v1615_v10, %v1617_v29  ;;  %v1512_v63 = vadd.f32 %v1389_v40, %v1197_v41  ;;  %v1571_v3 = vadd.f32 %v4218_v0, %v1511_v55  ;;  %v1618_v48 = vmax.f32 %v1570_v39, 0.0  ;;  %v1719_v55 = vld [vmem:[#allocation4 + $0xc8] sm:$0xff]  ;;  %v1718_v39 = vld [vmem:[#allocation4 + $0xc0] sm:$0xff] }
 0x1dd   :  { %v1391_v19 = vpop.f32.mrf.mxu0  ;;  %v1202_v40 = vadd.f32 %v4121_v53, %v4063_v46  ;;  %v1716_v53 = vld [vmem:[#allocation4 + $0xb0] sm:$0xff] }
 0x1de   :  { %v4265_v54 = vmax.f32 %v1660_v31, %v1661_v58  ;;  %v1572_v27 = vadd.f32 %v4212_v60, %v1512_v63  ;;  %v1513_v17 = vadd.f32 %v1391_v19, %v1198_v42  ;;  %v1619_v51 = vmax.f32 %v1571_v3, 0.0  ;;  %v1720_v31 = vld [vmem:[#allocation4 + $0xd0] sm:$0xff]  ;;  %v4280_v42 = vpop.f32.mrf.mxu1  ;;  %v1717_v19 = vld [vmem:[#allocation4 + $0xb8] sm:$0xff] }
 0x1df   :  { %v1395_v14 = vpop.f32.mrf.mxu0  ;;  %v1203_v63 = vadd.f32 %v4130_v44, %v4070_v37 }
 0x1e0   :  { %v1620_v26 = vmax.f32 %v1572_v27, 0.0  ;;  %v1573_v9 = vadd.f32 %v4218_v0, %v1513_v17  ;;  %v1514_v23 = vadd.f32 %v1395_v14, %v1199_v57  ;;  %1824 = vmatmul.mubr.f32.vlgmr.msra.gmra.mxu1 %v4265_v54  ;;  %v1715_v14 = vld [vmem:[#allocation4 + $0xa8] sm:$0xff] }
 0x1e1   :  { %v1397_v30 = vpop.f32.mrf.mxu0  ;;  %1829 = vmatprep.mubr.f32.mxu1 %v4786_v20  ;;  %1873 = vmatpush1.msra.mxu1 %v1724_v36  ;;  %v1204_v36 = vadd.f32 %v4137_v62, %v4072_v13  ;;  %v1713_v13 = vld [vmem:[#allocation4 + $0x98] sm:$0xff] }
 0x1e2   :  { %v1662_v41 = vmax.f32 %v1618_v48, %v1620_v26  ;;  %v1621_v56 = vmax.f32 %v1573_v9, 0.0  ;;  %v1515_v10 = vadd.f32 %v1397_v30, %v1200_v47  ;;  %1874 = vmatprep.subr.mxu1 %v1723_v35  ;;  %v1574_v61 = vadd.f32 %v4212_v60, %v1514_v23  ;;  %v4291_v35 = vpop.f32.mrf.mxu1  ;;  %v1714_v9 = vld [vmem:[#allocation4 + $0xa0] sm:$0xff] }
 0x1e3   :  { %v1401_v29 = vpop.f32.mrf.mxu0  ;;  %1875 = vmatpush1.msra.mxu1 %v1722_v34  ;;  %v1205_v23 = vadd.f32 %v4144_v33, %v4079_v38 }
 0x1e4   :  { %v1663_v22 = vmax.f32 %v1619_v51, %v1621_v56  ;;  %v1516_v58 = vadd.f32 %v1401_v29, %v1201_v18  ;;  %1876 = vmatprep.subr.mxu1 %v1721_v52  ;;  %v1575_v3 = vadd.f32 %v4218_v0, %v1515_v10  ;;  %v1622_v37 = vmax.f32 %v1574_v61, 0.0  ;;  %v1712_v51 = vld [vmem:[#allocation4 + $0x90] sm:$0xff]  ;;  %v1711_v56 = vld [vmem:[#allocation4 + $0x88] sm:$0xff] }
 0x1e5   :  { %v1403_v57 = vpop.f32.mrf.mxu0  ;;  %1877 = vmatpush1.msra.mxu1 %v1720_v31  ;;  %v1206_v10 = vadd.f32 %v4151_v28, %v4081_v32  ;;  %v4300_v31 = vpop.f32.mrf.mxu1  ;;  %v1208_v28 = vadd.f32 %v4165_v6, %v4090_v45  ;;  %v1707_v45 = vld [vmem:[#allocation4 + $0x68] sm:$0xff] }
 0x1e6   :  { %v1576_v27 = vadd.f32 %v4212_v60, %v1516_v58  ;;  %v1517_v17 = vadd.f32 %v1403_v57, %v1202_v40  ;;  %v4287_v46 = vmax.f32 %v1662_v41, %v1663_v22  ;;  %1878 = vmatprep.subr.mxu1 %v1719_v55  ;;  %v1623_v62 = vmax.f32 %v1575_v3, 0.0  ;;  %v1710_v55 = vld [vmem:[#allocation4 + $0x80] sm:$0xff]  ;;  %v1709_v57 = vld [vmem:[#allocation4 + $0x78] sm:$0xff] }
 0x1e7   :  { %v1407_v47 = vpop.f32.mrf.mxu0  ;;  %1879 = vmatpush1.msra.mxu1 %v1718_v39  ;;  %v1207_v40 = vadd.f32 %v4158_v5, %v4088_v43 }
 0x1e8   :  { %v1624_v44 = vmax.f32 %v1576_v27, 0.0  ;;  %v1577_v48 = vadd.f32 %v4218_v0, %v1517_v17  ;;  %v1518_v26 = vadd.f32 %v1407_v47, %v1203_v63  ;;  %1830 = vmatmul.mubr.f32.gmra.mxu1 %v4287_v46  ;;  %1880 = vmatprep.subr.mxu1 %v1717_v19  ;;  %v4311_v19 = vpop.f32.mrf.mxu1  ;;  %v1708_v17 = vld [vmem:[#allocation4 + $0x70] sm:$0xff] }
 0x1e9   :  { %v1409_v34 = vpop.f32.mrf.mxu0  ;;  %1835 = vmatprep.mubr.f32.mxu1 %v4786_v20  ;;  %1881 = vmatpush1.msra.mxu1 %v1716_v53  ;;  %v1209_v53 = vadd.f32 %v4172_v7, %v4097_v2 }
 0x1ea   :  { %v1664_v18 = vmax.f32 %v1622_v37, %v1624_v44  ;;  %v1625_v30 = vmax.f32 %v1577_v48, 0.0  ;;  %v1519_v52 = vadd.f32 %v1409_v34, %v1204_v36  ;;  %1882 = vmatprep.subr.mxu1 %v1715_v14  ;;  %v1578_v33 = vadd.f32 %v4212_v60, %v1518_v26  ;;  %v1706_v44 = vld [vmem:[#allocation4 + $0x60] sm:$0xff]  ;;  %v1705_v26 = vld [vmem:[#allocation4 + $0x58] sm:$0xff] }
 0x1eb   :  { %v1413_v41 = vpop.f32.mrf.mxu0  ;;  %1883 = vmatpush1.msra.mxu1 %v1714_v9  ;;  %v1210_v9 = vadd.f32 %v4179_v24, %v4099_v50  ;;  %v4837_v24 = vld [vmem:[#allocation36_spill] sm:$0xff] }
 0x1ec   :  { %v1665_v38 = vmax.f32 %v1623_v62, %v1625_v30  ;;  %v1520_v29 = vadd.f32 %v1413_v41, %v1205_v23  ;;  %1884 = vmatprep.subr.mxu1 %v1713_v13  ;;  %v1579_v58 = vadd.f32 %v4218_v0, %v1519_v52  ;;  %v1626_v3 = vmax.f32 %v1578_v33, 0.0  ;;  %v4322_v23 = vpop.f32.mrf.mxu1  ;;  %v1704_v13 = vld [vmem:[#allocation4 + $0x50] sm:$0xff]  ;;  %v1703_v33 = vld [vmem:[#allocation4 + $0x48] sm:$0xff] }
 0x1ed   :  { %v1415_v22 = vpop.f32.mrf.mxu0  ;;  %1885 = vmatpush1.msra.mxu1 %v1712_v51  ;;  %v4835_v62 = vld [vmem:[#allocation35_spill] sm:$0xff] }
 0x1ee   :  { %v4305_v61 = vmax.f32 %v1664_v18, %v1665_v38  ;;  %v1580_v39 = vadd.f32 %v4212_v60, %v1520_v29  ;;  %v1521_v32 = vadd.f32 %v1415_v22, %v1206_v10  ;;  %1886 = vmatprep.subr.mxu1 %v1711_v56  ;;  %v1627_v6 = vmax.f32 %v1579_v58, 0.0  ;;  %v4836_v18 = vld [vmem:[#allocation9_spill] sm:$0xff]  ;;  %v4333_v29 = vpop.f32.mrf.mxu1 }
 0x1ef   :  { %v1419_v63 = vpop.f32.mrf.mxu0  ;;  %1887 = vmatpush1.msra.mxu1 %v1710_v55  ;;  %v1211_v30 = vadd.f32 %v4836_v18, %v4835_v62  ;;  %v1212_v10 = vadd.f32 %v4207_v49, %v4837_v24  ;;  %v1701_v49 = vld [vmem:[#allocation4 + $0x38] sm:$0xff]  ;;  %v4842_v24 = vld [vmem:[#allocation15_spill] sm:$0xff] }
 0x1f0   :  { %v1628_v43 = vmax.f32 %v1580_v39, 0.0  ;;  %v1581_v5 = vadd.f32 %v4218_v0, %v1521_v32  ;;  %v1522_v27 = vadd.f32 %v1419_v63, %v1207_v40  ;;  %1836 = vmatmul.mubr.f32.gmra.mxu1 %v4305_v61  ;;  %2245 = vmatmul.mubr.f32.vlgmr.msra.gmra.mxu0 %v4305_v61  ;;  %v1702_v39 = vld [vmem:[#allocation4 + $0x40] sm:$0xff]  ;;  %v1697_v18 = vld [vmem:[#allocation4 + $0x18] sm:$0xff] }
 0x1f1   :  { %v1421_v36 = vpop.f32.mrf.mxu0  ;;  %1841 = vmatprep.mubr.f32.mxu1 %v4786_v20  ;;  %2250 = vmatprep.mubr.f32.mxu0 %v4786_v20  ;;  %v4838_v32 = vld [vmem:[#allocation37_spill] sm:$0xff] }
 0x1f2   :  { %v1666_v47 = vmax.f32 %v1626_v3, %v1628_v43  ;;  %v1629_v14 = vmax.f32 %v1581_v5, 0.0  ;;  %v1523_v37 = vadd.f32 %v1421_v36, %v1208_v28  ;;  %1888 = vmatprep.subr.mxu1 %v1709_v57  ;;  %v1582_v7 = vadd.f32 %v4212_v60, %v1522_v27  ;;  %v1700_v27 = vld [vmem:[#allocation4 + $0x30] sm:$0xff]  ;;  %v4839_v36 = vld [vmem:[#allocation38_spill] sm:$0xff] }
 0x1f3   :  { %v1425_v48 = vpop.f32.mrf.mxu0  ;;  %1889 = vmatpush1.msra.mxu1 %v1708_v17  ;;  %v1213_v28 = vadd.f32 %v4222_v4, %v4838_v32 }
 0x1f4   :  { %v1667_v2 = vmax.f32 %v1627_v6, %v1629_v14  ;;  %v1524_v34 = vadd.f32 %v1425_v48, %v1209_v53  ;;  %1890 = vmatprep.subr.mxu1 %v1707_v45  ;;  %v1583_v41 = vadd.f32 %v4218_v0, %v1523_v37  ;;  %v1630_v55 = vmax.f32 %v1582_v7, 0.0  ;;  %v1699_v53 = vld [vmem:[#allocation4 + $0x28] sm:$0xff]  ;;  %v4344_v6 = vpop.f32.mrf.mxu1  ;;  %v1698_v37 = vld [vmem:[#allocation4 + $0x20] sm:$0xff] }
 0x1f5   :  { %v1427_v52 = vpop.f32.mrf.mxu0  ;;  %1891 = vmatpush1.msra.mxu1 %v1706_v44  ;;  %v1214_v45 = vadd.f32 %v4231_v1, %v4839_v36  ;;  %v4840_v44 = vld [vmem:[#allocation39_spill] sm:$0xff]  ;;  %v4847_v36 = vld [vmem:[#allocation17_spill] sm:$0xff] }
 0x1f6   :  { %v4327_v51 = vmax.f32 %v1666_v47, %v1667_v2  ;;  %v1584_v56 = vadd.f32 %v4212_v60, %v1524_v34  ;;  %v1525_v50 = vadd.f32 %v1427_v52, %v1210_v9  ;;  %1892 = vmatprep.subr.mxu1 %v1705_v26  ;;  %v1631_v57 = vmax.f32 %v1583_v41, 0.0  ;;  %v4841_v34 = vld [vmem:[#allocation40_spill] sm:$0xff] }
 0x1f7   :  { %v1431_v38 = vpop.f32.mrf.mxu0  ;;  %1893 = vmatpush1.msra.mxu1 %v1704_v13  ;;  %v1215_v48 = vadd.f32 %v4240_v25, %v4840_v44  ;;  %v1216_v13 = vadd.f32 %v4253_v21, %v4841_v34 }
 0x1f8   :  { %v1632_v40 = vmax.f32 %v1584_v56, 0.0  ;;  %v1585_v22 = vadd.f32 %v4218_v0, %v1525_v50  ;;  %v1526_v58 = vadd.f32 %v1431_v38, %v1211_v30  ;;  %1842 = vmatmul.mubr.f32.gmra.mxu1 %v4327_v51  ;;  %2251 = vmatmul.mubr.f32.gmra.mxu0 %v4327_v51  ;;  %v4355_v30 = vpop.f32.mrf.mxu1  ;;  %v1696_v50 = vld [vmem:[#allocation4 + $0x10] sm:$0xff] }
 0x1f9   :  { %v1433_v63 = vpop.f32.mrf.mxu0  ;;  %1847 = vmatprep.mubr.f32.mxu1 %v4786_v20  ;;  %2256 = vmatprep.mubr.f32.mxu0 %v4786_v20 }
 0x1fa   :  { %v1668_v3 = vmax.f32 %v1630_v55, %v1632_v40  ;;  %v1633_v43 = vmax.f32 %v1585_v22, 0.0  ;;  %v1527_v5 = vadd.f32 %v1433_v63, %v1212_v10  ;;  %1894 = vmatprep.subr.mxu1 %v1703_v33  ;;  %v1586_v47 = vadd.f32 %v4212_v60, %v1526_v58  ;;  %v4843_v10 = vld [vmem:[#allocation16_spill] sm:$0xff]  ;;  %v4844_v33 = vld [vmem:[#allocation41_spill] sm:$0xff]  ;;  %v1695_v40 = vld [vmem:[#allocation4 + $0x8] sm:$0xff] }
 0x1fb   :  { %v1437_v17 = vpop.f32.mrf.mxu0  ;;  %1895 = vmatpush1.msra.mxu1 %v1702_v39  ;;  %v561_v38 = vadd.f32 %v4843_v10, %v4842_v24  ;;  %v1217_v21 = vadd.f32 %v4260_v59, %v4844_v33  ;;  %v4845_v63 = vld [vmem:[#allocation44_spill] sm:$0xff] }
 0x1fc   :  { %v1669_v4 = vmax.f32 %v1631_v57, %v1633_v43  ;;  %v1528_v14 = vadd.f32 %v1437_v17, %v1213_v28  ;;  %1896 = vmatprep.subr.mxu1 %v1701_v49  ;;  %v1587_v2 = vadd.f32 %v4218_v0, %v1527_v5  ;;  %v1634_v52 = vmax.f32 %v1586_v47, 0.0  ;;  %v1694_v28 = vld [vmem:[#allocation4] sm:$0xff]  ;;  %v4846_v43 = vld [vmem:[#allocation42_spill] sm:$0xff]  ;;  %v4369_v5 = vpop.f32.mrf.mxu1  ;;  %v4849_v47 = vld [vmem:[#allocation43_spill] sm:$0xff] }
 0x1fd   :  { %v1439_v26 = vpop.f32.mrf.mxu0  ;;  %1897 = vmatpush1.msra.mxu1 %v1700_v27  ;;  %v905_v49 = vadd.f32 %v4845_v63, %v561_v38  ;;  %v1218_v59 = vadd.f32 %v4271_v15, %v4846_v43 }
 0x1fe   :  { %v4349_v9 = vmax.f32 %v1668_v3, %v1669_v4  ;;  %v1588_v7 = vadd.f32 %v4212_v60, %v1528_v14  ;;  %v1529_v1 = vadd.f32 %v1439_v26, %v1214_v45  ;;  %1898 = vmatprep.subr.mxu1 %v1699_v53  ;;  %v1635_v22 = vmax.f32 %v1587_v2, 0.0  ;;  %v2017_v3 = vld [vmem:[#allocation4 + $0x2f8] sm:$0xff]  ;;  %v4848_v45 = vld [vmem:[#allocation18_spill] sm:$0xff] }
 0x1ff   :  { %v1443_v62 = vpop.f32.mrf.mxu0  ;;  %1899 = vmatpush1.msra.mxu1 %v1698_v37  ;;  %v567_v4 = vadd.f32 %v4848_v45, %v4847_v36  ;;  %v1219_v14 = vadd.f32 %v4280_v42, %v4849_v47  ;;  %v1220_v2 = vadd.f32 %v4291_v35, %v905_v49  ;;  %v4856_v49 = vld [vmem:[#allocation23_spill] sm:$0xff]  ;;  %v4858_v45 = vld [vmem:[#allocation49_spill] sm:$0xff] }
 0x200   :  { %v1636_v25 = vmax.f32 %v1588_v7, 0.0  ;;  %v1589_v41 = vadd.f32 %v4218_v0, %v1529_v1  ;;  %v1530_v56 = vadd.f32 %v1443_v62, %v1215_v48  ;;  %1848 = vmatmul.mubr.f32.gmra.mxu1 %v4349_v9  ;;  %2257 = vmatmul.mubr.f32.gmra.mxu0 %v4349_v9  ;;  %v4850_v7 = vld [vmem:[#allocation46_spill] sm:$0xff] }
 0x201   :  { %v1445_v55 = vpop.f32.mrf.mxu0  ;;  %1853 = vmatprep.mubr.f32.mxu1 %v4786_v20  ;;  %2262 = vmatprep.mubr.f32.mxu0 %v4786_v20  ;;  %v907_v1 = vadd.f32 %v4850_v7, %v567_v4 }
 0x202   :  { %v1670_v58 = vmax.f32 %v1634_v52, %v1636_v25  ;;  %v1637_v39 = vmax.f32 %v1589_v41, 0.0  ;;  %v1531_v32 = vadd.f32 %v1445_v55, %v1216_v13  ;;  %1900 = vmatprep.subr.mxu1 %v1697_v18  ;;  %v1590_v17 = vadd.f32 %v4212_v60, %v1530_v56  ;;  %v4382_v13 = vpop.f32.mrf.mxu1  ;;  %v4851_v25 = vld [vmem:[#allocation20_spill] sm:$0xff]  ;;  %v4852_v41 = vld [vmem:[#allocation21_spill] sm:$0xff]  ;;  %v4854_v55 = vld [vmem:[#allocation47_spill] sm:$0xff] }
 0x203   :  { %v1449_v57 = vpop.f32.mrf.mxu0  ;;  %1901 = vmatpush1.msra.mxu1 %v1696_v50  ;;  %v573_v56 = vadd.f32 %v4852_v41, %v4851_v25  ;;  %v4853_v50 = vld [vmem:[#allocation45_spill] sm:$0xff]  ;;  %v4862_v25 = vld [vmem:[#allocation51_spill] sm:$0xff] }
 0x204   :  { %v1671_v27 = vmax.f32 %v1635_v22, %v1637_v39  ;;  %v1532_v53 = vadd.f32 %v1449_v57, %v1217_v21  ;;  %1902 = vmatprep.subr.mxu1 %v1695_v40  ;;  %v1591_v48 = vadd.f32 %v4218_v0, %v1531_v32  ;;  %v1638_v62 = vmax.f32 %v1590_v17, 0.0  ;;  %v1170_v39 = vpop.f32.mrf.mxu1 }
 0x205   :  { %v1451_v37 = vpop.f32.mrf.mxu0  ;;  %1903 = vmatpush1.msra.mxu1 %v1694_v28  ;;  %v1221_v35 = vadd.f32 %v4300_v31, %v4853_v50  ;;  %v909_v40 = vadd.f32 %v4854_v55, %v573_v56  ;;  %v4855_v31 = vld [vmem:[#allocation22_spill] sm:$0xff] }
 0x206   :  { %v4376_v44 = vmax.f32 %v1670_v58, %v1671_v27  ;;  %v1592_v15 = vadd.f32 %v4212_v60, %v1532_v53  ;;  %v1533_v26 = vadd.f32 %v1451_v37, %v1218_v59  ;;  %2018 = vmatprep.subr.mxu1 %v2017_v3  ;;  %v1639_v10 = vmax.f32 %v1591_v48, 0.0  ;;  %v4857_v3 = vld [vmem:[#allocation19_spill] sm:$0xff]  ;;  %v4865_v55 = vld [vmem:[#allocation50_spill] sm:$0xff] }
 0x207   :  { %v1455_v34 = vpop.f32.mrf.mxu0  ;;  %v1222_v58 = vadd.f32 %v4311_v19, %v907_v1  ;;  %v579_v57 = vadd.f32 %v4856_v49, %v4855_v31  ;;  %v1223_v43 = vadd.f32 %v4322_v23, %v4857_v3  ;;  %v1224_v19 = vadd.f32 %v4333_v29, %v909_v40  ;;  %v4859_v23 = vld [vmem:[#allocation24_spill] sm:$0xff]  ;;  %v4866_v31 = vld [vmem:[#allocation53_spill] sm:$0xff] }
 0x208   :  { %v1640_v18 = vmax.f32 %v1592_v15, 0.0  ;;  %v1593_v42 = vadd.f32 %v4218_v0, %v1533_v26  ;;  %v1534_v52 = vadd.f32 %v1455_v34, %v1219_v14  ;;  %1854 = vmatmul.mubr.f32.gmra.mxu1 %v4376_v44  ;;  %2263 = vmatmul.mubr.f32.gmra.mxu0 %v4376_v44  ;;  %v1172_v14 = vpop.f32.mrf.mxu1  ;;  %v4861_v1 = vld [vmem:[#allocation48_spill] sm:$0xff]  ;;  %v1227_v40 = vadd.f32 %v4369_v5, %v4865_v55  ;;  %v4867_v5 = vld [vmem:[#allocation29_spill] sm:$0xff] }
 0x209   :  { %v1457_v24 = vpop.f32.mrf.mxu0  ;;  %1859 = vmatprep.mubr.f32.mxu1 %v4786_v20  ;;  %2268 = vmatprep.mubr.f32.mxu0 %v4786_v20  ;;  %v911_v4 = vadd.f32 %v4858_v45, %v579_v57  ;;  %v1225_v34 = vadd.f32 %v4344_v6, %v4861_v1  ;;  %v4863_v6 = vld [vmem:[#allocation26_spill] sm:$0xff]  ;;  %v4869_v45 = vld [vmem:[#allocation52_spill] sm:$0xff] }
 0x20a   :  { %v1672_v38 = vmax.f32 %v1638_v62, %v1640_v18  ;;  %v1641_v33 = vmax.f32 %v1593_v42, 0.0  ;;  %v1535_v21 = vadd.f32 %v1457_v24, %v1220_v2  ;;  %v1594_v28 = vadd.f32 %v4212_v60, %v1534_v52  ;;  %v4860_v2 = vld [vmem:[#allocation25_spill] sm:$0xff]  ;;  %v2015_v1 = vld [vmem:[#allocation4 + $0x2e8] sm:$0xff] }
 0x20b   :  { %v1461_v22 = vpop.f32.mrf.mxu0  ;;  %v585_v7 = vadd.f32 %v4860_v2, %v4859_v23  ;;  %v1226_v50 = vadd.f32 %v4355_v30, %v911_v4  ;;  %v1229_v4 = vadd.f32 %v1170_v39, %v4869_v45  ;;  %v4870_v23 = vld [vmem:[#allocation54_spill] sm:$0xff] }
 0x20c   :  { %v1673_v32 = vmax.f32 %v1639_v10, %v1641_v33  ;;  %v1536_v63 = vadd.f32 %v1461_v22, %v1221_v35  ;;  %v1595_v17 = vadd.f32 %v4218_v0, %v1535_v21  ;;  %v1642_v37 = vmax.f32 %v1594_v28, 0.0  ;;  %v1176_v35 = vpop.f32.mrf.mxu1  ;;  %v4864_v33 = vld [vmem:[#allocation27_spill] sm:$0xff] }
 0x20d   :  { %v1463_v59 = vpop.f32.mrf.mxu0  ;;  %v913_v41 = vadd.f32 %v4862_v25, %v585_v7  ;;  %v591_v21 = vadd.f32 %v4864_v33, %v4863_v6  ;;  %v4872_v25 = vld [vmem:[#allocation33_spill] sm:$0xff] }
 0x20e   :  { %v4400_v27 = vmax.f32 %v1672_v38, %v1673_v32  ;;  %v1596_v53 = vadd.f32 %v4212_v60, %v1536_v63  ;;  %v1537_v36 = vadd.f32 %v1463_v59, %v1222_v58  ;;  %v1643_v62 = vmax.f32 %v1595_v17, 0.0  ;;  %v1178_v3 = vpop.f32.mrf.mxu1 }
 0x20f   :  { %v1467_v47 = vpop.f32.mrf.mxu0  ;;  %v1228_v30 = vadd.f32 %v4382_v13, %v913_v41  ;;  %v915_v49 = vadd.f32 %v4866_v31, %v591_v21  ;;  %v4875_v31 = vld [vmem:[#allocation10_spill] sm:$0xff] }
 0x210   :  { %v1644_v48 = vmax.f32 %v1596_v53, 0.0  ;;  %v1597_v15 = vadd.f32 %v4218_v0, %v1537_v36  ;;  %v1538_v26 = vadd.f32 %v1467_v47, %v1223_v43  ;;  %1860 = vmatmul.mubr.f32.gmra.mxu1 %v4400_v27  ;;  %2269 = vmatmul.mubr.f32.gmra.mxu0 %v4400_v27  ;;  %v4868_v36 = vld [vmem:[#allocation30_spill] sm:$0xff] }
 0x211   :  { %v1469_v29 = vpop.f32.mrf.mxu0  ;;  %1865 = vmatprep.mubr.f32.mxu1 %v4786_v20  ;;  %2274 = vmatprep.mubr.f32.mxu0 %v4786_v20 }
 0x212   :  { %v1674_v18 = vmax.f32 %v1642_v37, %v1644_v48  ;;  %v1645_v42 = vmax.f32 %v1597_v15, 0.0  ;;  %v1539_v52 = vadd.f32 %v1469_v29, %v1224_v19  ;;  %v1598_v10 = vadd.f32 %v4212_v60, %v1538_v26  ;;  %v2016_v26 = vld [vmem:[#allocation4 + $0x2f0] sm:$0xff]  ;;  %v1182_v29 = vpop.f32.mrf.mxu1 }
 0x213   :  { %v1473_v56 = vpop.f32.mrf.mxu0  ;;  %v597_v19 = vadd.f32 %v4868_v36, %v4867_v5  ;;  %v2008_v5 = vld [vmem:[#allocation4 + $0x2b0] sm:$0xff] }
 0x214   :  { %v1675_v24 = vmax.f32 %v1643_v62, %v1645_v42  ;;  %v1540_v38 = vadd.f32 %v1473_v56, %v1225_v34  ;;  %v1599_v32 = vadd.f32 %v4218_v0, %v1539_v52  ;;  %v1646_v43 = vmax.f32 %v1598_v10, 0.0  ;;  %v2014_v42 = vld [vmem:[#allocation4 + $0x2e0] sm:$0xff]  ;;  %v4871_v52 = vld [vmem:[#allocation32_spill] sm:$0xff] }
 0x215   :  { %v1475_v22 = vpop.f32.mrf.mxu0  ;;  %v917_v2 = vadd.f32 %v4870_v23, %v597_v19  ;;  %v1230_v34 = vadd.f32 %v1172_v14, %v915_v49  ;;  %v603_v41 = vadd.f32 %v4872_v25, %v4871_v52  ;;  %v4873_v56 = vld [vmem:[#allocation28_spill] sm:$0xff]  ;;  %v1233_v49 = vadd.f32 %v1182_v29, %v4875_v31  ;;  %v2000_v25 = vld [vmem:[#allocation4 + $0x270] sm:$0xff] }
 0x216   :  { %v4422_v58 = vmax.f32 %v1674_v18, %v1675_v24  ;;  %v1600_v28 = vadd.f32 %v4212_v60, %v1540_v38  ;;  %v1541_v63 = vadd.f32 %v1475_v22, %v1226_v50  ;;  %v1647_v13 = vmax.f32 %v1599_v32, 0.0  ;;  %v2013_v14 = vld [vmem:[#allocation4 + $0x2d8] sm:$0xff]  ;;  %v2336_v31 = vld [vmem:[#allocation4 + $0x4d0] sm:$0xff] }
 0x217   :  { %v1479_v57 = vpop.f32.mrf.mxu0  ;;  %v1231_v50 = vadd.f32 %v1176_v35, %v4873_v56  ;;  %v1232_v11 = vadd.f32 %v1178_v3, %v917_v2  ;;  %v2011_v35 = vld [vmem:[#allocation4 + $0x2c8] sm:$0xff]  ;;  %v2009_v3 = vld [vmem:[#allocation4 + $0x2b8] sm:$0xff] }
 0x218   :  { %v1648_v59 = vmax.f32 %v1600_v28, 0.0  ;;  %v1601_v17 = vadd.f32 %v4218_v0, %v1541_v63  ;;  %v1542_v53 = vadd.f32 %v1479_v57, %v1227_v40  ;;  %1866 = vmatmul.mubr.f32.gmra.mxu1 %v4422_v58  ;;  %2275 = vmatmul.mubr.f32.gmra.mxu0 %v4422_v58  ;;  %v1184_v40 = vpop.f32.mrf.mxu1 }
 0x219   :  { %v1481_v47 = vpop.f32.mrf.mxu0  ;;  %1936 = vmatprep.mubr.f32.mxu1 %v4786_v20  ;;  %2280 = vmatprep.mubr.f32.mxu0 %v4786_v20 }
 0x21a   :  { %v1676_v37 = vmax.f32 %v1646_v43, %v1648_v59  ;;  %v1649_v48 = vmax.f32 %v1601_v17, 0.0  ;;  %v1543_v15 = vadd.f32 %v1481_v47, %v1228_v30  ;;  %v1602_v18 = vadd.f32 %v4212_v60, %v1542_v53  ;;  %v2010_v30 = vld [vmem:[#allocation4 + $0x2c0] sm:$0xff] }
 0x21b   :  { %v1485_v7 = vpop.f32.mrf.mxu0 }
 0x21c   :  { %v1677_v62 = vmax.f32 %v1647_v13, %v1649_v48  ;;  %v1544_v39 = vadd.f32 %v1485_v7, %v1229_v4  ;;  %1937 = vmatmul.mubr.f32.vlgmr.msra.gmra.mxu1 %v1682_v12  ;;  %v1603_v38 = vadd.f32 %v4218_v0, %v1543_v15  ;;  %v4874_v12 = vld [vmem:[#allocation34_spill] sm:$0xff]  ;;  %v1650_v22 = vmax.f32 %v1602_v18, 0.0  ;;  %v2006_v13 = vld [vmem:[#allocation4 + $0x2a0] sm:$0xff]  ;;  %v2005_v48 = vld [vmem:[#allocation4 + $0x298] sm:$0xff] }
 0x21d   :  { %v1487_v24 = vpop.f32.mrf.mxu0  ;;  %2019 = vmatpush1.msra.mxu1 %v2016_v26  ;;  %1942 = vmatprep.mubr.f32.mxu1 %v4786_v20  ;;  %v919_v21 = vadd.f32 %v4874_v12, %v603_v41  ;;  %v2004_v7 = vld [vmem:[#allocation4 + $0x290] sm:$0xff]  ;;  %v2002_v18 = vld [vmem:[#allocation4 + $0x280] sm:$0xff]  ;;  %v1999_v41 = vld [vmem:[#allocation4 + $0x268] sm:$0xff] }
 0x21e   :  { %v4445_v10 = vmax.f32 %v1676_v37, %v1677_v62  ;;  %v1604_v6 = vadd.f32 %v4212_v60, %v1544_v39  ;;  %v1545_v33 = vadd.f32 %v1487_v24, %v1230_v34  ;;  %2020 = vmatprep.subr.mxu1 %v2015_v1  ;;  %v1651_v43 = vmax.f32 %v1603_v38, 0.0  ;;  %v2003_v1 = vld [vmem:[#allocation4 + $0x288] sm:$0xff]  ;;  %v2001_v39 = vld [vmem:[#allocation4 + $0x278] sm:$0xff]  ;;  %v1990_v12 = vld [vmem:[#allocation4 + $0x220] sm:$0xff] }
 0x21f   :  { %v1491_v55 = vpop.f32.mrf.mxu0  ;;  %2021 = vmatpush1.msra.mxu1 %v2014_v42  ;;  %v1234_v36 = vadd.f32 %v1184_v40, %v919_v21  ;;  %v1995_v38 = vld [vmem:[#allocation4 + $0x248] sm:$0xff]  ;;  %v1989_v21 = vld [vmem:[#allocation4 + $0x218] sm:$0xff]  ;;  %v1986_v40 = vld [vmem:[#allocation4 + $0x200] sm:$0xff] }
 0x220   :  { %v1652_v32 = vmax.f32 %v1604_v6, 0.0  ;;  %v1605_v28 = vadd.f32 %v4218_v0, %v1545_v33  ;;  %v1546_v63 = vadd.f32 %v1491_v55, %v1231_v50  ;;  %1943 = vmatmul.mubr.f32.gmra.mxu1 %v4265_v54  ;;  %2022 = vmatprep.subr.mxu1 %v2013_v14  ;;  %v2007_v54 = vld [vmem:[#allocation4 + $0x2a8] sm:$0xff]  ;;  %v1997_v50 = vld [vmem:[#allocation4 + $0x258] sm:$0xff]  ;;  %v1996_v14 = vld [vmem:[#allocation4 + $0x250] sm:$0xff] }
 0x221   :  { %2281 = vmatmul.mubr.f32.gmra.mxu0 %v4445_v10  ;;  %v1493_v57 = vpop.f32.mrf.mxu0  ;;  %2023 = vmatpush1.msra.mxu1 %v2012_v16  ;;  %v1994_v6 = vld [vmem:[#allocation4 + $0x240] sm:$0xff]  ;;  %v1993_v33 = vld [vmem:[#allocation4 + $0x238] sm:$0xff]  ;;  %v1992_v16 = vld [vmem:[#allocation4 + $0x230] sm:$0xff] }
 0x222   :  { %v1678_v59 = vmax.f32 %v1650_v22, %v1652_v32  ;;  %v1653_v17 = vmax.f32 %v1605_v28, 0.0  ;;  %v1547_v53 = vadd.f32 %v1493_v57, %v1232_v11  ;;  %2024 = vmatprep.subr.mxu1 %v2011_v35  ;;  %1948 = vmatprep.mubr.f32.mxu1 %v4786_v20  ;;  %v1606_v4 = vadd.f32 %v4212_v60, %v1546_v63  ;;  %v1991_v11 = vld [vmem:[#allocation4 + $0x228] sm:$0xff]  ;;  %v1988_v55 = vld [vmem:[#allocation4 + $0x210] sm:$0xff]  ;;  %v2341_v22 = vld [vmem:[#allocation4 + $0x4f8] sm:$0xff] }
 0x223   :  { %v1497_v19 = vpop.f32.mrf.mxu0  ;;  %2025 = vmatpush1.msra.mxu1 %v2010_v30  ;;  %2286 = vmatprep.mubr.f32.mxu0 %v4786_v20  ;;  %v1987_v35 = vld [vmem:[#allocation4 + $0x208] sm:$0xff]  ;;  %v2340_v32 = vld [vmem:[#allocation4 + $0x4f0] sm:$0xff]  ;;  %v2338_v63 = vld [vmem:[#allocation4 + $0x4e0] sm:$0xff] }
 0x224   :  { %v1679_v45 = vmax.f32 %v1651_v43, %v1653_v17  ;;  %v1548_v47 = vadd.f32 %v1497_v19, %v1233_v49  ;;  %1949 = vmatmul.mubr.f32.gmra.mxu1 %v4287_v46  ;;  %2026 = vmatprep.subr.mxu1 %v2009_v3  ;;  %v1607_v26 = vadd.f32 %v4218_v0, %v1547_v53  ;;  %v1654_v34 = vmax.f32 %v1606_v4, 0.0  ;;  %v2339_v28 = vld [vmem:[#allocation4 + $0x4e8] sm:$0xff]  ;;  %v2337_v30 = vld [vmem:[#allocation4 + $0x4d8] sm:$0xff]  ;;  %v2334_v57 = vld [vmem:[#allocation4 + $0x4c0] sm:$0xff] }
 0x225   :  { %v1499_v37 = vpop.f32.mrf.mxu0  ;;  %2027 = vmatpush1.msra.mxu1 %v2008_v5  ;;  %1954 = vmatprep.mubr.f32.mxu1 %v4786_v20  ;;  %v2335_v49 = vld [vmem:[#allocation4 + $0x4c8] sm:$0xff]  ;;  %v2333_v3 = vld [vmem:[#allocation4 + $0x4b8] sm:$0xff]  ;;  %v2326_v5 = vld [vmem:[#allocation4 + $0x480] sm:$0xff] }
 0x226   :  { %v4459_v15 = vmax.f32 %v1678_v59, %v1679_v45  ;;  %v1608_v23 = vadd.f32 %v4212_v60, %v1548_v47  ;;  %v1549_v2 = vadd.f32 %v1499_v37, %v1234_v36  ;;  %2028 = vmatprep.subr.mxu1 %v2007_v54  ;;  %v1655_v42 = vmax.f32 %v1607_v26, 0.0  ;;  %v2331_v43 = vld [vmem:[#allocation4 + $0x4a8] sm:$0xff]  ;;  %v2330_v59 = vld [vmem:[#allocation4 + $0x4a0] sm:$0xff]  ;;  %v2329_v17 = vld [vmem:[#allocation4 + $0x498] sm:$0xff] }
 0x227   :  { %2029 = vmatpush1.msra.mxu1 %v2006_v13  ;;  %v2327_v53 = vld [vmem:[#allocation4 + $0x488] sm:$0xff]  ;;  %v2325_v36 = vld [vmem:[#allocation4 + $0x478] sm:$0xff]  ;;  %v2324_v19 = vld [vmem:[#allocation4 + $0x470] sm:$0xff] }
 0x228   :  { %v1656_v29 = vmax.f32 %v1608_v23, 0.0  ;;  %v1609_v62 = vadd.f32 %v4218_v0, %v1549_v2  ;;  %1955 = vmatmul.mubr.f32.gmra.mxu1 %v4305_v61  ;;  %2030 = vmatprep.subr.mxu1 %v2005_v48  ;;  %v1998_v0 = vld [vmem:[#allocation4 + $0x260] sm:$0xff]  ;;  %v2323_v54 = vld [vmem:[#allocation4 + $0x468] sm:$0xff]  ;;  %v2321_v4 = vld [vmem:[#allocation4 + $0x458] sm:$0xff] }
 0x229   :  { %2287 = vmatmul.mubr.f32.gmra.mxu0 %v4459_v15  ;;  %2031 = vmatpush1.msra.mxu1 %v2004_v7  ;;  %v2322_v45 = vld [vmem:[#allocation4 + $0x460] sm:$0xff]  ;;  %v2320_v47 = vld [vmem:[#allocation4 + $0x450] sm:$0xff]  ;;  %v2319_v13 = vld [vmem:[#allocation4 + $0x448] sm:$0xff] }
 0x22a   :  { %v4466_v52 = vmax.f32 %v1654_v34, %v1656_v29  ;;  %v1657_v60 = vmax.f32 %v1609_v62, 0.0  ;;  %2032 = vmatprep.subr.mxu1 %v2003_v1  ;;  %1960 = vmatprep.mubr.f32.mxu1 %v4786_v20  ;;  %v2318_v37 = vld [vmem:[#allocation4 + $0x440] sm:$0xff]  ;;  %v2317_v48 = vld [vmem:[#allocation4 + $0x438] sm:$0xff]  ;;  %v2316_v26 = vld [vmem:[#allocation4 + $0x430] sm:$0xff] }
 0x22b   :  { %2033 = vmatpush1.msra.mxu1 %v2002_v18  ;;  %v2315_v23 = vld [vmem:[#allocation4 + $0x428] sm:$0xff]  ;;  %v2314_v2 = vld [vmem:[#allocation4 + $0x420] sm:$0xff]  ;;  %v2313_v7 = vld [vmem:[#allocation4 + $0x418] sm:$0xff]  ;;  %3200 = vmatprep.mubr.msk.f32.mxu0 %vm3424_vm0, %v4786_v20 }
 0x22c   :  { %v4469_v56 = vmax.f32 %v1655_v42, %v1657_v60  ;;  %1961 = vmatmul.mubr.f32.gmra.mxu1 %v4327_v51  ;;  %2034 = vmatprep.subr.mxu1 %v2001_v39  ;;  %v2312_v1 = vld [vmem:[#allocation4 + $0x410] sm:$0xff]  ;;  %v2311_v34 = vld [vmem:[#allocation4 + $0x408] sm:$0xff]  ;;  %v2310_v29 = vld [vmem:[#allocation4 + $0x400] sm:$0xff] }
 0x22d   :  { %2035 = vmatpush1.msra.mxu1 %v2000_v25  ;;  %1966 = vmatprep.mubr.f32.mxu1 %v4786_v20  ;;  %v2537_v62 = vld [vmem:[#allocation6 + $0x50] sm:$0xff]  ;;  %v2557_v18 = vld [vmem:[#allocation6 + $0xe8] sm:$0xff]  ;;  %v2556_v42 = vld [vmem:[#allocation6 + $0xe0] sm:$0xff] }
 0x22e   :  { %v1693_v24 = vmax.f32 %v4466_v52, %v4469_v56  ;;  %2036 = vmatprep.subr.mxu1 %v1999_v41  ;;  %v2536_v39 = vld [vmem:[#allocation6 + $0x48] sm:$0xff]  ;;  %v2535_v52 = vld [vmem:[#allocation6 + $0x40] sm:$0xff]  ;;  %v2555_v60 = vld [vmem:[#allocation6 + $0xd8] sm:$0xff] }
 0x22f   :  { %2037 = vmatpush1.msra.mxu1 %v1998_v0  ;;  %v2534_v25 = vld [vmem:[#allocation6 + $0x38] sm:$0xff]  ;;  %v2554_v41 = vld [vmem:[#allocation6 + $0xd0] sm:$0xff]  ;;  %v2553_v0 = vld [vmem:[#allocation6 + $0xc8] sm:$0xff] }
 0x230   :  { %1967 = vmatmul.mubr.f32.gmra.mxu1 %v4349_v9  ;;  %2038 = vmatprep.subr.mxu1 %v1997_v50  ;;  %v2533_v56 = vld [vmem:[#allocation6 + $0x30] sm:$0xff]  ;;  %v2532_v50 = vld [vmem:[#allocation6 + $0x28] sm:$0xff] }
 0x231   :  { %2039 = vmatpush1.msra.mxu1 %v1996_v14  ;;  %1972 = vmatprep.mubr.f32.mxu1 %v4786_v20  ;;  %v2531_v14 = vld [vmem:[#allocation6 + $0x20] sm:$0xff] }
 0x232   :  { %2040 = vmatprep.subr.mxu1 %v1995_v38  ;;  %v2551_v38 = vld [vmem:[#allocation6 + $0xb8] sm:$0xff] }
 0x233   :  { %2041 = vmatpush1.msra.mxu1 %v1994_v6  ;;  %v2530_v6 = vld [vmem:[#allocation6 + $0x18] sm:$0xff] }
 0x234   :  { %1973 = vmatmul.mubr.f32.gmra.mxu1 %v4376_v44  ;;  %2042 = vmatprep.subr.mxu1 %v1993_v33  ;;  %v2550_v33 = vld [vmem:[#allocation6 + $0xb0] sm:$0xff] }
 0x235   :  { %2043 = vmatpush1.msra.mxu1 %v1992_v16  ;;  %1978 = vmatprep.mubr.f32.mxu1 %v4786_v20  ;;  %v2529_v16 = vld [vmem:[#allocation6 + $0x10] sm:$0xff] }
 0x236   :  { %2044 = vmatprep.subr.mxu1 %v1991_v11  ;;  %v2549_v11 = vld [vmem:[#allocation6 + $0xa8] sm:$0xff] }
 0x237   :  { %2045 = vmatpush1.msra.mxu1 %v1990_v12  ;;  %v2528_v12 = vld [vmem:[#allocation6 + $0x8] sm:$0xff] }
 0x238   :  { %1979 = vmatmul.mubr.f32.gmra.mxu1 %v4400_v27  ;;  %2046 = vmatprep.subr.mxu1 %v1989_v21  ;;  %v2548_v21 = vld [vmem:[#allocation6 + $0xa0] sm:$0xff] }
 0x239   :  { %2047 = vmatpush1.msra.mxu1 %v1988_v55  ;;  %2082 = vmatprep.mubr.f32.mxu1 %v4786_v20  ;;  %v2527_v55 = vld [vmem:[#allocation6] sm:$0xff] }
 0x23a   :  { %2048 = vmatprep.subr.mxu1 %v1987_v35  ;;  %v2547_v35 = vld [vmem:[#allocation6 + $0x98] sm:$0xff] }
 0x23b   :  { %2049 = vmatpush1.msra.mxu1 %v1986_v40 }
 0x23c   :  { %2083 = vmatmul.mubr.f32.vlgmr.msra.gmra.mxu1 %v4287_v46  ;;  %2342 = vmatprep.subr.mxu1 %v2341_v22  ;;  %v2332_v46 = vld [vmem:[#allocation4 + $0x4b0] sm:$0xff] }
 0x23d   :  { %2343 = vmatpush1.msra.mxu1 %v2340_v32  ;;  %2088 = vmatprep.mubr.f32.mxu1 %v4786_v20  ;;  %v2546_v22 = vld [vmem:[#allocation6 + $0x90] sm:$0xff]  ;;  %v2545_v32 = vld [vmem:[#allocation6 + $0x88] sm:$0xff] }
 0x23e   :  { %2344 = vmatprep.subr.mxu1 %v2339_v28 }
 0x23f   :  { %2345 = vmatpush1.msra.mxu1 %v2338_v63  ;;  %v2544_v63 = vld [vmem:[#allocation6 + $0x80] sm:$0xff] }
 0x240   :  { %2089 = vmatmul.mubr.f32.gmra.mxu1 %v4305_v61  ;;  %2346 = vmatprep.subr.mxu1 %v2337_v30  ;;  %v2328_v61 = vld [vmem:[#allocation4 + $0x490] sm:$0xff] }
 0x241   :  { %2347 = vmatpush1.msra.mxu1 %v2336_v31  ;;  %2094 = vmatprep.mubr.f32.mxu1 %v4786_v20 }
 0x242   :  { %2348 = vmatprep.subr.mxu1 %v2335_v49 }
 0x243   :  { %2349 = vmatpush1.msra.mxu1 %v2334_v57 }
 0x244   :  { %2095 = vmatmul.mubr.f32.gmra.mxu1 %v4327_v51  ;;  %2350 = vmatprep.subr.mxu1 %v2333_v3 }
 0x245   :  { %2351 = vmatpush1.msra.mxu1 %v2332_v46  ;;  %2100 = vmatprep.mubr.f32.mxu1 %v4786_v20 }
 0x246   :  { %2352 = vmatprep.subr.mxu1 %v2331_v43 }
 0x247   :  { %2353 = vmatpush1.msra.mxu1 %v2330_v59 }
 0x248   :  { %2101 = vmatmul.mubr.f32.gmra.mxu1 %v4349_v9  ;;  %2354 = vmatprep.subr.mxu1 %v2329_v17 }
 0x249   :  { %2355 = vmatpush1.msra.mxu1 %v2328_v61  ;;  %2106 = vmatprep.mubr.f32.mxu1 %v4786_v20 }
 0x24a   :  { %2356 = vmatprep.subr.mxu1 %v2327_v53 }
 0x24b   :  { %2357 = vmatpush1.msra.mxu1 %v2326_v5 }
 0x24c   :  { %2107 = vmatmul.mubr.f32.gmra.mxu1 %v4376_v44  ;;  %2358 = vmatprep.subr.mxu1 %v2325_v36 }
 0x24d   :  { %2359 = vmatpush1.msra.mxu1 %v2324_v19  ;;  %2112 = vmatprep.mubr.f32.mxu1 %v4786_v20 }
 0x24e   :  { %2360 = vmatprep.subr.mxu1 %v2323_v54 }
 0x24f   :  { %2361 = vmatpush1.msra.mxu1 %v2322_v45 }
 0x250   :  { %2113 = vmatmul.mubr.f32.gmra.mxu1 %v4400_v27  ;;  %2362 = vmatprep.subr.mxu1 %v2321_v4 }
 0x251   :  { %2363 = vmatpush1.msra.mxu1 %v2320_v47  ;;  %2118 = vmatprep.mubr.f32.mxu1 %v4786_v20 }
 0x252   :  { %2364 = vmatprep.subr.mxu1 %v2319_v13 }
 0x253   :  { %2365 = vmatpush1.msra.mxu1 %v2318_v37 }
 0x254   :  { %2119 = vmatmul.mubr.f32.gmra.mxu1 %v4422_v58  ;;  %2366 = vmatprep.subr.mxu1 %v2317_v48 }
 0x255   :  { %2367 = vmatpush1.msra.mxu1 %v2316_v26  ;;  %2124 = vmatprep.mubr.f32.mxu1 %v4786_v20 }
 0x256   :  { %2368 = vmatprep.subr.mxu1 %v2315_v23 }
 0x257   :  { %2369 = vmatpush1.msra.mxu1 %v2314_v2 }
 0x258   :  { %2125 = vmatmul.mubr.f32.gmra.mxu1 %v4445_v10  ;;  %2370 = vmatprep.subr.mxu1 %v2313_v7 }
 0x259   :  { %2371 = vmatpush1.msra.mxu1 %v2312_v1  ;;  %2406 = vmatprep.mubr.f32.mxu1 %v4786_v20 }
 0x25a   :  { %2372 = vmatprep.subr.mxu1 %v2311_v34 }
 0x25b   :  { %2373 = vmatpush1.msra.mxu1 %v2310_v29 }
 0x25c   :  { %2407 = vmatmul.mubr.f32.vlgmr.msra.gmra.mxu1 %v4327_v51  ;;  %3203 = vmatprep.subr.mxu1 %v4786_v20  ;;  %v2542_v51 = vld [vmem:[#allocation6 + $0x78] sm:$0xff] }
 0x25d   :  { %2412 = vmatprep.mubr.f32.mxu1 %v4786_v20  ;;  %3204 = vmatpush3.msra.mxu1 %v2542_v51 }
 0x25e   :  { %3205 = vmatprep.subr.mxu1 %v4786_v20 }
 0x260   :  { %2413 = vmatmul.mubr.f32.gmra.mxu1 %v4349_v9  ;;  %v2541_v9 = vld [vmem:[#allocation6 + $0x70] sm:$0xff] }
 0x261   :  { %2418 = vmatprep.mubr.f32.mxu1 %v4786_v20  ;;  %3206 = vmatpush3.msra.mxu1 %v2541_v9 }
 0x262   :  { %3207 = vmatprep.subr.mxu1 %v4786_v20 }
 0x264   :  { %2419 = vmatmul.mubr.f32.gmra.mxu1 %v4376_v44  ;;  %v2540_v44 = vld [vmem:[#allocation6 + $0x68] sm:$0xff] }
 0x265   :  { %2424 = vmatprep.mubr.f32.mxu1 %v4786_v20  ;;  %3208 = vmatpush3.msra.mxu1 %v2540_v44 }
 0x266   :  { %3209 = vmatprep.subr.mxu1 %v4786_v20 }
 0x268   :  { %2425 = vmatmul.mubr.f32.gmra.mxu1 %v4400_v27  ;;  %v2539_v27 = vld [vmem:[#allocation6 + $0x60] sm:$0xff] }
 0x269   :  { %2430 = vmatprep.mubr.f32.mxu1 %v4786_v20  ;;  %3210 = vmatpush3.msra.mxu1 %v2539_v27 }
 0x26a   :  { %3211 = vmatprep.subr.mxu1 %v4786_v20 }
 0x26c   :  { %2431 = vmatmul.mubr.f32.gmra.mxu1 %v4422_v58  ;;  %v2559_v58 = vld [vmem:[#allocation6 + $0xf8] sm:$0xff] }
 0x26d   :  { %2436 = vmatprep.mubr.f32.mxu1 %v4786_v20  ;;  %3169 = vmatpush3.msra.mxu0 %v2559_v58 }
 0x26e   :  { %3170 = vmatprep.subr.mxu0 %v4786_v20 }
 0x270   :  { %2437 = vmatmul.mubr.f32.gmra.mxu1 %v4445_v10  ;;  %v2538_v10 = vld [vmem:[#allocation6 + $0x58] sm:$0xff] }
 0x271   :  { %2442 = vmatprep.mubr.f32.mxu1 %v4786_v20  ;;  %3212 = vmatpush3.msra.mxu1 %v2538_v10 }
 0x272   :  { %3213 = vmatprep.subr.mxu1 %v4786_v20 }
 0x273   :  { %3214 = vmatpush3.msra.mxu1 %v2537_v62 }
 0x274   :  { %2443 = vmatmul.mubr.f32.gmra.mxu1 %v4459_v15  ;;  %v2558_v15 = vld [vmem:[#allocation6 + $0xf0] sm:$0xff]  ;;  %3215 = vmatprep.subr.mxu1 %v4786_v20 }
 0x275   :  { %2448 = vmatprep.mubr.f32.mxu1 %v4786_v20  ;;  %3171 = vmatpush3.msra.mxu0 %v2558_v15 }
 0x276   :  { %3172 = vmatprep.subr.mxu0 %v4786_v20  ;;  %3216 = vmatpush3.msra.mxu1 %v2536_v39 }
 0x277   :  { %3173 = vmatpush3.msra.mxu0 %v2557_v18  ;;  %3217 = vmatprep.subr.mxu1 %v4786_v20 }
 0x278   :  { %2449 = vmatmul.mubr.f32.gmra.mxu1 %v1693_v24  ;;  %3174 = vmatprep.subr.mxu0 %v4786_v20  ;;  %v2552_v24 = vld [vmem:[#allocation6 + $0xc0] sm:$0xff] }
 0x279   :  { %3175 = vmatpush3.msra.mxu0 %v2556_v42  ;;  %3218 = vmatpush3.msra.mxu1 %v2535_v52 }
 0x27a   :  { %3176 = vmatprep.subr.mxu0 %v4786_v20  ;;  %3219 = vmatprep.subr.mxu1 %v4786_v20 }
 0x27b   :  { %3177 = vmatpush3.msra.mxu0 %v2555_v60  ;;  %3220 = vmatpush3.msra.mxu1 %v2534_v25 }
 0x27c   :  { %3178 = vmatprep.subr.mxu0 %v4786_v20  ;;  %3221 = vmatprep.subr.mxu1 %v4786_v20 }
 0x27d   :  { %3179 = vmatpush3.msra.mxu0 %v2554_v41  ;;  %3222 = vmatpush3.msra.mxu1 %v2533_v56 }
 0x27e   :  { %3180 = vmatprep.subr.mxu0 %v4786_v20  ;;  %3223 = vmatprep.subr.mxu1 %v4786_v20 }
 0x27f   :  { %3181 = vmatpush3.msra.mxu0 %v2553_v0  ;;  %3224 = vmatpush3.msra.mxu1 %v2532_v50 }
 0x280   :  { %3182 = vmatprep.subr.mxu0 %v4786_v20  ;;  %3225 = vmatprep.subr.mxu1 %v4786_v20 }
 0x281   :  { %3183 = vmatpush3.msra.mxu0 %v2552_v24  ;;  %3226 = vmatpush3.msra.mxu1 %v2531_v14 }
 0x282   :  { %3184 = vmatprep.subr.mxu0 %v4786_v20  ;;  %3227 = vmatprep.subr.mxu1 %v4786_v20 }
 0x283   :  { %3185 = vmatpush3.msra.mxu0 %v2551_v38  ;;  %3228 = vmatpush3.msra.mxu1 %v2530_v6 }
 0x284   :  { %3186 = vmatprep.subr.mxu0 %v4786_v20  ;;  %3229 = vmatprep.subr.mxu1 %v4786_v20 }
 0x285   :  { %3187 = vmatpush3.msra.mxu0 %v2550_v33  ;;  %3230 = vmatpush3.msra.mxu1 %v2529_v16 }
 0x286   :  { %3188 = vmatprep.subr.mxu0 %v4786_v20  ;;  %3231 = vmatprep.subr.mxu1 %v4786_v20 }
 0x287   :  { %3189 = vmatpush3.msra.mxu0 %v2549_v11  ;;  %3232 = vmatpush3.msra.mxu1 %v2528_v12 }
 0x288   :  { %3190 = vmatprep.subr.mxu0 %v4786_v20  ;;  %3233 = vmatprep.subr.mxu1 %v4786_v20 }
 0x289   :  { %3191 = vmatpush3.msra.mxu0 %v2548_v21  ;;  %3234 = vmatpush3.msra.mxu1 %v2527_v55 }
 0x28a   :  { %3192 = vmatprep.subr.mxu0 %v4786_v20  ;;  %3235 = vmatprep.mubr.msk.f32.mxu1 %vm3424_vm0, %v4786_v20 }
 0x28b   :  { %3273 = vmatprep.subr.mxu1 %v4786_v20  ;;  %3193 = vmatpush3.msra.mxu0 %v2547_v35 }
 0x28c   :  { %3194 = vmatprep.subr.mxu0 %v4786_v20 }
 0x28d   :  { %3195 = vmatpush3.msra.mxu0 %v2546_v22 }
 0x28e   :  { %3196 = vmatprep.subr.mxu0 %v4786_v20 }
 0x28f   :  { %3197 = vmatpush3.msra.mxu0 %v2545_v32 }
 0x290   :  { %3198 = vmatprep.subr.mxu0 %v4786_v20 }
 0x291   :  { %3199 = vmatpush3.msra.mxu0 %v2544_v63 }
 0x292   :  { %3238 = vmatprep.subr.mxu0 %v4786_v20 }
 0x2a0   :  { %v1825_v40 = vpop.f32.mrf.mxu1 }
 0x2a2   :  { %v4549_v28 = vpop.f32.mrf.mxu1 }
 0x2a8   :  { %v4552_v30 = vpop.f32.mrf.mxu1 }
 0x2aa   :  { %v4555_v31 = vpop.f32.mrf.mxu1 }
 0x2b0   :  { %v1837_v49 = vpop.f32.mrf.mxu1  ;;  %v2246_v14 = vpop.f32.mrf.mxu0 }
 0x2b2   :  { %v4557_v57 = vpop.f32.mrf.mxu1  ;;  %v2248_v33 = vpop.f32.mrf.mxu0 }
 0x2b8   :  { %v4559_v3 = vpop.f32.mrf.mxu1  ;;  %v2252_v11 = vpop.f32.mrf.mxu0 }
 0x2ba   :  { %v4561_v46 = vpop.f32.mrf.mxu1  ;;  %v2254_v55 = vpop.f32.mrf.mxu0 }
 0x2c0   :  { %v1849_v43 = vpop.f32.mrf.mxu1 }
 0x2c2   :  { %v1851_v59 = vpop.f32.mrf.mxu1 }
 0x2c8   :  { %v1855_v17 = vpop.f32.mrf.mxu1 }
 0x2ca   :  { %v1857_v61 = vpop.f32.mrf.mxu1 }
 0x2d0   :  { %v1861_v53 = vpop.f32.mrf.mxu1 }
 0x2d2   :  { %v1863_v5 = vpop.f32.mrf.mxu1 }
 0x2d8   :  { %v1867_v36 = vpop.f32.mrf.mxu1 }
 0x2da   :  { %v1869_v19 = vpop.f32.mrf.mxu1 }
 0x2dc   :  { %v1938_v54 = vpop.f32.mrf.mxu1 }
 0x2dd   :  { %v1939_v45 = vadd.f32 %v1938_v54, %v1825_v40  ;;  %v2258_v40 = vpop.f32.mrf.mxu0 }
 0x2de   :  { %v1940_v4 = vpop.f32.mrf.mxu1 }
 0x2df   :  { %v1941_v32 = vadd.f32 %v1940_v4, %v4549_v28  ;;  %v4876_v4 = vsub.s32 0, %v4184_v8 }
 0x2e0   :  { %v1944_v47 = vpop.f32.mrf.mxu1 }
 0x2e2   :  { %v1946_v13 = vpop.f32.mrf.mxu1 }
 0x2e4   :  { %v1950_v37 = vpop.f32.mrf.mxu1 }
 0x2e5   :  { %v1951_v48 = vadd.f32 %v1950_v37, %v1837_v49 }
 0x2e6   :  { %v1952_v26 = vpop.f32.mrf.mxu1 }
 0x2e8   :  { %v1956_v23 = vpop.f32.mrf.mxu1 }
 0x2ea   :  { %v4563_v2 = vpop.f32.mrf.mxu1 }
 0x2ec   :  { %v1962_v7 = vpop.f32.mrf.mxu1 }
 0x2ed   :  { %v4565_v1 = vadd.f32 %v1962_v7, %v1849_v43  ;;  %v2260_v43 = vpop.f32.mrf.mxu0 }
 0x2ee   :  { %v1964_v34 = vpop.f32.mrf.mxu1 }
 0x2ef   :  { %v4567_v29 = vadd.f32 %v1964_v34, %v1851_v59  ;;  %v1945_v59 = vadd.f32 %v1944_v47, %v4552_v30  ;;  %v1953_v47 = vadd.f32 %v1952_v26, %v4557_v57  ;;  %v1959_v57 = vadd.f32 %v4563_v2, %v4561_v46 }
 0x2f0   :  { %v1968_v51 = vpop.f32.mrf.mxu1 }
 0x2f1   :  { %v4569_v9 = vadd.f32 %v1968_v51, %v1855_v17 }
 0x2f2   :  { %v1970_v44 = vpop.f32.mrf.mxu1 }
 0x2f3   :  { %v4571_v27 = vadd.f32 %v1970_v44, %v1857_v61 }
 0x2f4   :  { %v1974_v58 = vpop.f32.mrf.mxu1 }
 0x2f5   :  { %v4573_v10 = vadd.f32 %v1974_v58, %v1861_v53  ;;  %v2471_v53 = vld [vmem:[%s4763_s4] sm:$0x3] }
 0x2f6   :  { %v1976_v15 = vpop.f32.mrf.mxu1  ;;  %v4601_v7 = vrot.slane %v2471_v53, %v4876_v4 }
 0x2f7   :  { %v4575_v62 = vadd.f32 %v1976_v15, %v1863_v5  ;;  %v2264_v5 = vpop.f32.mrf.mxu0  ;;  %v4877_v15 = vsub.s32 1, %v4184_v8 }
 0x2f8   :  { %v1980_v18 = vpop.f32.mrf.mxu1 }
 0x2f9   :  { %v4577_v39 = vadd.f32 %v1980_v18, %v1867_v36  ;;  %v1947_v36 = vadd.f32 %v1946_v13, %v4555_v31  ;;  %v2266_v51 = vpop.f32.mrf.mxu0  ;;  %v4606_v18 = vrot.slane %v2471_v53, %v4877_v15  ;;  %v1957_v13 = vadd.f32 %v1956_v23, %v4559_v3  ;;  %v2804_v15 = vld [vmem:[#allocation6 + $0x1f8] sm:$0xff] }
 0x2fa   :  { %v1982_v42 = vpop.f32.mrf.mxu1 }
 0x2fb   :  { %v4579_v52 = vadd.f32 %v1982_v42, %v1869_v19 }
 0x2fc   :  { %v2084_v60 = vpop.f32.mrf.mxu1 }
 0x2fd   :  { %v2131_v63 = vadd.f32 %v2084_v60, %v1939_v45 }
 0x2fe   :  { %v2086_v25 = vpop.f32.mrf.mxu1 }
 0x2ff   :  { %v2132_v17 = vadd.f32 %v2086_v25, %v1941_v32  ;;  %v2293_v54 = vadd.f32 %v2246_v14, %v2131_v63  ;;  %v2270_v25 = vpop.f32.mrf.mxu0 }
 0x300   :  { %v2090_v41 = vpop.f32.mrf.mxu1 }
 0x301   :  { %v2133_v19 = vadd.f32 %v2090_v41, %v1945_v59  ;;  %v2294_v30 = vadd.f32 %v2248_v33, %v2132_v17 }
 0x302   :  { %v2092_v56 = vpop.f32.mrf.mxu1 }
 0x303   :  { %v2134_v28 = vadd.f32 %v2092_v56, %v1947_v36  ;;  %v2295_v31 = vadd.f32 %v2252_v11, %v2133_v19 }
 0x304   :  { %v2096_v0 = vpop.f32.mrf.mxu1 }
 0x305   :  { %v2135_v44 = vadd.f32 %v2096_v0, %v1951_v48  ;;  %v2296_v14 = vadd.f32 %v2254_v55, %v2134_v28 }
 0x306   :  { %v2098_v50 = vpop.f32.mrf.mxu1 }
 0x307   :  { %v2136_v42 = vadd.f32 %v2098_v50, %v1953_v47  ;;  %v2297_v11 = vadd.f32 %v2258_v40, %v2135_v44  ;;  %v2272_v50 = vpop.f32.mrf.mxu0 }
 0x308   :  { %v2102_v24 = vpop.f32.mrf.mxu1 }
 0x309   :  { %v2137_v26 = vadd.f32 %v2102_v24, %v1957_v13  ;;  %v2298_v23 = vadd.f32 %v2260_v43, %v2136_v42  ;;  %v2276_v24 = vpop.f32.mrf.mxu0 }
 0x30a   :  { %v2104_v38 = vpop.f32.mrf.mxu1 }
 0x30b   :  { %v2138_v32 = vadd.f32 %v2104_v38, %v1959_v57  ;;  %v2299_v2 = vadd.f32 %v2264_v5, %v2137_v26  ;;  %v2802_v26 = vld [vmem:[#allocation6 + $0x1e8] sm:$0xff] }
 0x30c   :  { %v2108_v6 = vpop.f32.mrf.mxu1 }
 0x30d   :  { %v2139_v53 = vadd.f32 %v2108_v6, %v4565_v1  ;;  %v2300_v4 = vadd.f32 %v2266_v51, %v2138_v32  ;;  %v2278_v6 = vpop.f32.mrf.mxu0  ;;  %v2801_v32 = vld [vmem:[#allocation6 + $0x1e0] sm:$0xff] }
 0x30e   :  { %v2110_v16 = vpop.f32.mrf.mxu1 }
 0x30f   :  { %v2140_v40 = vadd.f32 %v2110_v16, %v4567_v29  ;;  %v2301_v1 = vadd.f32 %v2270_v25, %v2139_v53  ;;  %v2282_v13 = vpop.f32.mrf.mxu0  ;;  %v2800_v53 = vld [vmem:[#allocation6 + $0x1d8] sm:$0xff] }
 0x310   :  { %v4581_v12 = vpop.f32.mrf.mxu1 }
 0x312   :  { %v4583_v21 = vpop.f32.mrf.mxu1 }
 0x313   :  { %v2142_v29 = vadd.f32 %v4583_v21, %v4571_v27 }
 0x314   :  { %v4585_v35 = vpop.f32.mrf.mxu1 }
 0x315   :  { %v2143_v25 = vadd.f32 %v4585_v35, %v4573_v10 }
 0x316   :  { %v4587_v22 = vpop.f32.mrf.mxu1 }
 0x318   :  { %v4590_v49 = vpop.f32.mrf.mxu1 }
 0x31a   :  { %v4593_v61 = vpop.f32.mrf.mxu1 }
 0x31c   :  { %v2408_v37 = vpop.f32.mrf.mxu1 }
 0x31d   :  { %v2455_v45 = vadd.f32 %v2408_v37, %v2293_v54 }
 0x31e   :  { %v2410_v34 = vpop.f32.mrf.mxu1 }
 0x31f   :  { %v2456_v58 = vadd.f32 %v2410_v34, %v2294_v30  ;;  %v2483_v41 = vadd.f32 %v4601_v7, %v2455_v45  ;;  %v2141_v30 = vadd.f32 %v4581_v12, %v4569_v9 }
 0x320   :  { %v2414_v60 = vpop.f32.mrf.mxu1 }
 0x321   :  { %v2457_v56 = vadd.f32 %v2414_v60, %v2295_v31  ;;  %v2484_v0 = vadd.f32 %v4606_v18, %v2456_v58  ;;  %v2499_v63 = vmax.f32 %v2483_v41, 0.0  ;;  %v2302_v31 = vadd.f32 %v2272_v50, %v2140_v40  ;;  %v2803_v60 = vld [vmem:[#allocation6 + $0x1f0] sm:$0xff] }
 0x322   :  { %v2416_v48 = vpop.f32.mrf.mxu1  ;;  %v2305_v50 = vadd.f32 %v2282_v13, %v2143_v25  ;;  %v2711_v25 = vld [vmem:[#allocation6 + $0x150] sm:$0xff] }
 0x323   :  { %v2485_v8 = vadd.f32 %v4601_v7, %v2457_v56  ;;  %v2458_v33 = vadd.f32 %v2416_v48, %v2296_v14  ;;  %v2500_v36 = vmax.f32 %v2484_v0, 0.0  ;;  %v2303_v56 = vadd.f32 %v2276_v24, %v2141_v30  ;;  %v2798_v30 = vld [vmem:[#allocation6 + $0x1c8] sm:$0xff] }
 0x324   :  { %v2420_v3 = vpop.f32.mrf.mxu1  ;;  %v2144_v48 = vadd.f32 %v4587_v22, %v4575_v62 }
 0x325   :  { %v2501_v59 = vmax.f32 %v2485_v8, 0.0  ;;  %v2486_v17 = vadd.f32 %v4606_v18, %v2458_v33  ;;  %v2459_v55 = vadd.f32 %v2420_v3, %v2297_v11  ;;  %v2284_v8 = vpop.f32.mrf.mxu0  ;;  %v2304_v11 = vadd.f32 %v2278_v6, %v2142_v29 }
 0x326   :  { %v2422_v46 = vpop.f32.mrf.mxu1  ;;  %v2145_v3 = vadd.f32 %v4590_v49, %v4577_v39  ;;  %v2306_v39 = vadd.f32 %v2284_v8, %v2144_v48  ;;  %v2792_v8 = vld [vmem:[#allocation6 + $0x198] sm:$0xff] }
 0x327   :  { %v2515_v19 = vmax.f32 %v2499_v63, %v2501_v59  ;;  %v2502_v54 = vmax.f32 %v2486_v17, 0.0  ;;  %v2460_v37 = vadd.f32 %v2422_v46, %v2298_v23  ;;  %v2487_v43 = vadd.f32 %v4601_v7, %v2459_v55  ;;  %v2288_v63 = vpop.f32.mrf.mxu0  ;;  %v2716_v55 = vld [vmem:[#allocation6 + $0x178] sm:$0xff] }
 0x328   :  { %v2426_v38 = vpop.f32.mrf.mxu1  ;;  %v2146_v46 = vadd.f32 %v4593_v61, %v4579_v52 }
 0x329   :  { %v2516_v28 = vmax.f32 %v2500_v36, %v2502_v54  ;;  %v2461_v45 = vadd.f32 %v2426_v38, %v2299_v2  ;;  %v2488_v34 = vadd.f32 %v4606_v18, %v2460_v37  ;;  %v2503_v51 = vmax.f32 %v2487_v43, 0.0  ;;  %v2715_v54 = vld [vmem:[#allocation6 + $0x170] sm:$0xff] }
 0x32a   :  { %v2428_v47 = vpop.f32.mrf.mxu1  ;;  %v2799_v37 = vld [vmem:[#allocation6 + $0x1d0] sm:$0xff]  ;;  %v2307_v38 = vadd.f32 %v2288_v63, %v2145_v3  ;;  %v2789_v3 = vld [vmem:[#allocation6 + $0x180] sm:$0xff]  ;;  %v2702_v63 = vld [vmem:[#allocation6 + $0x108] sm:$0xff] }
 0x32b   :  { %v2523_v5 = vmax.f32 %v2515_v19, %v2516_v28  ;;  %v2489_v44 = vadd.f32 %v4601_v7, %v2461_v45  ;;  %v2462_v58 = vadd.f32 %v2428_v47, %v2300_v4  ;;  %v2504_v27 = vmax.f32 %v2488_v34, 0.0  ;;  %v2290_v28 = vpop.f32.mrf.mxu0  ;;  %v2714_v4 = vld [vmem:[#allocation6 + $0x168] sm:$0xff] }
 0x32c   :  { %v2432_v16 = vpop.f32.mrf.mxu1 }
 0x32d   :  { %v2505_v42 = vmax.f32 %v2489_v44, 0.0  ;;  %v2490_v9 = vadd.f32 %v4606_v18, %v2462_v58  ;;  %v2463_v12 = vadd.f32 %v2432_v16, %v2301_v1  ;;  %3236 = vmatmul.mubr.f32.vlgmr.msra.gmra.mxu1 %v2523_v5  ;;  %v2308_v1 = vadd.f32 %v2290_v28, %v2146_v46  ;;  %v2713_v44 = vld [vmem:[#allocation6 + $0x160] sm:$0xff]  ;;  %v2895_v46 = vld [vmem:[%s4766_s7 + $0x50] sm:$0xff] }
 0x32e   :  { %3274 = vmatpush3.msra.mxu1 %v2804_v15  ;;  %v2434_v41 = vpop.f32.mrf.mxu1  ;;  %3305 = vmatprep.mubr.msk.f32.mxu1 %vm3424_vm0, %v4786_v20  ;;  %v2797_v58 = vld [vmem:[#allocation6 + $0x1c0] sm:$0xff] }
 0x32f   :  { %v2517_v21 = vmax.f32 %v2503_v51, %v2505_v42  ;;  %v2506_v14 = vmax.f32 %v2490_v9, 0.0  ;;  %v2464_v57 = vadd.f32 %v2434_v41, %v2302_v31  ;;  %3275 = vmatprep.subr.mxu1 %v4786_v20  ;;  %v2491_v35 = vadd.f32 %v4601_v7, %v2463_v12  ;;  %v2712_v51 = vld [vmem:[#allocation6 + $0x158] sm:$0xff]  ;;  %v2795_v41 = vld [vmem:[#allocation6 + $0x1b0] sm:$0xff] }
 0x330   :  { %3276 = vmatpush3.msra.mxu1 %v2803_v60  ;;  %v2438_v0 = vpop.f32.mrf.mxu1  ;;  %v2796_v42 = vld [vmem:[#allocation6 + $0x1b8] sm:$0xff] }
 0x331   :  { %v2518_v10 = vmax.f32 %v2504_v27, %v2506_v14  ;;  %v2465_v33 = vadd.f32 %v2438_v0, %v2303_v56  ;;  %3277 = vmatprep.subr.mxu1 %v4786_v20  ;;  %v2492_v62 = vadd.f32 %v4606_v18, %v2464_v57  ;;  %v2507_v49 = vmax.f32 %v2491_v35, 0.0  ;;  %v2794_v14 = vld [vmem:[#allocation6 + $0x1a8] sm:$0xff]  ;;  %v2709_v57 = vld [vmem:[#allocation6 + $0x140] sm:$0xff]  ;;  %v2708_v0 = vld [vmem:[#allocation6 + $0x138] sm:$0xff] }
 0x332   :  { %3278 = vmatpush3.msra.mxu1 %v2802_v26  ;;  %v2440_v23 = vpop.f32.mrf.mxu1  ;;  %v2793_v26 = vld [vmem:[#allocation6 + $0x1a0] sm:$0xff]  ;;  %v2791_v35 = vld [vmem:[#allocation6 + $0x190] sm:$0xff] }
 0x333   :  { %v2524_v59 = vmax.f32 %v2517_v21, %v2518_v10  ;;  %v2493_v22 = vadd.f32 %v4601_v7, %v2465_v33  ;;  %v2466_v17 = vadd.f32 %v2440_v23, %v2304_v11  ;;  %3279 = vmatprep.subr.mxu1 %v4786_v20  ;;  %v2508_v43 = vmax.f32 %v2492_v62, 0.0  ;;  %v2710_v21 = vld [vmem:[#allocation6 + $0x148] sm:$0xff]  ;;  %v2707_v10 = vld [vmem:[#allocation6 + $0x130] sm:$0xff]  ;;  %v2704_v23 = vld [vmem:[#allocation6 + $0x118] sm:$0xff] }
 0x334   :  { %3280 = vmatpush3.msra.mxu1 %v2801_v32  ;;  %v2444_v2 = vpop.f32.mrf.mxu1  ;;  %v2706_v33 = vld [vmem:[#allocation6 + $0x128] sm:$0xff]  ;;  %v2705_v32 = vld [vmem:[#allocation6 + $0x120] sm:$0xff]  ;;  %v2900_v62 = vld [vmem:[%s4766_s7 + $0x78] sm:$0xff] }
 0x335   :  { %v2509_v24 = vmax.f32 %v2493_v22, 0.0  ;;  %v2494_v36 = vadd.f32 %v4606_v18, %v2466_v17  ;;  %v2467_v19 = vadd.f32 %v2444_v2, %v2305_v50  ;;  %3281 = vmatprep.subr.mxu1 %v4786_v20  ;;  %3201 = vmatmul.mubr.f32.vlgmr.msra.gmra.mxu0 %v2524_v59  ;;  %v2790_v11 = vld [vmem:[#allocation6 + $0x188] sm:$0xff]  ;;  %v2703_v50 = vld [vmem:[#allocation6 + $0x110] sm:$0xff]  ;;  %v2701_v59 = vld [vmem:[#allocation6 + $0x100] sm:$0xff] }
 0x336   :  { %3239 = vmatpush3.msra.mxu0 %v2716_v55  ;;  %3282 = vmatpush3.msra.mxu1 %v2800_v53  ;;  %v2446_v40 = vpop.f32.mrf.mxu1  ;;  %v2899_v22 = vld [vmem:[%s4766_s7 + $0x70] sm:$0xff]  ;;  %v2898_v17 = vld [vmem:[%s4766_s7 + $0x68] sm:$0xff]  ;;  %v2897_v55 = vld [vmem:[%s4766_s7 + $0x60] sm:$0xff] }
 0x337   :  { %v4643_v52 = vmax.f32 %v2507_v49, %v2509_v24  ;;  %v2510_v61 = vmax.f32 %v2494_v36, 0.0  ;;  %v2468_v45 = vadd.f32 %v2446_v40, %v2306_v39  ;;  %3240 = vmatprep.subr.mxu0 %v4786_v20  ;;  %3283 = vmatprep.subr.mxu1 %v4786_v20  ;;  %v2495_v5 = vadd.f32 %v4601_v7, %v2467_v19  ;;  %v2896_v53 = vld [vmem:[%s4766_s7 + $0x58] sm:$0xff]  ;;  %v2894_v2 = vld [vmem:[%s4766_s7 + $0x48] sm:$0xff]  ;;  %v2893_v39 = vld [vmem:[%s4766_s7 + $0x40] sm:$0xff] }
 0x338   :  { %3241 = vmatpush3.msra.mxu0 %v2715_v54  ;;  %3284 = vmatpush3.msra.mxu1 %v2799_v37  ;;  %v2450_v47 = vpop.f32.mrf.mxu1  ;;  %v2892_v49 = vld [vmem:[%s4766_s7 + $0x38] sm:$0xff]  ;;  %v2891_v24 = vld [vmem:[%s4766_s7 + $0x30] sm:$0xff]  ;;  %v2890_v36 = vld [vmem:[%s4766_s7 + $0x28] sm:$0xff] }
 0x339   :  { %v4647_v6 = vmax.f32 %v2508_v43, %v2510_v61  ;;  %v2469_v34 = vadd.f32 %v2450_v47, %v2307_v38  ;;  %3242 = vmatprep.subr.mxu0 %v4786_v20  ;;  %3285 = vmatprep.subr.mxu1 %v4786_v20  ;;  %v2496_v15 = vadd.f32 %v4606_v18, %v2468_v45  ;;  %v2511_v9 = vmax.f32 %v2495_v5, 0.0  ;;  %v2889_v19 = vld [vmem:[%s4766_s7 + $0x20] sm:$0xff]  ;;  %v2888_v54 = vld [vmem:[%s4766_s7 + $0x18] sm:$0xff]  ;;  %v2887_v37 = vld [vmem:[%s4766_s7 + $0x10] sm:$0xff] }
 0x33a   :  { %3243 = vmatpush3.msra.mxu0 %v2714_v4  ;;  %3286 = vmatpush3.msra.mxu1 %v2798_v30  ;;  %v2452_v29 = vpop.f32.mrf.mxu1  ;;  %v2886_v40 = vld [vmem:[%s4766_s7 + $0x8] sm:$0xff]  ;;  %v2885_v38 = vld [vmem:[%s4766_s7] sm:$0xff] }
 0x33b   :  { %v2525_v16 = vmax.f32 %v4643_v52, %v4647_v6  ;;  %v2497_v31 = vadd.f32 %v4601_v7, %v2469_v34  ;;  %v2470_v13 = vadd.f32 %v2452_v29, %v2308_v1  ;;  %3244 = vmatprep.subr.mxu0 %v4786_v20  ;;  %3287 = vmatprep.subr.mxu1 %v4786_v20  ;;  %v2512_v7 = vmax.f32 %v2496_v15, 0.0  ;;  %v3081_v6 = vld [vmem:[%s4765_s6] ss:$0 sm:$0xff] }
 0x33c   :  { %3245 = vmatpush3.msra.mxu0 %v2713_v44  ;;  %3288 = vmatpush3.msra.mxu1 %v2797_v58  ;;  %v3082_v58 = vld [vmem:[%s4767_s8] ss:$0 sm:$0xff] }
 0x33d   :  { %v2513_v12 = vmax.f32 %v2497_v31, 0.0  ;;  %v2498_v60 = vadd.f32 %v4606_v18, %v2470_v13  ;;  %3246 = vmatprep.subr.mxu0 %v4786_v20  ;;  %3289 = vmatprep.subr.mxu1 %v4786_v20 }
 0x33e   :  { %3247 = vmatpush3.msra.mxu0 %v2712_v51  ;;  %3290 = vmatpush3.msra.mxu1 %v2796_v42 }
 0x33f   :  { %v2521_v56 = vmax.f32 %v2511_v9, %v2513_v12  ;;  %v2514_v27 = vmax.f32 %v2498_v60, 0.0  ;;  %3248 = vmatprep.subr.mxu0 %v4786_v20  ;;  %3291 = vmatprep.subr.mxu1 %v4786_v20 }
 0x340   :  { %3249 = vmatpush3.msra.mxu0 %v2711_v25  ;;  %3292 = vmatpush3.msra.mxu1 %v2795_v41 }
 0x341   :  { %v2522_v18 = vmax.f32 %v2512_v7, %v2514_v27  ;;  %3250 = vmatprep.subr.mxu0 %v4786_v20  ;;  %3293 = vmatprep.subr.mxu1 %v4786_v20 }
 0x342   :  { %3251 = vmatpush3.msra.mxu0 %v2710_v21  ;;  %3294 = vmatpush3.msra.mxu1 %v2794_v14 }
 0x343   :  { %v2526_v48 = vmax.f32 %v2521_v56, %v2522_v18  ;;  %3252 = vmatprep.subr.mxu0 %v4786_v20  ;;  %3295 = vmatprep.subr.mxu1 %v4786_v20 }
 0x344   :  { %3253 = vmatpush3.msra.mxu0 %v2709_v57  ;;  %3296 = vmatpush3.msra.mxu1 %v2793_v26 }
 0x345   :  { %3254 = vmatprep.subr.mxu0 %v4786_v20  ;;  %3297 = vmatprep.subr.mxu1 %v4786_v20 }
 0x346   :  { %3255 = vmatpush3.msra.mxu0 %v2708_v0  ;;  %3298 = vmatpush3.msra.mxu1 %v2792_v8 }
 0x347   :  { %3256 = vmatprep.subr.mxu0 %v4786_v20  ;;  %3299 = vmatprep.subr.mxu1 %v4786_v20 }
 0x348   :  { %3257 = vmatpush3.msra.mxu0 %v2707_v10  ;;  %3300 = vmatpush3.msra.mxu1 %v2791_v35 }
 0x349   :  { %3258 = vmatprep.subr.mxu0 %v4786_v20  ;;  %3301 = vmatprep.subr.mxu1 %v4786_v20 }
 0x34a   :  { %3259 = vmatpush3.msra.mxu0 %v2706_v33  ;;  %3302 = vmatpush3.msra.mxu1 %v2790_v11 }
 0x34b   :  { %3260 = vmatprep.subr.mxu0 %v4786_v20  ;;  %3303 = vmatprep.subr.mxu1 %v4786_v20 }
 0x34c   :  { %3261 = vmatpush3.msra.mxu0 %v2705_v32  ;;  %3304 = vmatpush3.msra.mxu1 %v2789_v3 }
 0x34d   :  { %3262 = vmatprep.subr.mxu0 %v4786_v20  ;;  %3306 = vmatmul.mubr.f32.vlgmr.msra.gmra.mxu1 %v2526_v48 }
 0x34e   :  { %3263 = vmatpush3.msra.mxu0 %v2704_v23  ;;  %3270 = vmatprep.mubr.msk.f32.mxu0 %vm3424_vm0, %v4786_v20 }
 0x34f   :  { %3264 = vmatprep.subr.mxu0 %v4786_v20 }
 0x350   :  { %3265 = vmatpush3.msra.mxu0 %v2703_v50 }
 0x351   :  { %3266 = vmatprep.subr.mxu0 %v4786_v20 }
 0x352   :  { %3267 = vmatpush3.msra.mxu0 %v2702_v63 }
 0x353   :  { %3268 = vmatprep.subr.mxu0 %v4786_v20 }
 0x354   :  { %3269 = vmatpush3.msra.mxu0 %v2701_v59 }
 0x355   :  { %3271 = vmatmul.mubr.f32.vlgmr.msra.gmra.mxu0 %v2525_v16  ;;  %3308 = vmatprep.subr.mxu0 %v4786_v20 }
 0x356   :  { %3340 = vmatprep.mubr.msk.f32.mxu0 %vm3424_vm0, %v4786_v20  ;;  %3309 = vmatpush3.msra.mxu0 %v2900_v62 }
 0x357   :  { %3310 = vmatprep.subr.mxu0 %v4786_v20 }
 0x358   :  { %3311 = vmatpush3.msra.mxu0 %v2899_v22 }
 0x359   :  { %3312 = vmatprep.subr.mxu0 %v4786_v20 }
 0x35a   :  { %3313 = vmatpush3.msra.mxu0 %v2898_v17 }
 0x35b   :  { %3314 = vmatprep.subr.mxu0 %v4786_v20 }
 0x35c   :  { %3315 = vmatpush3.msra.mxu0 %v2897_v55 }
 0x35d   :  { %3316 = vmatprep.subr.mxu0 %v4786_v20 }
 0x35e   :  { %3317 = vmatpush3.msra.mxu0 %v2896_v53 }
 0x35f   :  { %3318 = vmatprep.subr.mxu0 %v4786_v20 }
 0x360   :  { %3319 = vmatpush3.msra.mxu0 %v2895_v46 }
 0x361   :  { %3320 = vmatprep.subr.mxu0 %v4786_v20 }
 0x362   :  { %3321 = vmatpush3.msra.mxu0 %v2894_v2 }
 0x363   :  { %3322 = vmatprep.subr.mxu0 %v4786_v20 }
 0x364   :  { %3323 = vmatpush3.msra.mxu0 %v2893_v39 }
 0x365   :  { %3324 = vmatprep.subr.mxu0 %v4786_v20 }
 0x366   :  { %3325 = vmatpush3.msra.mxu0 %v2892_v49 }
 0x367   :  { %3326 = vmatprep.subr.mxu0 %v4786_v20 }
 0x368   :  { %3327 = vmatpush3.msra.mxu0 %v2891_v24 }
 0x369   :  { %3328 = vmatprep.subr.mxu0 %v4786_v20 }
 0x36a   :  { %3329 = vmatpush3.msra.mxu0 %v2890_v36 }
 0x36b   :  { %3330 = vmatprep.subr.mxu0 %v4786_v20 }
 0x36c   :  { %3331 = vmatpush3.msra.mxu0 %v2889_v19 }
 0x36d   :  { %3332 = vmatprep.subr.mxu0 %v4786_v20 }
 0x36e   :  { %3333 = vmatpush3.msra.mxu0 %v2888_v54 }
 0x36f   :  { %3334 = vmatprep.subr.mxu0 %v4786_v20 }
 0x370   :  { %3335 = vmatpush3.msra.mxu0 %v2887_v37 }
 0x371   :  { %3336 = vmatprep.subr.mxu0 %v4786_v20 }
 0x372   :  { %3337 = vmatpush3.msra.mxu0 %v2886_v40 }
 0x373   :  { %3338 = vmatprep.subr.mxu0 %v4786_v20 }
 0x374   :  { %3339 = vmatpush3.msra.mxu0 %v2885_v38 }
 0x3ed   :  { %v2696_v28 = vpop.f32.mrf.mxu1 }
 0x3ef   :  { %v3237_v43 = vpop.f32.mrf.mxu1 }
 0x3f5   :  { %v2626_v52 = vpop.f32.mrf.mxu0 }
 0x3f6   :  { %v2697_v30 = vadd.f32 %v2696_v28, %v2626_v52 }
 0x3f7   :  { %v3202_v61 = vpop.f32.mrf.mxu0 }
 0x40d   :  { %v2871_v45 = vpop.f32.mrf.mxu1 }
 0x40f   :  { %v3307_v4 = vpop.f32.mrf.mxu1 }
 0x415   :  { %v2783_v47 = vpop.f32.mrf.mxu0 }
 0x416   :  { %v2787_v1 = vadd.f32 %v2783_v47, %v2697_v30 }
 0x417   :  { %v3272_v5 = vpop.f32.mrf.mxu0 }
 0x418   :  { %v2875_v20 = vadd.f32 %v2871_v45, %v2787_v1 }
 0x41a   :  { %v2883_v34 = vadd.f32 %v3081_v6, %v2875_v20 }
 0x41c   :  { %v2884_v44 = vmax.f32 %v2883_v34, 0.0 }
 0x41e   :  { %3341 = vmatmul.mubr.f32.vlgmr.msra.gmra.mxu0 %v2884_v44 }
 0x4de   :  { %v2974_v15 = vpop.f32.mrf.mxu0 }
 0x4df   :  { %v2975_v29 = vadd.f32 %v3082_v58, %v2974_v15 }
 0x4e0   :  { %v3342_v16 = vpop.f32.mrf.mxu0 }
 0x4e1   :  { %2978 = vst [vmem:[%s4768_s9] sm:$0xff] %v2975_v29 }
 0x4e2   :  { %2983 = vsyncpa [#allocation3], 1 }
 0x4e3   :  { %2984 = vsyncpa [#allocation5], 1 }

</bundles_post_ra>
